<compile_context>
chip_gen: v7x
topology: tpu7x:2x2x1
jax: 0.10.0
libtpu: 0.0.40
codegen_flags: <defaults>
</compile_context>

<pallas_src>
import functools

import jax
import jax.numpy as jnp
from jax.experimental import pallas as pl
from jax.experimental.pallas import tpu as pltpu

EPS = 1e-5
EXPANSION = 4
LANE = 128


def _pad_to_lane(c):
    return ((c + LANE - 1) // LANE) * LANE


def _vmem_limit_bytes():
    try:
        info = pltpu.get_tpu_info()
        cap = int(getattr(info, "vmem_capacity_bytes", 0)) or 64 * 1024 * 1024
    except Exception:
        cap = 64 * 1024 * 1024
    # leave ~25% headroom for the compiler; never ask for more than 110 MiB.
    return int(min(cap - cap // 4, 110 * 1024 * 1024))


_VMEM_LIMIT = _vmem_limit_bytes()


def _tn_for(c_padded):
    # 512 only when VMEM is plentiful (v5e/v6e 128 MiB); 256 matches the
    # 256-deep MXU on v6e/v7x; else 128.
    if _VMEM_LIMIT >= 90 * 1024 * 1024 and c_padded % 512 == 0:
        return 512
    if c_padded % 256 == 0:
        return 256
    return 128


def _choose_tm(rows, target=512):
    """Merged-row tile: largest sublane-aligned divisor of R that is <= target."""
    if rows <= target:
        return rows
    for tm in range(target, 7, -8):          # multiples of 8 (sublane rule)
        if rows % tm == 0:
            return tm
    return rows                              # full axis block is always legal


def _cparams(sem):
    return pltpu.CompilerParams(dimension_semantics=sem,
                                vmem_limit_bytes=_VMEM_LIMIT)


# ---------------------------------------------------------------------------
# Kernels
# ---------------------------------------------------------------------------
def _mm_stats_kernel(*refs, fuse_input_bn):
    """1x1 conv as a matmul over merged (N*H*W) rows.

    Optionally applies the previous stage's BN+ReLU to the input, cached in a
    VMEM scratch across output-channel tiles (rebuilt only at j == 0).  Emits
    per-row-tile (sum, sum^2) partials for this stage's BatchNorm, padded to
    8 sublanes so the store stays unmasked.
    """
    if fuse_input_bn:
        x_ref, scale_ref, shift_ref, w_ref, y_ref, stats_ref, xt_ref = refs

        @pl.when(pl.program_id(1) == 0)
        def _():
            xf = x_ref[...].astype(jnp.float32) * scale_ref[...] + shift_ref[...]
            xt_ref[...] = jnp.maximum(xf, 0.0).astype(jnp.bfloat16)

        x = xt_ref[...]
    else:
        x_ref, w_ref, y_ref, stats_ref = refs
        x = x_ref[...]

    y = jnp.dot(x, w_ref[...], preferred_element_type=jnp.float32)    # MXU, f32 acc
    y_ref[...] = y.astype(y_ref.dtype)                                # bf16 pre-BN out

    s = jnp.sum(y, axis=0, keepdims=True)                             # (1, tn)
    ss = jnp.sum(y * y, axis=0, keepdims=True)                        # (1, tn)
    pad = jnp.zeros((6, s.shape[1]), jnp.float32)
    stats_ref[0] = jnp.concatenate([s, ss, pad], axis=0)              # (8, tn)


def _conv3x3_stats_kernel(x_ref, scale_ref, shift_ref, w_ref, y_ref, stats_ref,
                          slab_ref, *, H, W):
    """3x3 stride-1 conv for one image.

    At j == 0: apply bn1+relu (f32), zero-pad spatially in VMEM and build an
    im2col slab (H*W, 9*P) into persistent scratch.  Every output-channel tile
    then does ONE big-K matmul against the (9*P, tn) weight block.
    """
    P = x_ref.shape[1]
    M = H * W

    @pl.when(pl.program_id(1) == 0)
    def _():
        a = x_ref[...].astype(jnp.float32) * scale_ref[...] + shift_ref[...]
        a = jnp.maximum(a, 0.0).astype(jnp.bfloat16).reshape(H, W, P)  # bn1 + relu
        zc = jnp.zeros((H, 1, P), jnp.bfloat16)
        a = jnp.concatenate([zc, a, zc], axis=1)                       # (H, W+2, P)
        zr = jnp.zeros((1, W + 2, P), jnp.bfloat16)
        ap = jnp.concatenate([zr, a, zr], axis=0)                      # (H+2, W+2, P)
        for kx in range(3):
            # W-wide slab shifted by kx; flattening makes each ky tap a row slice
            slab_kx = ap[:, kx:kx + W, :].reshape((H + 2) * W, P)
            for ky in range(3):
                win = slab_kx[ky * W: ky * W + M, :]                   # (M, P)
                tap = 3 * ky + kx
                slab_ref[:, tap * P:(tap + 1) * P] = win               # lane-aligned

    y = jnp.dot(slab_ref[...], w_ref[...], preferred_element_type=jnp.float32)
    y_ref[...] = y.astype(y_ref.dtype)

    s = jnp.sum(y, axis=0, keepdims=True)
    ss = jnp.sum(y * y, axis=0, keepdims=True)
    pad = jnp.zeros((6, y.shape[1]), jnp.float32)
    stats_ref[0] = jnp.concatenate([s, ss, pad], axis=0)


def _bn_add_relu_kernel(y_ref, s_ref, b_ref, r_ref, rs_ref, rb_ref, o_ref):
    """Final stage: bn3(y3) + bn_shortcut(residual) + relu, bf16 writeback."""
    y = y_ref[...].astype(jnp.float32) * s_ref[...] + b_ref[...]
    r = r_ref[...].astype(jnp.float32) * rs_ref[...] + rb_ref[...]
    o_ref[...] = jnp.maximum(y + r, 0.0).astype(o_ref.dtype)


def _bn_act_kernel(x_ref, s_ref, b_ref, o_ref):
    """Standalone bn+relu (only used on the stride>1 fallback path)."""
    o_ref[...] = jnp.maximum(
        x_ref[...].astype(jnp.float32) * s_ref[...] + b_ref[...], 0.0
    ).astype(o_ref.dtype)


# ---------------------------------------------------------------------------
# Pallas wrappers
# ---------------------------------------------------------------------------
def matmul_stats(x, w, in_scale=None, in_shift=None):
    """x: (R, K) bf16 merged rows, w: (K, C) bf16 ->
       (y: (R, C) bf16 pre-BN, stats: (R//tm, 8, C) f32 per-tile partials)."""
    R, K = x.shape
    C = w.shape[1]
    tn = _tn_for(C)
    tm = _choose_tm(R)
    fuse = in_scale is not None
    kernel = functools.partial(_mm_stats_kernel, fuse_input_bn=fuse)

    in_specs = [pl.BlockSpec((tm, K), lambda i, j: (i, 0))]
    args = [x]
    if fuse:
        in_specs += [pl.BlockSpec((1, K), lambda i, j: (0, 0)),
                     pl.BlockSpec((1, K), lambda i, j: (0, 0))]
        args += [in_scale, in_shift]
    in_specs += [pl.BlockSpec((K, tn), lambda i, j: (0, j))]
    args += [w]
    scratch = [pltpu.VMEM((tm, K), jnp.bfloat16)] if fuse else []
    # j (channels) is innermost; "arbitrary" keeps the cached input transform valid.
    sem = ("parallel", "arbitrary") if fuse else ("parallel", "parallel")

    flops = 2 * R * K * C
    bytes_acc = R * K * 2 + K * C * 2 + R * C * 2
    y, stats = pl.pallas_call(
        kernel,
        grid=(R // tm, C // tn),
        in_specs=in_specs,
        out_specs=(pl.BlockSpec((tm, tn), lambda i, j: (i, j)),
                   pl.BlockSpec((1, 8, tn), lambda i, j: (i, 0, j))),
        out_shape=(jax.ShapeDtypeStruct((R, C), jnp.bfloat16),
                   jax.ShapeDtypeStruct((R // tm, 8, C), jnp.float32)),
        scratch_shapes=scratch,
        compiler_params=_cparams(sem),
        cost_estimate=pl.CostEstimate(flops=flops, transcendentals=0,
                                      bytes_accessed=bytes_acc),
    )(*args)
    return y, stats


def conv3x3_stats(y1_rows, w2_flat, in_scale, in_shift, *, N, H, W):
    """y1_rows: (N*H*W, P) bf16 pre-BN conv1 output; w2_flat: (9*P, C) bf16."""
    R, P = y1_rows.shape
    C = w2_flat.shape[1]
    M = H * W
    tn = _tn_for(C)
    kernel = functools.partial(_conv3x3_stats_kernel, H=H, W=W)
    flops = 2 * N * M * 9 * P * C
    bytes_acc = R * P * 2 + 9 * P * C * 2 + R * C * 2
    y, stats = pl.pallas_call(
        kernel,
        grid=(N, C // tn),
        in_specs=[pl.BlockSpec((M, P), lambda n, j: (n, 0)),
                  pl.BlockSpec((1, P), lambda n, j: (0, 0)),
                  pl.BlockSpec((1, P), lambda n, j: (0, 0)),
                  pl.BlockSpec((9 * P, tn), lambda n, j: (0, j))],
        out_specs=(pl.BlockSpec((M, tn), lambda n, j: (n, j)),
                   pl.BlockSpec((1, 8, tn), lambda n, j: (n, 0, j))),
        out_shape=(jax.ShapeDtypeStruct((R, C), jnp.bfloat16),
                   jax.ShapeDtypeStruct((N, 8, C), jnp.float32)),
        scratch_shapes=[pltpu.VMEM((M, 9 * P), jnp.bfloat16)],   # im2col slab
        compiler_params=_cparams(("parallel", "arbitrary")),
        cost_estimate=pl.CostEstimate(flops=flops, transcendentals=0,
                                      bytes_accessed=bytes_acc),
    )(y1_rows, in_scale, in_shift, w2_flat)
    return y, stats


def bn_add_relu(y3, s3, b3, res, rs, rb):
    R, C = y3.shape
    tn = _tn_for(C)
    tm = _choose_tm(R)
    return pl.pallas_call(
        _bn_add_relu_kernel,
        grid=(R // tm, C // tn),
        in_specs=[pl.BlockSpec((tm, tn), lambda i, j: (i, j)),
                  pl.BlockSpec((1, tn), lambda i, j: (0, j)),
                  pl.BlockSpec((1, tn), lambda i, j: (0, j)),
                  pl.BlockSpec((tm, tn), lambda i, j: (i, j)),
                  pl.BlockSpec((1, tn), lambda i, j: (0, j)),
                  pl.BlockSpec((1, tn), lambda i, j: (0, j))],
        out_specs=pl.BlockSpec((tm, tn), lambda i, j: (i, j)),
        out_shape=jax.ShapeDtypeStruct((R, C), jnp.bfloat16),       # bf16 writeback
        compiler_params=_cparams(("parallel", "parallel")),
        cost_estimate=pl.CostEstimate(flops=5 * R * C, transcendentals=0,
                                      bytes_accessed=R * C * (2 + 2 + 2)),
    )(y3, s3, b3, res, rs, rb)


def bn_act(x, scale, shift):
    R, C = x.shape
    tn = _tn_for(C)
    tm = _choose_tm(R)
    return pl.pallas_call(
        _bn_act_kernel,
        grid=(R // tm, C // tn),
        in_specs=[pl.BlockSpec((tm, tn), lambda i, j: (i, j)),
                  pl.BlockSpec((1, tn), lambda i, j: (0, j)),
                  pl.BlockSpec((1, tn), lambda i, j: (0, j))],
        out_specs=pl.BlockSpec((tm, tn), lambda i, j: (i, j)),
        out_shape=jax.ShapeDtypeStruct((R, C), jnp.bfloat16),
        compiler_params=_cparams(("parallel", "parallel")),
    )(x, scale, shift)


# ---------------------------------------------------------------------------
# JAX glue: BN stat finalization (tiny per-channel math) and stride>1 fallback
# ---------------------------------------------------------------------------
def _bn_scale_shift(stats, count, gamma, beta):
    # NOTE: one-pass E[x^2]-E[x]^2 in f32; clamped at 0 to guard cancellation.
    s = jnp.sum(stats[:, 0, :], axis=0)
    ss = jnp.sum(stats[:, 1, :], axis=0)
    mean = s / count
    var = jnp.maximum(ss / count - mean * mean, 0.0)           # biased batch var
    inv = jax.lax.rsqrt(var + EPS)
    scale = gamma.reshape(-1) * inv
    shift = beta.reshape(-1) - mean * scale
    return scale[None, :].astype(jnp.float32), shift[None, :].astype(jnp.float32)


def _im2col_3x3(a_nhwc, stride):
    N, H, W, C = a_nhwc.shape
    Ho = (H - 1) // stride + 1
    Wo = (W - 1) // stride + 1
    ap = jnp.pad(a_nhwc, ((0, 0), (1, 1), (1, 1), (0, 0)))
    cols = [ap[:, ky:ky + (Ho - 1) * stride + 1:stride,
               kx:kx + (Wo - 1) * stride + 1:stride, :]
            for ky in range(3) for kx in range(3)]
    return jnp.concatenate(cols, axis=-1)                       # (N, Ho, Wo, 9C)


# ---------------------------------------------------------------------------
# Bottleneck forward (PyTorch train-mode BatchNorm semantics)
# ---------------------------------------------------------------------------
def bottleneck_forward(x_nchw, params, *, planes, stride=1):
    N, Cin, H, W = x_nchw.shape
    cin_p = params["w1"].shape[0]
    P = params["w1"].shape[1]
    cout_p = params["w3"].shape[1]
    cout = EXPANSION * planes

    # NCHW -> lane-padded NHWC bf16, spatial+batch flattened into merged rows.
    # TODO(synk): when chaining Bottleneck blocks, keep activations resident in
    # this lane-padded NHWC bf16 layout and drop the transposes/pads at both ends.
    x = jnp.transpose(x_nchw, (0, 2, 3, 1)).astype(jnp.float32)
    x = jnp.pad(x, ((0, 0), (0, 0), (0, 0), (0, cin_p - Cin)))
    x_bf = x.astype(jnp.bfloat16)                               # (N, H, W, cin_p)
    x_rows = x_bf.reshape(N * H * W, cin_p)

    # stage 1: conv1 (1x1) -> pre-BN output + batch stats
    y1, st1 = matmul_stats(x_rows, params["w1"])
    scale1, shift1 = _bn_scale_shift(st1, float(N * H * W), params["g1"], params["b1"])

    Ho = (H - 1) // stride + 1
    Wo = (W - 1) // stride + 1
    if stride == 1:
        # stage 2: 3x3 conv, bn1+relu fused on the input, in-VMEM im2col slab,
        # single K=9P matmul per output-channel tile, no HBM im2col.
        assert (H * W) % 8 == 0 or N == 1, "H*W must be sublane-aligned for fused 3x3"
        y2, st2 = conv3x3_stats(y1, params["w2"], scale1, shift1, N=N, H=H, W=W)
    else:
        # TODO(synk): implement stride>1 inside the 3x3 kernel (strided output
        # rows/cols) to remove this HBM im2col expansion and the extra bn_act pass.
        a1 = bn_act(y1, scale1, shift1).reshape(N, H, W, P)
        patches = _im2col_3x3(a1, stride).reshape(N * Ho * Wo, 9 * P)
        y2, st2 = matmul_stats(patches, params["w2"])
    scale2, shift2 = _bn_scale_shift(st2, float(N * Ho * Wo), params["g2"], params["b2"])

    # stage 3: conv3 (1x1) with bn2+relu fused on the input side
    y3, st3 = matmul_stats(y2, params["w3"], scale2, shift2)
    scale3, shift3 = _bn_scale_shift(st3, float(N * Ho * Wo), params["g3"], params["b3"])

    # shortcut branch
    if params["ws"] is not None:
        xs = x_bf[:, ::stride, ::stride, :].reshape(N * Ho * Wo, cin_p)
        sc, sts = matmul_stats(xs, params["ws"])
        scale_s, shift_s = _bn_scale_shift(sts, float(N * Ho * Wo),
                                           params["gs"], params["bs"])
    else:
        assert stride == 1 and cin_p == cout_p, (
            "identity shortcut requires stride==1 and matching (padded) channels")
        sc = x_rows                                             # identity shortcut
        scale_s = jnp.ones((1, cout_p), jnp.float32)
        shift_s = jnp.zeros((1, cout_p), jnp.float32)

    # final: bn3 + bn_shortcut + residual add + relu (bf16 writeback)
    out = bn_add_relu(y3, scale3, shift3, sc, scale_s, shift_s)

    out = out[:, :cout].reshape(N, Ho, Wo, cout)
    return jnp.transpose(out, (0, 3, 1, 2)).astype(jnp.float32)   # NCHW f32 (parity)


# ---------------------------------------------------------------------------
# Deterministic parameter construction (mirrors Bottleneck.__init__ shapes)
# NOTE: running_mean/running_var buffers of train-mode BN are not produced here.
# ---------------------------------------------------------------------------
def make_params(key, in_planes, planes, stride):
    cout = EXPANSION * planes
    cin_p, p_p, cout_p = _pad_to_lane(in_planes), _pad_to_lane(planes), _pad_to_lane(cout)
    keys = jax.random.split(key, 12)

    def nrm(k, shape, scale=0.1):
        return scale * jax.random.normal(k, shape, dtype=jnp.float32)

    def pad2(w, r, c):
        return jnp.pad(w, ((0, r - w.shape[0]), (0, c - w.shape[1])))

    def pad_g(g, c_p):
        return jnp.pad(g, ((0, 0), (0, c_p - g.shape[1])), constant_values=1.0)

    def pad_b(b, c_p):
        return jnp.pad(b, ((0, 0), (0, c_p - b.shape[1])))

    # torch conv weights (Cout, Cin, kh, kw) -> matmul layout (K, Cout), lane-padded
    w1_t = nrm(keys[0], (planes, in_planes, 1, 1))
    w2_t = nrm(keys[1], (planes, planes, 3, 3))
    w3_t = nrm(keys[2], (cout, planes, 1, 1))

    w1 = pad2(jnp.transpose(w1_t[:, :, 0, 0], (1, 0)), cin_p, p_p)
    # (co,ci,ky,kx) -> (ky,kx,ci,co) -> (tap=3*ky+kx, ci, co) -> flat (9*ci_p, co_p)
    w2 = jnp.transpose(w2_t, (2, 3, 1, 0)).reshape(9, planes, planes)
    w2 = jnp.pad(w2, ((0, 0), (0, p_p - planes), (0, p_p - planes)))
    w2 = w2.reshape(9 * p_p, p_p)
    w3 = pad2(jnp.transpose(w3_t[:, :, 0, 0], (1, 0)), p_p, cout_p)

    params = {
        "w1": w1.astype(jnp.bfloat16),
        "w2": w2.astype(jnp.bfloat16),
        "w3": w3.astype(jnp.bfloat16),
        "g1": pad_g(1.0 + nrm(keys[3], (1, planes)), p_p),
        "b1": pad_b(nrm(keys[4], (1, planes)), p_p),
        "g2": pad_g(1.0 + nrm(keys[5], (1, planes)), p_p),
        "b2": pad_b(nrm(keys[6], (1, planes)), p_p),
        "g3": pad_g(1.0 + nrm(keys[7], (1, cout)), cout_p),
        "b3": pad_b(nrm(keys[8], (1, cout)), cout_p),
    }
    if stride != 1 or in_planes != cout:
        ws_t = nrm(keys[9], (cout, in_planes, 1, 1))
        params["ws"] = pad2(jnp.transpose(ws_t[:, :, 0, 0], (1, 0)),
                            cin_p, cout_p).astype(jnp.bfloat16)
        params["gs"] = pad_g(1.0 + nrm(keys[10], (1, cout)), cout_p)
        params["bs"] = pad_b(nrm(keys[11], (1, cout)), cout_p)
    else:
        params["ws"] = None
        params["gs"] = None
        params["bs"] = None
    return params


if __name__ == "__main__":
    N, in_planes, planes, H, W, stride = 2, 8, 4, 16, 16, 1

    key = jax.random.PRNGKey(0)
    kx, kp = jax.random.split(key)
    x = jax.random.normal(kx, (N, in_planes, H, W), dtype=jnp.float32)
    params = make_params(kp, in_planes, planes, stride)

    fwd = jax.jit(functools.partial(bottleneck_forward, planes=planes, stride=stride))
    out = jax.block_until_ready(fwd(x, params))

    expected_shape = (N, EXPANSION * planes,
                      (H - 1) // stride + 1, (W - 1) // stride + 1)
    assert out.shape == expected_shape, (out.shape, expected_shape)
    assert bool(jnp.all(jnp.isfinite(out))), "non-finite output"
    assert bool(jnp.all(out >= 0.0)), "final ReLU violated"
    print("KERNEL_OK")
</pallas_src>

<mosaic_0001>
module attributes {stable_mosaic.version = 11 : i64} {
  func.func @_mm_stats_kernel(%arg0: i32, %arg1: i32, %arg2: memref<512x128xbf16, #tpu.memory_space<vmem>>, %arg3: memref<128x128xbf16, #tpu.memory_space<vmem>>, %arg4: memref<512x128xbf16, #tpu.memory_space<vmem>>, %arg5: memref<1x8x128xf32, #tpu.memory_space<vmem>>) attributes {dimension_semantics = [#tpu.dimension_semantics<parallel>, #tpu.dimension_semantics<parallel>], iteration_bounds = array<i64: 1, 1>, scalar_prefetch = 0 : i64, scratch_operands = 0 : i64, tpu.core_type = #tpu.core_type<tc>, window_params = [{transform_indices = @transform_0, window_bounds = array<i64: 512, 128>}, {transform_indices = @transform_1, window_bounds = array<i64: 128, 128>}, {transform_indices = @transform_2, window_bounds = array<i64: 512, 128>}, {transform_indices = @transform_3, window_bounds = array<i64: 1, 8, 128>}]} {
    %c0 = arith.constant 0 : index
    %c0_0 = arith.constant 0 : index
    %0 = vector.load %arg2[%c0, %c0_0] : memref<512x128xbf16, #tpu.memory_space<vmem>>, vector<512x128xbf16>
    %c0_1 = arith.constant 0 : index
    %c0_2 = arith.constant 0 : index
    %1 = vector.load %arg3[%c0_1, %c0_2] : memref<128x128xbf16, #tpu.memory_space<vmem>>, vector<128x128xbf16>
    %cst = arith.constant dense<0.000000e+00> : vector<512x128xf32>
    %2 = tpu.matmul %0, %1, %cst {dimension_numbers = #tpu.dot_dimension_numbers<[1], [0], [0], [1], [0, 0, 1, 1], [], []>} : vector<512x128xbf16>, vector<128x128xbf16>, vector<512x128xf32> -> vector<512x128xf32>
    %3 = arith.truncf %2 : vector<512x128xf32> to vector<512x128xbf16>
    %c0_3 = arith.constant 0 : index
    %c0_4 = arith.constant 0 : index
    %4 = vector.load %arg4[%c0_3, %c0_4] : memref<512x128xbf16, #tpu.memory_space<vmem>>, vector<512x128xbf16>
    tpu.vector_store %arg4[%c0_3, %c0_4], %3 {strides = array<i32>} : memref<512x128xbf16, #tpu.memory_space<vmem>>, vector<512x128xbf16>,
    %cst_5 = arith.constant dense<0.000000e+00> : vector<128xf32>
    %5 = vector.multi_reduction <add>, %2, %cst_5 [0] : vector<512x128xf32> to vector<128xf32>
    %6 = vector.shape_cast %5 : vector<128xf32> to vector<1x128xf32>
    %7 = arith.mulf %2, %2 : vector<512x128xf32>
    %cst_6 = arith.constant dense<0.000000e+00> : vector<128xf32>
    %8 = vector.multi_reduction <add>, %7, %cst_6 [0] : vector<512x128xf32> to vector<128xf32>
    %9 = vector.shape_cast %8 : vector<128xf32> to vector<1x128xf32>
    %cst_7 = arith.constant 0.000000e+00 : f32
    %10 = vector.broadcast %cst_7 : f32 to vector<6x128xf32>
    %11 = tpu.concatenate %6, %9, %10 in 0 : vector<1x128xf32>, vector<1x128xf32>, vector<6x128xf32> -> vector<8x128xf32>
    %c0_8 = arith.constant 0 : index
    %c0_9 = arith.constant 0 : index
    %c0_10 = arith.constant 0 : index
    %12 = vector.load %arg5[%c0_8, %c0_9, %c0_10] : memref<1x8x128xf32, #tpu.memory_space<vmem>>, vector<1x8x128xf32>
    %13 = vector.shape_cast %12 : vector<1x8x128xf32> to vector<8x128xf32>
    %14 = vector.shape_cast %11 : vector<8x128xf32> to vector<1x8x128xf32>
    tpu.vector_store %arg5[%c0_8, %c0_9, %c0_10], %14 {strides = array<i32>} : memref<1x8x128xf32, #tpu.memory_space<vmem>>, vector<1x8x128xf32>,
    return
  }
  func.func @transform_0(%arg0: i32, %arg1: i32) -> (i32, i32) {
    %c0_i32 = arith.constant 0 : i32
    %c0_i32_0 = arith.constant 0 : i32
    return %arg0, %c0_i32 : i32, i32
  }
  func.func @transform_1(%arg0: i32, %arg1: i32) -> (i32, i32) {
    %c0_i32 = arith.constant 0 : i32
    %c0_i32_0 = arith.constant 0 : i32
    return %c0_i32, %arg1 : i32, i32
  }
  func.func @transform_2(%arg0: i32, %arg1: i32) -> (i32, i32) {
    %c0_i32 = arith.constant 0 : i32
    return %arg0, %arg1 : i32, i32
  }
  func.func @transform_3(%arg0: i32, %arg1: i32) -> (i32, i32, i32) {
    %c0_i32 = arith.constant 0 : i32
    %c0_i32_0 = arith.constant 0 : i32
    return %arg0, %c0_i32, %arg1 : i32, i32, i32
  }
}

module attributes {stable_mosaic.version = 11 : i64} {
  func.func @_conv3x3_stats_kernel(%arg0: i32, %arg1: i32, %arg2: memref<256x128xbf16, #tpu.memory_space<vmem>>, %arg3: memref<1x128xf32, #tpu.memory_space<vmem>>, %arg4: memref<1x128xf32, #tpu.memory_space<vmem>>, %arg5: memref<1152x128xbf16, #tpu.memory_space<vmem>>, %arg6: memref<256x128xbf16, #tpu.memory_space<vmem>>, %arg7: memref<1x8x128xf32, #tpu.memory_space<vmem>>, %arg8: memref<256x1152xbf16, #tpu.memory_space<vmem>>) attributes {dimension_semantics = [#tpu.dimension_semantics<parallel>, #tpu.dimension_semantics<arbitrary>], iteration_bounds = array<i64: 2, 1>, scalar_prefetch = 0 : i64, scratch_operands = 1 : i64, tpu.core_type = #tpu.core_type<tc>, window_params = [{transform_indices = @transform_0, window_bounds = array<i64: 256, 128>}, {pipeline_mode = #tpu.pipeline_mode<synchronous>, transform_indices = @transform_1, window_bounds = array<i64: 1, 128>}, {pipeline_mode = #tpu.pipeline_mode<synchronous>, transform_indices = @transform_2, window_bounds = array<i64: 1, 128>}, {transform_indices = @transform_3, window_bounds = array<i64: 1152, 128>}, {transform_indices = @transform_4, window_bounds = array<i64: 256, 128>}, {transform_indices = @transform_5, window_bounds = array<i64: 1, 8, 128>}]} {
    %c0_i32 = arith.constant 0 : i32
    %0 = arith.cmpi eq, %arg1, %c0_i32 : i32
    %1 = arith.extui %0 : i1 to i32
    %c0_i32_0 = arith.constant 0 : i32
    %2 = arith.cmpi ne, %1, %c0_i32_0 : i32
    scf.if %2 {
      %c0_12 = arith.constant 0 : index
      %c0_13 = arith.constant 0 : index
      %18 = vector.load %arg2[%c0_12, %c0_13] : memref<256x128xbf16, #tpu.memory_space<vmem>>, vector<256x128xbf16>
      %19 = arith.extf %18 : vector<256x128xbf16> to vector<256x128xf32>
      %c0_14 = arith.constant 0 : index
      %c0_15 = arith.constant 0 : index
      %20 = vector.load %arg3[%c0_14, %c0_15] : memref<1x128xf32, #tpu.memory_space<vmem>>, vector<1x128xf32>
      %21 = vector.broadcast %20 : vector<1x128xf32> to vector<256x128xf32>
      %22 = arith.mulf %19, %21 : vector<256x128xf32>
      %c0_16 = arith.constant 0 : index
      %c0_17 = arith.constant 0 : index
      %23 = vector.load %arg4[%c0_16, %c0_17] : memref<1x128xf32, #tpu.memory_space<vmem>>, vector<1x128xf32>
      %24 = vector.broadcast %23 : vector<1x128xf32> to vector<256x128xf32>
      %25 = arith.addf %22, %24 : vector<256x128xf32>
      %cst_18 = arith.constant 0.000000e+00 : f32
      %26 = vector.broadcast %cst_18 : f32 to vector<256x128xf32>
      %27 = arith.maximumf %25, %26 : vector<256x128xf32>
      %28 = arith.truncf %27 : vector<256x128xf32> to vector<256x128xbf16>
      %29 = vector.shape_cast %28 : vector<256x128xbf16> to vector<16x16x128xbf16>
      %cst_19 = arith.constant 0.000000e+00 : bf16
      %30 = vector.broadcast %cst_19 : bf16 to vector<16x1x128xbf16>
      %31 = tpu.concatenate %30, %29, %30 in 1 : vector<16x1x128xbf16>, vector<16x16x128xbf16>, vector<16x1x128xbf16> -> vector<16x18x128xbf16>
      %cst_20 = arith.constant 0.000000e+00 : bf16
      %32 = vector.broadcast %cst_20 : bf16 to vector<1x18x128xbf16>
      %33 = tpu.concatenate %32, %31, %32 in 0 : vector<1x18x128xbf16>, vector<16x18x128xbf16>, vector<1x18x128xbf16> -> vector<18x18x128xbf16>
      %34 = vector.extract_strided_slice %33 {offsets = [0, 0, 0], sizes = [18, 16, 128], strides = [1, 1, 1]} : vector<18x18x128xbf16> to vector<18x16x128xbf16>
      %35 = vector.shape_cast %34 : vector<18x16x128xbf16> to vector<288x128xbf16>
      %36 = vector.extract_strided_slice %35 {offsets = [0, 0], sizes = [256, 128], strides = [1, 1]} : vector<288x128xbf16> to vector<256x128xbf16>
      %c0_21 = arith.constant 0 : index
      %c0_22 = arith.constant 0 : index
      %37 = vector.load %arg8[%c0_21, %c0_22] : memref<256x1152xbf16, #tpu.memory_space<vmem>>, vector<256x128xbf16>
      tpu.vector_store %arg8[%c0_21, %c0_22], %36 {strides = array<i32>} : memref<256x1152xbf16, #tpu.memory_space<vmem>>, vector<256x128xbf16>,
      %38 = vector.extract_strided_slice %35 {offsets = [16, 0], sizes = [256, 128], strides = [1, 1]} : vector<288x128xbf16> to vector<256x128xbf16>
      %c0_23 = arith.constant 0 : index
      %c384 = arith.constant 384 : index
      %39 = vector.load %arg8[%c0_23, %c384] : memref<256x1152xbf16, #tpu.memory_space<vmem>>, vector<256x128xbf16>
      tpu.vector_store %arg8[%c0_23, %c384], %38 {strides = array<i32>} : memref<256x1152xbf16, #tpu.memory_space<vmem>>, vector<256x128xbf16>,
      %40 = vector.extract_strided_slice %35 {offsets = [32, 0], sizes = [256, 128], strides = [1, 1]} : vector<288x128xbf16> to vector<256x128xbf16>
      %c0_24 = arith.constant 0 : index
      %c768 = arith.constant 768 : index
      %41 = vector.load %arg8[%c0_24, %c768] : memref<256x1152xbf16, #tpu.memory_space<vmem>>, vector<256x128xbf16>
      tpu.vector_store %arg8[%c0_24, %c768], %40 {strides = array<i32>} : memref<256x1152xbf16, #tpu.memory_space<vmem>>, vector<256x128xbf16>,
      %42 = vector.extract_strided_slice %33 {offsets = [0, 1, 0], sizes = [18, 16, 128], strides = [1, 1, 1]} : vector<18x18x128xbf16> to vector<18x16x128xbf16>
      %43 = vector.shape_cast %42 : vector<18x16x128xbf16> to vector<288x128xbf16>
      %44 = vector.extract_strided_slice %43 {offsets = [0, 0], sizes = [256, 128], strides = [1, 1]} : vector<288x128xbf16> to vector<256x128xbf16>
      %c0_25 = arith.constant 0 : index
      %c128 = arith.constant 128 : index
      %45 = vector.load %arg8[%c0_25, %c128] : memref<256x1152xbf16, #tpu.memory_space<vmem>>, vector<256x128xbf16>
      tpu.vector_store %arg8[%c0_25, %c128], %44 {strides = array<i32>} : memref<256x1152xbf16, #tpu.memory_space<vmem>>, vector<256x128xbf16>,
      %46 = vector.extract_strided_slice %43 {offsets = [16, 0], sizes = [256, 128], strides = [1, 1]} : vector<288x128xbf16> to vector<256x128xbf16>
      %c0_26 = arith.constant 0 : index
      %c512 = arith.constant 512 : index
      %47 = vector.load %arg8[%c0_26, %c512] : memref<256x1152xbf16, #tpu.memory_space<vmem>>, vector<256x128xbf16>
      tpu.vector_store %arg8[%c0_26, %c512], %46 {strides = array<i32>} : memref<256x1152xbf16, #tpu.memory_space<vmem>>, vector<256x128xbf16>,
      %48 = vector.extract_strided_slice %43 {offsets = [32, 0], sizes = [256, 128], strides = [1, 1]} : vector<288x128xbf16> to vector<256x128xbf16>
      %c0_27 = arith.constant 0 : index
      %c896 = arith.constant 896 : index
      %49 = vector.load %arg8[%c0_27, %c896] : memref<256x1152xbf16, #tpu.memory_space<vmem>>, vector<256x128xbf16>
      tpu.vector_store %arg8[%c0_27, %c896], %48 {strides = array<i32>} : memref<256x1152xbf16, #tpu.memory_space<vmem>>, vector<256x128xbf16>,
      %50 = vector.extract_strided_slice %33 {offsets = [0, 2, 0], sizes = [18, 16, 128], strides = [1, 1, 1]} : vector<18x18x128xbf16> to vector<18x16x128xbf16>
      %51 = vector.shape_cast %50 : vector<18x16x128xbf16> to vector<288x128xbf16>
      %52 = vector.extract_strided_slice %51 {offsets = [0, 0], sizes = [256, 128], strides = [1, 1]} : vector<288x128xbf16> to vector<256x128xbf16>
      %c0_28 = arith.constant 0 : index
      %c256 = arith.constant 256 : index
      %53 = vector.load %arg8[%c0_28, %c256] : memref<256x1152xbf16, #tpu.memory_space<vmem>>, vector<256x128xbf16>
      tpu.vector_store %arg8[%c0_28, %c256], %52 {strides = array<i32>} : memref<256x1152xbf16, #tpu.memory_space<vmem>>, vector<256x128xbf16>,
      %54 = vector.extract_strided_slice %51 {offsets = [16, 0], sizes = [256, 128], strides = [1, 1]} : vector<288x128xbf16> to vector<256x128xbf16>
      %c0_29 = arith.constant 0 : index
      %c640 = arith.constant 640 : index
      %55 = vector.load %arg8[%c0_29, %c640] : memref<256x1152xbf16, #tpu.memory_space<vmem>>, vector<256x128xbf16>
      tpu.vector_store %arg8[%c0_29, %c640], %54 {strides = array<i32>} : memref<256x1152xbf16, #tpu.memory_space<vmem>>, vector<256x128xbf16>,
      %56 = vector.extract_strided_slice %51 {offsets = [32, 0], sizes = [256, 128], strides = [1, 1]} : vector<288x128xbf16> to vector<256x128xbf16>
      %c0_30 = arith.constant 0 : index
      %c1024 = arith.constant 1024 : index
      %57 = vector.load %arg8[%c0_30, %c1024] : memref<256x1152xbf16, #tpu.memory_space<vmem>>, vector<256x128xbf16>
      tpu.vector_store %arg8[%c0_30, %c1024], %56 {strides = array<i32>} : memref<256x1152xbf16, #tpu.memory_space<vmem>>, vector<256x128xbf16>,
    } else {
    }
    %c0 = arith.constant 0 : index
    %c0_1 = arith.constant 0 : index
    %3 = vector.load %arg8[%c0, %c0_1] : memref<256x1152xbf16, #tpu.memory_space<vmem>>, vector<256x1152xbf16>
    %c0_2 = arith.constant 0 : index
    %c0_3 = arith.constant 0 : index
    %4 = vector.load %arg5[%c0_2, %c0_3] : memref<1152x128xbf16, #tpu.memory_space<vmem>>, vector<1152x128xbf16>
    %cst = arith.constant dense<0.000000e+00> : vector<256x128xf32>
    %5 = tpu.matmul %3, %4, %cst {dimension_numbers = #tpu.dot_dimension_numbers<[1], [0], [0], [1], [0, 0, 1, 1], [], []>} : vector<256x1152xbf16>, vector<1152x128xbf16>, vector<256x128xf32> -> vector<256x128xf32>
    %6 = arith.truncf %5 : vector<256x128xf32> to vector<256x128xbf16>
    %c0_4 = arith.constant 0 : index
    %c0_5 = arith.constant 0 : index
    %7 = vector.load %arg6[%c0_4, %c0_5] : memref<256x128xbf16, #tpu.memory_space<vmem>>, vector<256x128xbf16>
    tpu.vector_store %arg6[%c0_4, %c0_5], %6 {strides = array<i32>} : memref<256x128xbf16, #tpu.memory_space<vmem>>, vector<256x128xbf16>,
    %cst_6 = arith.constant dense<0.000000e+00> : vector<128xf32>
    %8 = vector.multi_reduction <add>, %5, %cst_6 [0] : vector<256x128xf32> to vector<128xf32>
    %9 = vector.shape_cast %8 : vector<128xf32> to vector<1x128xf32>
    %10 = arith.mulf %5, %5 : vector<256x128xf32>
    %cst_7 = arith.constant dense<0.000000e+00> : vector<128xf32>
    %11 = vector.multi_reduction <add>, %10, %cst_7 [0] : vector<256x128xf32> to vector<128xf32>
    %12 = vector.shape_cast %11 : vector<128xf32> to vector<1x128xf32>
    %cst_8 = arith.constant 0.000000e+00 : f32
    %13 = vector.broadcast %cst_8 : f32 to vector<6x128xf32>
    %14 = tpu.concatenate %9, %12, %13 in 0 : vector<1x128xf32>, vector<1x128xf32>, vector<6x128xf32> -> vector<8x128xf32>
    %c0_9 = arith.constant 0 : index
    %c0_10 = arith.constant 0 : index
    %c0_11 = arith.constant 0 : index
    %15 = vector.load %arg7[%c0_9, %c0_10, %c0_11] : memref<1x8x128xf32, #tpu.memory_space<vmem>>, vector<1x8x128xf32>
    %16 = vector.shape_cast %15 : vector<1x8x128xf32> to vector<8x128xf32>
    %17 = vector.shape_cast %14 : vector<8x128xf32> to vector<1x8x128xf32>
    tpu.vector_store %arg7[%c0_9, %c0_10, %c0_11], %17 {strides = array<i32>} : memref<1x8x128xf32, #tpu.memory_space<vmem>>, vector<1x8x128xf32>,
    return
  }
  func.func @transform_0(%arg0: i32, %arg1: i32) -> (i32, i32) {
    %c0_i32 = arith.constant 0 : i32
    %c0_i32_0 = arith.constant 0 : i32
    return %arg0, %c0_i32 : i32, i32
  }
  func.func @transform_1(%arg0: i32, %arg1: i32) -> (i32, i32) {
    %c0_i32 = arith.constant 0 : i32
    %c0_i32_0 = arith.constant 0 : i32
    %c0_i32_1 = arith.constant 0 : i32
    return %c0_i32, %c0_i32_0 : i32, i32
  }
  func.func @transform_2(%arg0: i32, %arg1: i32) -> (i32, i32) {
    %c0_i32 = arith.constant 0 : i32
    %c0_i32_0 = arith.constant 0 : i32
    %c0_i32_1 = arith.constant 0 : i32
    return %c0_i32, %c0_i32_0 : i32, i32
  }
  func.func @transform_3(%arg0: i32, %arg1: i32) -> (i32, i32) {
    %c0_i32 = arith.constant 0 : i32
    %c0_i32_0 = arith.constant 0 : i32
    return %c0_i32, %arg1 : i32, i32
  }
  func.func @transform_4(%arg0: i32, %arg1: i32) -> (i32, i32) {
    %c0_i32 = arith.constant 0 : i32
    return %arg0, %arg1 : i32, i32
  }
  func.func @transform_5(%arg0: i32, %arg1: i32) -> (i32, i32, i32) {
    %c0_i32 = arith.constant 0 : i32
    %c0_i32_0 = arith.constant 0 : i32
    return %arg0, %c0_i32, %arg1 : i32, i32, i32
  }
}

module attributes {stable_mosaic.version = 11 : i64} {
  func.func @_mm_stats_kernel(%arg0: i32, %arg1: i32, %arg2: memref<512x128xbf16, #tpu.memory_space<vmem>>, %arg3: memref<1x128xf32, #tpu.memory_space<vmem>>, %arg4: memref<1x128xf32, #tpu.memory_space<vmem>>, %arg5: memref<128x128xbf16, #tpu.memory_space<vmem>>, %arg6: memref<512x128xbf16, #tpu.memory_space<vmem>>, %arg7: memref<1x8x128xf32, #tpu.memory_space<vmem>>, %arg8: memref<512x128xbf16, #tpu.memory_space<vmem>>) attributes {dimension_semantics = [#tpu.dimension_semantics<parallel>, #tpu.dimension_semantics<arbitrary>], iteration_bounds = array<i64: 1, 1>, scalar_prefetch = 0 : i64, scratch_operands = 1 : i64, tpu.core_type = #tpu.core_type<tc>, window_params = [{transform_indices = @transform_0, window_bounds = array<i64: 512, 128>}, {pipeline_mode = #tpu.pipeline_mode<synchronous>, transform_indices = @transform_1, window_bounds = array<i64: 1, 128>}, {pipeline_mode = #tpu.pipeline_mode<synchronous>, transform_indices = @transform_2, window_bounds = array<i64: 1, 128>}, {transform_indices = @transform_3, window_bounds = array<i64: 128, 128>}, {transform_indices = @transform_4, window_bounds = array<i64: 512, 128>}, {transform_indices = @transform_5, window_bounds = array<i64: 1, 8, 128>}]} {
    %c0_i32 = arith.constant 0 : i32
    %0 = arith.cmpi eq, %arg1, %c0_i32 : i32
    %1 = arith.extui %0 : i1 to i32
    %c0_i32_0 = arith.constant 0 : i32
    %2 = arith.cmpi ne, %1, %c0_i32_0 : i32
    scf.if %2 {
      %c0_12 = arith.constant 0 : index
      %c0_13 = arith.constant 0 : index
      %18 = vector.load %arg2[%c0_12, %c0_13] : memref<512x128xbf16, #tpu.memory_space<vmem>>, vector<512x128xbf16>
      %19 = arith.extf %18 : vector<512x128xbf16> to vector<512x128xf32>
      %c0_14 = arith.constant 0 : index
      %c0_15 = arith.constant 0 : index
      %20 = vector.load %arg3[%c0_14, %c0_15] : memref<1x128xf32, #tpu.memory_space<vmem>>, vector<1x128xf32>
      %21 = vector.broadcast %20 : vector<1x128xf32> to vector<512x128xf32>
      %22 = arith.mulf %19, %21 : vector<512x128xf32>
      %c0_16 = arith.constant 0 : index
      %c0_17 = arith.constant 0 : index
      %23 = vector.load %arg4[%c0_16, %c0_17] : memref<1x128xf32, #tpu.memory_space<vmem>>, vector<1x128xf32>
      %24 = vector.broadcast %23 : vector<1x128xf32> to vector<512x128xf32>
      %25 = arith.addf %22, %24 : vector<512x128xf32>
      %cst_18 = arith.constant 0.000000e+00 : f32
      %26 = vector.broadcast %cst_18 : f32 to vector<512x128xf32>
      %27 = arith.maximumf %25, %26 : vector<512x128xf32>
      %28 = arith.truncf %27 : vector<512x128xf32> to vector<512x128xbf16>
      %c0_19 = arith.constant 0 : index
      %c0_20 = arith.constant 0 : index
      %29 = vector.load %arg8[%c0_19, %c0_20] : memref<512x128xbf16, #tpu.memory_space<vmem>>, vector<512x128xbf16>
      tpu.vector_store %arg8[%c0_19, %c0_20], %28 {strides = array<i32>} : memref<512x128xbf16, #tpu.memory_space<vmem>>, vector<512x128xbf16>,
    } else {
    }
    %c0 = arith.constant 0 : index
    %c0_1 = arith.constant 0 : index
    %3 = vector.load %arg8[%c0, %c0_1] : memref<512x128xbf16, #tpu.memory_space<vmem>>, vector<512x128xbf16>
    %c0_2 = arith.constant 0 : index
    %c0_3 = arith.constant 0 : index
    %4 = vector.load %arg5[%c0_2, %c0_3] : memref<128x128xbf16, #tpu.memory_space<vmem>>, vector<128x128xbf16>
    %cst = arith.constant dense<0.000000e+00> : vector<512x128xf32>
    %5 = tpu.matmul %3, %4, %cst {dimension_numbers = #tpu.dot_dimension_numbers<[1], [0], [0], [1], [0, 0, 1, 1], [], []>} : vector<512x128xbf16>, vector<128x128xbf16>, vector<512x128xf32> -> vector<512x128xf32>
    %6 = arith.truncf %5 : vector<512x128xf32> to vector<512x128xbf16>
    %c0_4 = arith.constant 0 : index
    %c0_5 = arith.constant 0 : index
    %7 = vector.load %arg6[%c0_4, %c0_5] : memref<512x128xbf16, #tpu.memory_space<vmem>>, vector<512x128xbf16>
    tpu.vector_store %arg6[%c0_4, %c0_5], %6 {strides = array<i32>} : memref<512x128xbf16, #tpu.memory_space<vmem>>, vector<512x128xbf16>,
    %cst_6 = arith.constant dense<0.000000e+00> : vector<128xf32>
    %8 = vector.multi_reduction <add>, %5, %cst_6 [0] : vector<512x128xf32> to vector<128xf32>
    %9 = vector.shape_cast %8 : vector<128xf32> to vector<1x128xf32>
    %10 = arith.mulf %5, %5 : vector<512x128xf32>
    %cst_7 = arith.constant dense<0.000000e+00> : vector<128xf32>
    %11 = vector.multi_reduction <add>, %10, %cst_7 [0] : vector<512x128xf32> to vector<128xf32>
    %12 = vector.shape_cast %11 : vector<128xf32> to vector<1x128xf32>
    %cst_8 = arith.constant 0.000000e+00 : f32
    %13 = vector.broadcast %cst_8 : f32 to vector<6x128xf32>
    %14 = tpu.concatenate %9, %12, %13 in 0 : vector<1x128xf32>, vector<1x128xf32>, vector<6x128xf32> -> vector<8x128xf32>
    %c0_9 = arith.constant 0 : index
    %c0_10 = arith.constant 0 : index
    %c0_11 = arith.constant 0 : index
    %15 = vector.load %arg7[%c0_9, %c0_10, %c0_11] : memref<1x8x128xf32, #tpu.memory_space<vmem>>, vector<1x8x128xf32>
    %16 = vector.shape_cast %15 : vector<1x8x128xf32> to vector<8x128xf32>
    %17 = vector.shape_cast %14 : vector<8x128xf32> to vector<1x8x128xf32>
    tpu.vector_store %arg7[%c0_9, %c0_10, %c0_11], %17 {strides = array<i32>} : memref<1x8x128xf32, #tpu.memory_space<vmem>>, vector<1x8x128xf32>,
    return
  }
  func.func @transform_0(%arg0: i32, %arg1: i32) -> (i32, i32) {
    %c0_i32 = arith.constant 0 : i32
    %c0_i32_0 = arith.constant 0 : i32
    return %arg0, %c0_i32 : i32, i32
  }
  func.func @transform_1(%arg0: i32, %arg1: i32) -> (i32, i32) {
    %c0_i32 = arith.constant 0 : i32
    %c0_i32_0 = arith.constant 0 : i32
    %c0_i32_1 = arith.constant 0 : i32
    return %c0_i32, %c0_i32_0 : i32, i32
  }
  func.func @transform_2(%arg0: i32, %arg1: i32) -> (i32, i32) {
    %c0_i32 = arith.constant 0 : i32
    %c0_i32_0 = arith.constant 0 : i32
    %c0_i32_1 = arith.constant 0 : i32
    return %c0_i32, %c0_i32_0 : i32, i32
  }
  func.func @transform_3(%arg0: i32, %arg1: i32) -> (i32, i32) {
    %c0_i32 = arith.constant 0 : i32
    %c0_i32_0 = arith.constant 0 : i32
    return %c0_i32, %arg1 : i32, i32
  }
  func.func @transform_4(%arg0: i32, %arg1: i32) -> (i32, i32) {
    %c0_i32 = arith.constant 0 : i32
    return %arg0, %arg1 : i32, i32
  }
  func.func @transform_5(%arg0: i32, %arg1: i32) -> (i32, i32, i32) {
    %c0_i32 = arith.constant 0 : i32
    %c0_i32_0 = arith.constant 0 : i32
    return %arg0, %c0_i32, %arg1 : i32, i32, i32
  }
}

module attributes {stable_mosaic.version = 11 : i64} {
  func.func @_bn_add_relu_kernel(%arg0: i32, %arg1: i32, %arg2: memref<512x128xbf16, #tpu.memory_space<vmem>>, %arg3: memref<1x128xf32, #tpu.memory_space<vmem>>, %arg4: memref<1x128xf32, #tpu.memory_space<vmem>>, %arg5: memref<512x128xbf16, #tpu.memory_space<vmem>>, %arg6: memref<1x128xf32, #tpu.memory_space<vmem>>, %arg7: memref<1x128xf32, #tpu.memory_space<vmem>>, %arg8: memref<512x128xbf16, #tpu.memory_space<vmem>>) attributes {dimension_semantics = [#tpu.dimension_semantics<parallel>, #tpu.dimension_semantics<parallel>], iteration_bounds = array<i64: 1, 1>, scalar_prefetch = 0 : i64, scratch_operands = 0 : i64, tpu.core_type = #tpu.core_type<tc>, window_params = [{transform_indices = @transform_0, window_bounds = array<i64: 512, 128>}, {transform_indices = @transform_1, window_bounds = array<i64: 1, 128>}, {transform_indices = @transform_2, window_bounds = array<i64: 1, 128>}, {transform_indices = @transform_3, window_bounds = array<i64: 512, 128>}, {transform_indices = @transform_4, window_bounds = array<i64: 1, 128>}, {transform_indices = @transform_5, window_bounds = array<i64: 1, 128>}, {transform_indices = @transform_6, window_bounds = array<i64: 512, 128>}]} {
    %c0 = arith.constant 0 : index
    %c0_0 = arith.constant 0 : index
    %0 = vector.load %arg2[%c0, %c0_0] : memref<512x128xbf16, #tpu.memory_space<vmem>>, vector<512x128xbf16>
    %1 = arith.extf %0 : vector<512x128xbf16> to vector<512x128xf32>
    %c0_1 = arith.constant 0 : index
    %c0_2 = arith.constant 0 : index
    %2 = vector.load %arg3[%c0_1, %c0_2] : memref<1x128xf32, #tpu.memory_space<vmem>>, vector<1x128xf32>
    %3 = vector.broadcast %2 : vector<1x128xf32> to vector<512x128xf32>
    %4 = arith.mulf %1, %3 : vector<512x128xf32>
    %c0_3 = arith.constant 0 : index
    %c0_4 = arith.constant 0 : index
    %5 = vector.load %arg4[%c0_3, %c0_4] : memref<1x128xf32, #tpu.memory_space<vmem>>, vector<1x128xf32>
    %6 = vector.broadcast %5 : vector<1x128xf32> to vector<512x128xf32>
    %7 = arith.addf %4, %6 : vector<512x128xf32>
    %c0_5 = arith.constant 0 : index
    %c0_6 = arith.constant 0 : index
    %8 = vector.load %arg5[%c0_5, %c0_6] : memref<512x128xbf16, #tpu.memory_space<vmem>>, vector<512x128xbf16>
    %9 = arith.extf %8 : vector<512x128xbf16> to vector<512x128xf32>
    %c0_7 = arith.constant 0 : index
    %c0_8 = arith.constant 0 : index
    %10 = vector.load %arg6[%c0_7, %c0_8] : memref<1x128xf32, #tpu.memory_space<vmem>>, vector<1x128xf32>
    %11 = vector.broadcast %10 : vector<1x128xf32> to vector<512x128xf32>
    %12 = arith.mulf %9, %11 : vector<512x128xf32>
    %c0_9 = arith.constant 0 : index
    %c0_10 = arith.constant 0 : index
    %13 = vector.load %arg7[%c0_9, %c0_10] : memref<1x128xf32, #tpu.memory_space<vmem>>, vector<1x128xf32>
    %14 = vector.broadcast %13 : vector<1x128xf32> to vector<512x128xf32>
    %15 = arith.addf %12, %14 : vector<512x128xf32>
    %16 = arith.addf %7, %15 : vector<512x128xf32>
    %cst = arith.constant 0.000000e+00 : f32
    %17 = vector.broadcast %cst : f32 to vector<512x128xf32>
    %18 = arith.maximumf %16, %17 : vector<512x128xf32>
    %19 = arith.truncf %18 : vector<512x128xf32> to vector<512x128xbf16>
    %c0_11 = arith.constant 0 : index
    %c0_12 = arith.constant 0 : index
    %20 = vector.load %arg8[%c0_11, %c0_12] : memref<512x128xbf16, #tpu.memory_space<vmem>>, vector<512x128xbf16>
    tpu.vector_store %arg8[%c0_11, %c0_12], %19 {strides = array<i32>} : memref<512x128xbf16, #tpu.memory_space<vmem>>, vector<512x128xbf16>,
    return
  }
  func.func @transform_0(%arg0: i32, %arg1: i32) -> (i32, i32) {
    %c0_i32 = arith.constant 0 : i32
    return %arg0, %arg1 : i32, i32
  }
  func.func @transform_1(%arg0: i32, %arg1: i32) -> (i32, i32) {
    %c0_i32 = arith.constant 0 : i32
    %c0_i32_0 = arith.constant 0 : i32
    return %c0_i32, %arg1 : i32, i32
  }
  func.func @transform_2(%arg0: i32, %arg1: i32) -> (i32, i32) {
    %c0_i32 = arith.constant 0 : i32
    %c0_i32_0 = arith.constant 0 : i32
    return %c0_i32, %arg1 : i32, i32
  }
  func.func @transform_3(%arg0: i32, %arg1: i32) -> (i32, i32) {
    %c0_i32 = arith.constant 0 : i32
    return %arg0, %arg1 : i32, i32
  }
  func.func @transform_4(%arg0: i32, %arg1: i32) -> (i32, i32) {
    %c0_i32 = arith.constant 0 : i32
    %c0_i32_0 = arith.constant 0 : i32
    return %c0_i32, %arg1 : i32, i32
  }
  func.func @transform_5(%arg0: i32, %arg1: i32) -> (i32, i32) {
    %c0_i32 = arith.constant 0 : i32
    %c0_i32_0 = arith.constant 0 : i32
    return %c0_i32, %arg1 : i32, i32
  }
  func.func @transform_6(%arg0: i32, %arg1: i32) -> (i32, i32) {
    %c0_i32 = arith.constant 0 : i32
    return %arg0, %arg1 : i32, i32
  }
}

</mosaic_0001>

<bundles_post_ra>
// kernel: bottleneck_forward.8
= control target key start
LH: loop header
LB: loop body
LE: loop exit
PB: predicated region body
PF: predicated region fallthrough
CT: control target
= control target key end

     0   :  { %vm1145_vm0 = vcmask 1040384   ;;  %vm1147_vm1 = vcmask 1041408   ;;  %s2124_s1 = inlined_call_operand.vmem [shape: bf16[128,128], index: 1, kind: input, shape index: {}]   ;;  %s2125_s0 = inlined_call_operand.vmem [shape: bf16[512,128], index: 0, kind: input, shape index: {}]   ;;  %s2126_s2 = inlined_call_operand.vmem [shape: bf16[512,128], index: 2, kind: output, shape index: {0}]   ;;  %s2127_s3 = inlined_call_operand.vmem [shape: f32[1,8,128], index: 3, kind: output, shape index: {1}]  }
   0x1   :  { %v1653_v0 = vld [vmem:[%s2124_s1] sm:$0xff]   ;;  %v1654_v1 = vld [vmem:[%s2124_s1 + $0x8] sm:$0xff]   ;;  %v1655_v2 = vld [vmem:[%s2124_s1 + $0x10] sm:$0xff]  }
   0x2   :  { %1557 = vmatprep.subr.bf16.mxu0 %v1653_v0  ;;  %1637 = vmatprep.subr.bf16.mxu1 %v1653_v0  ;;  %v1656_v3 = vld [vmem:[%s2124_s1 + $0x18] sm:$0xff]   ;;  %v1661_v4 = vld [vmem:[%s2125_s0] sm:$0xff]   ;;  %v1658_v6 = vld [vmem:[%s2124_s1 + $0x28] sm:$0xff]  }
   0x3   :  { %1558 = vmatpush3.bf16.msra.mxu0 %v1653_v0  ;;  %1645 = vmatpush3.bf16.msra.mxu1 %v1653_v0  ;;  %v1657_v5 = vld [vmem:[%s2124_s1 + $0x20] sm:$0xff]   ;;  %v1659_v7 = vld [vmem:[%s2124_s1 + $0x30] sm:$0xff]   ;;  %v1660_v8 = vld [vmem:[%s2124_s1 + $0x38] sm:$0xff]  }
   0x4   :  { %1559 = vmatprep.subr.bf16.mxu0 %v1654_v1  ;;  %1638 = vmatprep.subr.bf16.mxu1 %v1654_v1  ;;  %v1677_v9 = vld [vmem:[%s2125_s0 + $0x80] sm:$0xff]   ;;  %v1662_v10 = vld [vmem:[%s2125_s0 + $0x8] sm:$0xff]   ;;  %v1663_v11 = vld [vmem:[%s2125_s0 + $0x10] sm:$0xff]  }
   0x5   :  { %1573 = vmatprep.mubr.bf16.mxu0 %v1661_v4  ;;  %1605 = vmatprep.mubr.bf16.mxu1 %v1677_v9  ;;  %v1678_v12 = vld [vmem:[%s2125_s0 + $0x88] sm:$0xff]   ;;  %v1679_v13 = vld [vmem:[%s2125_s0 + $0x90] sm:$0xff]   ;;  %v1664_v14 = vld [vmem:[%s2125_s0 + $0x18] sm:$0xff]  }
   0x6   :  { %v1665_v15 = vld [vmem:[%s2125_s0 + $0x20] sm:$0xff]   ;;  %v1680_v16 = vld [vmem:[%s2125_s0 + $0x98] sm:$0xff]   ;;  %v1666_v18 = vld [vmem:[%s2125_s0 + $0x28] sm:$0xff]  }
   0x7   :  { %1560 = vmatpush3.bf16.msra.mxu0 %v1654_v1  ;;  %1646 = vmatpush3.bf16.msra.mxu1 %v1654_v1  ;;  %v1681_v17 = vld [vmem:[%s2125_s0 + $0xa0] sm:$0xff]   ;;  %v1682_v19 = vld [vmem:[%s2125_s0 + $0xa8] sm:$0xff]   ;;  %v1667_v20 = vld [vmem:[%s2125_s0 + $0x30] sm:$0xff]  }
   0x8   :  { %1561 = vmatprep.subr.bf16.mxu0 %v1655_v2  ;;  %1639 = vmatprep.subr.bf16.mxu1 %v1655_v2  ;;  %v1683_v21 = vld [vmem:[%s2125_s0 + $0xb0] sm:$0xff]   ;;  %v1668_v22 = vld [vmem:[%s2125_s0 + $0x38] sm:$0xff]   ;;  %v1669_v24 = vld [vmem:[%s2125_s0 + $0x40] sm:$0xff]  }
   0x9   :  { %v1684_v23 = vld [vmem:[%s2125_s0 + $0xb8] sm:$0xff]   ;;  %v1685_v25 = vld [vmem:[%s2125_s0 + $0xc0] sm:$0xff]   ;;  %v1670_v26 = vld [vmem:[%s2125_s0 + $0x48] sm:$0xff]  }
   0xa   :  { %v1686_v27 = vld [vmem:[%s2125_s0 + $0xc8] sm:$0xff]   ;;  %v1671_v28 = vld [vmem:[%s2125_s0 + $0x50] sm:$0xff]   ;;  %v1672_v30 = vld [vmem:[%s2125_s0 + $0x58] sm:$0xff]  }
   0xb   :  { %1562 = vmatpush3.bf16.msra.mxu0 %v1655_v2  ;;  %1647 = vmatpush3.bf16.msra.mxu1 %v1655_v2  ;;  %v1687_v29 = vld [vmem:[%s2125_s0 + $0xd0] sm:$0xff]   ;;  %v1688_v31 = vld [vmem:[%s2125_s0 + $0xd8] sm:$0xff]   ;;  %v1673_v32 = vld [vmem:[%s2125_s0 + $0x60] sm:$0xff]  }
   0xc   :  { %1563 = vmatprep.subr.bf16.mxu0 %v1656_v3  ;;  %1640 = vmatprep.subr.bf16.mxu1 %v1656_v3  ;;  %v1689_v33 = vld [vmem:[%s2125_s0 + $0xe0] sm:$0xff]   ;;  %v1674_v34 = vld [vmem:[%s2125_s0 + $0x68] sm:$0xff]   ;;  %v1675_v36 = vld [vmem:[%s2125_s0 + $0x70] sm:$0xff]  }
   0xd   :  { %v1690_v35 = vld [vmem:[%s2125_s0 + $0xe8] sm:$0xff]   ;;  %v1691_v37 = vld [vmem:[%s2125_s0 + $0xf0] sm:$0xff]   ;;  %v1676_v38 = vld [vmem:[%s2125_s0 + $0x78] sm:$0xff]  }
   0xe   :  { %v1692_v39 = vld [vmem:[%s2125_s0 + $0xf8] sm:$0xff]  }
   0xf   :  { %1564 = vmatpush3.bf16.msra.mxu0 %v1656_v3  ;;  %1648 = vmatpush3.bf16.msra.mxu1 %v1656_v3 }
  0x10   :  { %1565 = vmatprep.subr.bf16.mxu0 %v1657_v5  ;;  %1641 = vmatprep.subr.bf16.mxu1 %v1657_v5 }
  0x13   :  { %1566 = vmatpush3.bf16.msra.mxu0 %v1657_v5  ;;  %1649 = vmatpush3.bf16.msra.mxu1 %v1657_v5 }
  0x14   :  { %1567 = vmatprep.subr.bf16.mxu0 %v1658_v6  ;;  %1642 = vmatprep.subr.bf16.mxu1 %v1658_v6 }
  0x17   :  { %1568 = vmatpush3.bf16.msra.mxu0 %v1658_v6  ;;  %1650 = vmatpush3.bf16.msra.mxu1 %v1658_v6 }
  0x18   :  { %1569 = vmatprep.subr.bf16.mxu0 %v1659_v7  ;;  %1643 = vmatprep.subr.bf16.mxu1 %v1659_v7 }
  0x1b   :  { %1570 = vmatpush3.bf16.msra.mxu0 %v1659_v7  ;;  %1651 = vmatpush3.bf16.msra.mxu1 %v1659_v7 }
  0x1c   :  { %1571 = vmatprep.subr.bf16.mxu0 %v1660_v8  ;;  %1644 = vmatprep.subr.bf16.mxu1 %v1660_v8 }
  0x1f   :  { %1572 = vmatpush3.bf16.msra.mxu0 %v1660_v8  ;;  %1652 = vmatpush3.bf16.msra.mxu1 %v1660_v8 }
  0x22   :  { %1574 = vmatmul.mubr.bf16.vlgmr.msra.gmra.mrb[0].mxu0 %v1662_v10  ;;  %1606 = vmatmul.mubr.bf16.vlgmr.msra.gmra.mrb[0].mxu1 %v1678_v12 }
  0x23   :  { %1577 = vmatprep.mubr.bf16.mxu0 %v1663_v11  ;;  %1609 = vmatprep.mubr.bf16.mxu1 %v1679_v13 }
  0x2a   :  { %1578 = vmatmul.mubr.bf16.gmra.mrb[4].mxu0 %v1664_v14  ;;  %1610 = vmatmul.mubr.bf16.gmra.mrb[4].mxu1 %v1680_v16 }
  0x2b   :  { %1581 = vmatprep.mubr.bf16.mxu0 %v1665_v15  ;;  %1613 = vmatprep.mubr.bf16.mxu1 %v1681_v17 }
  0x32   :  { %1582 = vmatmul.mubr.bf16.gmra.mrb[8].mxu0 %v1666_v18  ;;  %1614 = vmatmul.mubr.bf16.gmra.mrb[8].mxu1 %v1682_v19 }
  0x33   :  { %1585 = vmatprep.mubr.bf16.mxu0 %v1667_v20  ;;  %1617 = vmatprep.mubr.bf16.mxu1 %v1683_v21 }
  0x3a   :  { %1586 = vmatmul.mubr.bf16.gmra.mrb[12].mxu0 %v1668_v22  ;;  %1618 = vmatmul.mubr.bf16.gmra.mrb[12].mxu1 %v1684_v23 }
  0x3b   :  { %1589 = vmatprep.mubr.bf16.mxu0 %v1669_v24  ;;  %1621 = vmatprep.mubr.bf16.mxu1 %v1685_v25 }
  0x42   :  { %1590 = vmatmul.mubr.bf16.gmra.mrb[16].mxu0 %v1670_v26  ;;  %1622 = vmatmul.mubr.bf16.gmra.mrb[16].mxu1 %v1686_v27 }
  0x43   :  { %1593 = vmatprep.mubr.bf16.mxu0 %v1671_v28  ;;  %1625 = vmatprep.mubr.bf16.mxu1 %v1687_v29 }
  0x4a   :  { %1594 = vmatmul.mubr.bf16.gmra.mrb[20].mxu0 %v1672_v30  ;;  %1626 = vmatmul.mubr.bf16.gmra.mrb[20].mxu1 %v1688_v31 }
  0x4b   :  { %1597 = vmatprep.mubr.bf16.mxu0 %v1673_v32  ;;  %1629 = vmatprep.mubr.bf16.mxu1 %v1689_v33 }
  0x52   :  { %1598 = vmatmul.mubr.bf16.gmra.mrb[24].mxu0 %v1674_v34  ;;  %1630 = vmatmul.mubr.bf16.gmra.mrb[24].mxu1 %v1690_v35 }
  0x53   :  { %1601 = vmatprep.mubr.bf16.mxu0 %v1675_v36  ;;  %1633 = vmatprep.mubr.bf16.mxu1 %v1691_v37 }
  0x5a   :  { %1602 = vmatmul.mubr.bf16.gmra.mrb[28].mxu0 %v1676_v38  ;;  %1634 = vmatmul.mubr.bf16.gmra.mrb[28].mxu1 %v1692_v39 }
  0xf5   :  { %v1575_v40 = vpop.f32.mrb[0].mxu0  ;;  %v1833_v41 = vpop.f32.mrb[0].mxu1 }
  0xf6   :  { %v368_v42 = vpop.f32.mrb[1].mxu0  ;;  %v1835_v43 = vpop.f32.mrb[1].mxu1  ;;  %v1014_v55 = vmul.f32 %v1575_v40, %v1575_v40 }
  0xf7   :  { %v1576_v44 = vpop.f32.mrb[2].mxu0  ;;  %v1837_v45 = vpop.f32.mrb[2].mxu1  ;;  %v1012_v46 = vmul.f32 %v368_v42, %v368_v42 }
  0xf8   :  { %v1334_v47 = vpack.c.bf16 %v1576_v44, %v1575_v40  ;;  %v371_v48 = vpop.f32.mrb[3].mxu0  ;;  %v1414_v49 = vpack.c.bf16 %v1837_v45, %v1833_v41  ;;  %v1841_v50 = vpop.f32.mrb[3].mxu1  ;;  %v1015_v58 = vmul.f32 %v1576_v44, %v1576_v44 }
  0xf9   :  { %v1329_v51 = vpack.c.bf16 %v371_v48, %v368_v42  ;;  %v943_v52 = vadd.f32 %v371_v48, %v368_v42  ;;  %v1013_v53 = vmul.f32 %v371_v48, %v371_v48  ;;  %v1409_v54 = vpack.c.bf16 %v1841_v50, %v1835_v43 }
  0xfa   :  { %1486 = vst [vmem:[%s2126_s2 + $0x8] sm:$0xff] %v1334_v47   ;;  %1502 = vst [vmem:[%s2126_s2 + $0x88] sm:$0xff] %v1414_v49  }
  0xfb   :  { %1330 = vst [vmem:[%s2126_s2] sm:$0xff] %v1329_v51   ;;  %v944_v56 = vadd.f32 %v1575_v40, %v943_v52  ;;  %v1076_v57 = vadd.f32 %v1013_v53, %v1012_v46  ;;  %1501 = vst [vmem:[%s2126_s2 + $0x80] sm:$0xff] %v1409_v54  }
  0xfd   :  { %v1077_v59 = vadd.f32 %v1076_v57, %v1014_v55  ;;  %v1579_v60 = vpop.f32.mrb[4].mxu0  ;;  %v945_v61 = vadd.f32 %v1576_v44, %v944_v56  ;;  %v1857_v62 = vpop.f32.mrb[4].mxu1 }
  0xfe   :  { %v384_v63 = vpop.f32.mrb[5].mxu0  ;;  %v1859_v0 = vpop.f32.mrb[5].mxu1  ;;  %v1018_v15 = vmul.f32 %v1579_v60, %v1579_v60 }
  0xff   :  { %v946_v1 = vadd.f32 %v945_v61, %v384_v63  ;;  %v1016_v2 = vmul.f32 %v384_v63, %v384_v63  ;;  %v1078_v3 = vadd.f32 %v1077_v59, %v1015_v58  ;;  %v1580_v4 = vpop.f32.mrb[6].mxu0  ;;  %v1861_v5 = vpop.f32.mrb[6].mxu1 }
 0x100   :  { %v1344_v6 = vpack.c.bf16 %v1580_v4, %v1579_v60  ;;  %v387_v7 = vpop.f32.mrb[7].mxu0  ;;  %v1424_v8 = vpack.c.bf16 %v1861_v5, %v1857_v62  ;;  %v1865_v9 = vpop.f32.mrb[7].mxu1  ;;  %v1019_v18 = vmul.f32 %v1580_v4, %v1580_v4 }
 0x101   :  { %v1079_v10 = vadd.f32 %v1078_v3, %v1016_v2  ;;  %v1339_v11 = vpack.c.bf16 %v387_v7, %v384_v63  ;;  %v947_v12 = vadd.f32 %v946_v1, %v387_v7  ;;  %v1017_v13 = vmul.f32 %v387_v7, %v387_v7 }
 0x102   :  { %1488 = vst [vmem:[%s2126_s2 + $0x18] sm:$0xff] %v1344_v6   ;;  %1504 = vst [vmem:[%s2126_s2 + $0x98] sm:$0xff] %v1424_v8   ;;  %v1419_v14 = vpack.c.bf16 %v1865_v9, %v1859_v0 }
 0x103   :  { %1487 = vst [vmem:[%s2126_s2 + $0x10] sm:$0xff] %v1339_v11   ;;  %v948_v16 = vadd.f32 %v1579_v60, %v947_v12  ;;  %v1080_v17 = vadd.f32 %v1079_v10, %v1017_v13 }
 0x104   :  { %1503 = vst [vmem:[%s2126_s2 + $0x90] sm:$0xff] %v1419_v14  }
 0x105   :  { %v1081_v19 = vadd.f32 %v1080_v17, %v1018_v15  ;;  %v1583_v20 = vpop.f32.mrb[8].mxu0  ;;  %v949_v21 = vadd.f32 %v1580_v4, %v948_v16  ;;  %v1881_v22 = vpop.f32.mrb[8].mxu1 }
 0x106   :  { %v400_v23 = vpop.f32.mrb[9].mxu0  ;;  %v1883_v24 = vpop.f32.mrb[9].mxu1  ;;  %v1022_v39 = vmul.f32 %v1583_v20, %v1583_v20 }
 0x107   :  { %v950_v25 = vadd.f32 %v949_v21, %v400_v23  ;;  %v1020_v26 = vmul.f32 %v400_v23, %v400_v23  ;;  %v1082_v27 = vadd.f32 %v1081_v19, %v1019_v18  ;;  %v1584_v28 = vpop.f32.mrb[10].mxu0  ;;  %v1885_v29 = vpop.f32.mrb[10].mxu1 }
 0x108   :  { %v1354_v30 = vpack.c.bf16 %v1584_v28, %v1583_v20  ;;  %v403_v31 = vpop.f32.mrb[11].mxu0  ;;  %v1434_v32 = vpack.c.bf16 %v1885_v29, %v1881_v22  ;;  %v1889_v33 = vpop.f32.mrb[11].mxu1  ;;  %v1023_v44 = vmul.f32 %v1584_v28, %v1584_v28 }
 0x109   :  { %v1083_v34 = vadd.f32 %v1082_v27, %v1020_v26  ;;  %v1349_v35 = vpack.c.bf16 %v403_v31, %v400_v23  ;;  %v951_v36 = vadd.f32 %v950_v25, %v403_v31  ;;  %v1021_v37 = vmul.f32 %v403_v31, %v403_v31 }
 0x10a   :  { %1490 = vst [vmem:[%s2126_s2 + $0x28] sm:$0xff] %v1354_v30   ;;  %1506 = vst [vmem:[%s2126_s2 + $0xa8] sm:$0xff] %v1434_v32   ;;  %v1429_v38 = vpack.c.bf16 %v1889_v33, %v1883_v24 }
 0x10b   :  { %1489 = vst [vmem:[%s2126_s2 + $0x20] sm:$0xff] %v1349_v35   ;;  %v952_v40 = vadd.f32 %v1583_v20, %v951_v36  ;;  %v1084_v42 = vadd.f32 %v1083_v34, %v1021_v37 }
 0x10c   :  { %1505 = vst [vmem:[%s2126_s2 + $0xa0] sm:$0xff] %v1429_v38  }
 0x10d   :  { %v1085_v46 = vadd.f32 %v1084_v42, %v1022_v39  ;;  %v1587_v47 = vpop.f32.mrb[12].mxu0  ;;  %v953_v48 = vadd.f32 %v1584_v28, %v952_v40  ;;  %v1905_v49 = vpop.f32.mrb[12].mxu1 }
 0x10e   :  { %v416_v51 = vpop.f32.mrb[13].mxu0  ;;  %v1907_v52 = vpop.f32.mrb[13].mxu1  ;;  %v1026_v6 = vmul.f32 %v1587_v47, %v1587_v47 }
 0x10f   :  { %v954_v53 = vadd.f32 %v953_v48, %v416_v51  ;;  %v1024_v54 = vmul.f32 %v416_v51, %v416_v51  ;;  %v1086_v55 = vadd.f32 %v1085_v46, %v1023_v44  ;;  %v1588_v56 = vpop.f32.mrb[14].mxu0  ;;  %v1909_v57 = vpop.f32.mrb[14].mxu1 }
 0x110   :  { %v1364_v58 = vpack.c.bf16 %v1588_v56, %v1587_v47  ;;  %v419_v59 = vpop.f32.mrb[15].mxu0  ;;  %v1444_v60 = vpack.c.bf16 %v1909_v57, %v1905_v49  ;;  %v1913_v61 = vpop.f32.mrb[15].mxu1  ;;  %v1027_v10 = vmul.f32 %v1588_v56, %v1588_v56 }
 0x111   :  { %v1087_v63 = vadd.f32 %v1086_v55, %v1024_v54  ;;  %v1359_v1 = vpack.c.bf16 %v419_v59, %v416_v51  ;;  %v955_v2 = vadd.f32 %v954_v53, %v419_v59  ;;  %v1025_v3 = vmul.f32 %v419_v59, %v419_v59 }
 0x112   :  { %1492 = vst [vmem:[%s2126_s2 + $0x38] sm:$0xff] %v1364_v58   ;;  %1508 = vst [vmem:[%s2126_s2 + $0xb8] sm:$0xff] %v1444_v60   ;;  %v1439_v4 = vpack.c.bf16 %v1913_v61, %v1907_v52 }
 0x113   :  { %1491 = vst [vmem:[%s2126_s2 + $0x30] sm:$0xff] %v1359_v1   ;;  %v956_v7 = vadd.f32 %v1587_v47, %v955_v2  ;;  %v1088_v8 = vadd.f32 %v1087_v63, %v1025_v3 }
 0x114   :  { %1507 = vst [vmem:[%s2126_s2 + $0xb0] sm:$0xff] %v1439_v4  }
 0x115   :  { %v1089_v11 = vadd.f32 %v1088_v8, %v1026_v6  ;;  %v1591_v12 = vpop.f32.mrb[16].mxu0  ;;  %v957_v13 = vadd.f32 %v1588_v56, %v956_v7  ;;  %v1929_v14 = vpop.f32.mrb[16].mxu1 }
 0x116   :  { %v432_v15 = vpop.f32.mrb[17].mxu0  ;;  %v1931_v16 = vpop.f32.mrb[17].mxu1  ;;  %v1030_v35 = vmul.f32 %v1591_v12, %v1591_v12 }
 0x117   :  { %v958_v17 = vadd.f32 %v957_v13, %v432_v15  ;;  %v1028_v18 = vmul.f32 %v432_v15, %v432_v15  ;;  %v1090_v19 = vadd.f32 %v1089_v11, %v1027_v10  ;;  %v1592_v20 = vpop.f32.mrb[18].mxu0  ;;  %v1933_v21 = vpop.f32.mrb[18].mxu1 }
 0x118   :  { %v1374_v23 = vpack.c.bf16 %v1592_v20, %v1591_v12  ;;  %v435_v25 = vpop.f32.mrb[19].mxu0  ;;  %v1454_v26 = vpack.c.bf16 %v1933_v21, %v1929_v14  ;;  %v1937_v27 = vpop.f32.mrb[19].mxu1  ;;  %v1031_v38 = vmul.f32 %v1592_v20, %v1592_v20 }
 0x119   :  { %v1091_v28 = vadd.f32 %v1090_v19, %v1028_v18  ;;  %v1369_v30 = vpack.c.bf16 %v435_v25, %v432_v15  ;;  %v959_v31 = vadd.f32 %v958_v17, %v435_v25  ;;  %v1029_v32 = vmul.f32 %v435_v25, %v435_v25 }
 0x11a   :  { %1494 = vst [vmem:[%s2126_s2 + $0x48] sm:$0xff] %v1374_v23   ;;  %1510 = vst [vmem:[%s2126_s2 + $0xc8] sm:$0xff] %v1454_v26   ;;  %v1449_v34 = vpack.c.bf16 %v1937_v27, %v1931_v16 }
 0x11b   :  { %1493 = vst [vmem:[%s2126_s2 + $0x40] sm:$0xff] %v1369_v30   ;;  %v960_v36 = vadd.f32 %v1591_v12, %v959_v31  ;;  %v1092_v37 = vadd.f32 %v1091_v28, %v1029_v32 }
 0x11c   :  { %1509 = vst [vmem:[%s2126_s2 + $0xc0] sm:$0xff] %v1449_v34  }
 0x11d   :  { %v1093_v39 = vadd.f32 %v1092_v37, %v1030_v35  ;;  %v1595_v40 = vpop.f32.mrb[20].mxu0  ;;  %v961_v42 = vadd.f32 %v1592_v20, %v960_v36  ;;  %v1953_v44 = vpop.f32.mrb[20].mxu1 }
 0x11e   :  { %v448_v46 = vpop.f32.mrb[21].mxu0  ;;  %v1955_v47 = vpop.f32.mrb[21].mxu1  ;;  %v1034_v6 = vmul.f32 %v1595_v40, %v1595_v40 }
 0x11f   :  { %v962_v48 = vadd.f32 %v961_v42, %v448_v46  ;;  %v1032_v51 = vmul.f32 %v448_v46, %v448_v46  ;;  %v1094_v53 = vadd.f32 %v1093_v39, %v1031_v38  ;;  %v1596_v54 = vpop.f32.mrb[22].mxu0  ;;  %v1957_v55 = vpop.f32.mrb[22].mxu1 }
 0x120   :  { %v1384_v56 = vpack.c.bf16 %v1596_v54, %v1595_v40  ;;  %v451_v58 = vpop.f32.mrb[23].mxu0  ;;  %v1464_v59 = vpack.c.bf16 %v1957_v55, %v1953_v44  ;;  %v1961_v60 = vpop.f32.mrb[23].mxu1  ;;  %v1035_v10 = vmul.f32 %v1596_v54, %v1596_v54 }
 0x121   :  { %v1095_v63 = vadd.f32 %v1094_v53, %v1032_v51  ;;  %v1379_v1 = vpack.c.bf16 %v451_v58, %v448_v46  ;;  %v963_v2 = vadd.f32 %v962_v48, %v451_v58  ;;  %v1033_v3 = vmul.f32 %v451_v58, %v451_v58 }
 0x122   :  { %1496 = vst [vmem:[%s2126_s2 + $0x58] sm:$0xff] %v1384_v56   ;;  %1512 = vst [vmem:[%s2126_s2 + $0xd8] sm:$0xff] %v1464_v59   ;;  %v1459_v4 = vpack.c.bf16 %v1961_v60, %v1955_v47 }
 0x123   :  { %1495 = vst [vmem:[%s2126_s2 + $0x50] sm:$0xff] %v1379_v1   ;;  %v964_v7 = vadd.f32 %v1595_v40, %v963_v2  ;;  %v1096_v8 = vadd.f32 %v1095_v63, %v1033_v3 }
 0x124   :  { %1511 = vst [vmem:[%s2126_s2 + $0xd0] sm:$0xff] %v1459_v4  }
 0x125   :  { %v1097_v11 = vadd.f32 %v1096_v8, %v1034_v6  ;;  %v1599_v12 = vpop.f32.mrb[24].mxu0  ;;  %v965_v13 = vadd.f32 %v1596_v54, %v964_v7  ;;  %v1977_v15 = vpop.f32.mrb[24].mxu1 }
 0x126   :  { %v464_v17 = vpop.f32.mrb[25].mxu0  ;;  %v1979_v18 = vpop.f32.mrb[25].mxu1  ;;  %v1038_v39 = vmul.f32 %v1599_v12, %v1599_v12 }
 0x127   :  { %v966_v19 = vadd.f32 %v965_v13, %v464_v17  ;;  %v1036_v20 = vmul.f32 %v464_v17, %v464_v17  ;;  %v1098_v23 = vadd.f32 %v1097_v11, %v1035_v10  ;;  %v1600_v25 = vpop.f32.mrb[26].mxu0  ;;  %v1981_v26 = vpop.f32.mrb[26].mxu1 }
 0x128   :  { %v1394_v28 = vpack.c.bf16 %v1600_v25, %v1599_v12  ;;  %v467_v30 = vpop.f32.mrb[27].mxu0  ;;  %v1474_v31 = vpack.c.bf16 %v1981_v26, %v1977_v15  ;;  %v1985_v32 = vpop.f32.mrb[27].mxu1  ;;  %v1039_v46 = vmul.f32 %v1600_v25, %v1600_v25 }
 0x129   :  { %v1099_v34 = vadd.f32 %v1098_v23, %v1036_v20  ;;  %v1389_v35 = vpack.c.bf16 %v467_v30, %v464_v17  ;;  %v967_v36 = vadd.f32 %v966_v19, %v467_v30  ;;  %v1037_v37 = vmul.f32 %v467_v30, %v467_v30 }
 0x12a   :  { %1498 = vst [vmem:[%s2126_s2 + $0x68] sm:$0xff] %v1394_v28   ;;  %1514 = vst [vmem:[%s2126_s2 + $0xe8] sm:$0xff] %v1474_v31   ;;  %v1469_v38 = vpack.c.bf16 %v1985_v32, %v1979_v18  ;;  %v1044_v31 = vmul.f32 %v1835_v43, %v1835_v43 }
 0x12b   :  { %1497 = vst [vmem:[%s2126_s2 + $0x60] sm:$0xff] %v1389_v35   ;;  %v968_v40 = vadd.f32 %v1599_v12, %v967_v36  ;;  %v1100_v42 = vadd.f32 %v1099_v34, %v1037_v37 }
 0x12c   :  { %1513 = vst [vmem:[%s2126_s2 + $0xe0] sm:$0xff] %v1469_v38   ;;  %v1045_v38 = vmul.f32 %v1841_v50, %v1841_v50 }
 0x12d   :  { %v1101_v48 = vadd.f32 %v1100_v42, %v1038_v39  ;;  %v1603_v51 = vpop.f32.mrb[28].mxu0  ;;  %v969_v53 = vadd.f32 %v1600_v25, %v968_v40  ;;  %v2001_v54 = vpop.f32.mrb[28].mxu1  ;;  %v1046_v39 = vmul.f32 %v1833_v41, %v1833_v41 }
 0x12e   :  { %v480_v56 = vpop.f32.mrb[29].mxu0  ;;  %v2003_v58 = vpop.f32.mrb[29].mxu1  ;;  %v1042_v19 = vmul.f32 %v1603_v51, %v1603_v51 }
 0x12f   :  { %v970_v59 = vadd.f32 %v969_v53, %v480_v56  ;;  %v1040_v63 = vmul.f32 %v480_v56, %v480_v56  ;;  %v1102_v1 = vadd.f32 %v1101_v48, %v1039_v46  ;;  %v1604_v2 = vpop.f32.mrb[30].mxu0  ;;  %v2005_v3 = vpop.f32.mrb[30].mxu1  ;;  %v1047_v46 = vmul.f32 %v1837_v45, %v1837_v45 }
 0x130   :  { %v1404_v4 = vpack.c.bf16 %v1604_v2, %v1603_v51  ;;  %v483_v6 = vpop.f32.mrb[31].mxu0  ;;  %v1484_v7 = vpack.c.bf16 %v2005_v3, %v2001_v54  ;;  %v2009_v8 = vpop.f32.mrb[31].mxu1  ;;  %v1043_v25 = vmul.f32 %v1604_v2, %v1604_v2 }
 0x131   :  { %v1103_v10 = vadd.f32 %v1102_v1, %v1040_v63  ;;  %v1399_v11 = vpack.c.bf16 %v483_v6, %v480_v56  ;;  %v971_v12 = vadd.f32 %v970_v59, %v483_v6  ;;  %v1041_v13 = vmul.f32 %v483_v6, %v483_v6 }
 0x132   :  { %1500 = vst [vmem:[%s2126_s2 + $0x78] sm:$0xff] %v1404_v4   ;;  %1516 = vst [vmem:[%s2126_s2 + $0xf8] sm:$0xff] %v1484_v7   ;;  %v1479_v17 = vpack.c.bf16 %v2009_v8, %v2003_v58  ;;  %v1049_v63 = vmul.f32 %v1865_v9, %v1865_v9 }
 0x133   :  { %1499 = vst [vmem:[%s2126_s2 + $0x70] sm:$0xff] %v1399_v11   ;;  %v972_v20 = vadd.f32 %v1603_v51, %v971_v12  ;;  %v1104_v23 = vadd.f32 %v1103_v10, %v1041_v13  ;;  %v1053_v12 = vmul.f32 %v1889_v33, %v1889_v33 }
 0x134   :  { %1515 = vst [vmem:[%s2126_s2 + $0xf0] sm:$0xff] %v1479_v17  }
 0x135   :  { %v1105_v28 = vadd.f32 %v1104_v23, %v1042_v19  ;;  %v973_v30 = vadd.f32 %v1604_v2, %v972_v20 }
 0x137   :  { %v974_v34 = vadd.f32 %v973_v30, %v1835_v43  ;;  %v1106_v35 = vadd.f32 %v1105_v28, %v1043_v25  ;;  %v1048_v43 = vmul.f32 %v1859_v0, %v1859_v0  ;;  %v1057_v30 = vmul.f32 %v1913_v61, %v1913_v61 }
 0x139   :  { %v1107_v36 = vadd.f32 %v1106_v35, %v1044_v31  ;;  %v975_v37 = vadd.f32 %v974_v34, %v1841_v50 }
 0x13b   :  { %v976_v40 = vadd.f32 %v1833_v41, %v975_v37  ;;  %v1108_v42 = vadd.f32 %v1107_v36, %v1045_v38  ;;  %v1050_v41 = vmul.f32 %v1857_v62, %v1857_v62 }
 0x13d   :  { %v1109_v48 = vadd.f32 %v1108_v42, %v1046_v39  ;;  %v977_v51 = vadd.f32 %v1837_v45, %v976_v40  ;;  %v1051_v45 = vmul.f32 %v1861_v5, %v1861_v5  ;;  %v1061_v40 = vmul.f32 %v1937_v27, %v1937_v27 }
 0x13f   :  { %v978_v53 = vadd.f32 %v977_v51, %v1859_v0  ;;  %v1110_v56 = vadd.f32 %v1109_v48, %v1047_v46  ;;  %v1052_v0 = vmul.f32 %v1883_v24, %v1883_v24 }
 0x141   :  { %v1111_v59 = vadd.f32 %v1110_v56, %v1048_v43  ;;  %v979_v50 = vadd.f32 %v978_v53, %v1865_v9 }
 0x143   :  { %v980_v1 = vadd.f32 %v1857_v62, %v979_v50  ;;  %v1112_v2 = vadd.f32 %v1111_v59, %v1049_v63  ;;  %v1054_v62 = vmul.f32 %v1881_v22, %v1881_v22  ;;  %v1065_v59 = vmul.f32 %v1961_v60, %v1961_v60 }
 0x145   :  { %v1113_v4 = vadd.f32 %v1112_v2, %v1050_v41  ;;  %v981_v6 = vadd.f32 %v1861_v5, %v980_v1  ;;  %v1055_v5 = vmul.f32 %v1885_v29, %v1885_v29 }
 0x147   :  { %v982_v7 = vadd.f32 %v981_v6, %v1883_v24  ;;  %v1114_v10 = vadd.f32 %v1113_v4, %v1051_v45  ;;  %v1056_v24 = vmul.f32 %v1907_v52, %v1907_v52  ;;  %v1069_v6 = vmul.f32 %v1985_v32, %v1985_v32 }
 0x149   :  { %v1115_v11 = vadd.f32 %v1114_v10, %v1052_v0  ;;  %v983_v9 = vadd.f32 %v982_v7, %v1889_v33 }
 0x14b   :  { %v984_v13 = vadd.f32 %v1881_v22, %v983_v9  ;;  %v1116_v17 = vadd.f32 %v1115_v11, %v1053_v12  ;;  %v1058_v22 = vmul.f32 %v1905_v49, %v1905_v49 }
 0x14d   :  { %v1117_v19 = vadd.f32 %v1116_v17, %v1054_v62  ;;  %v985_v20 = vadd.f32 %v1885_v29, %v984_v13  ;;  %v1059_v29 = vmul.f32 %v1909_v57, %v1909_v57  ;;  %v1073_v13 = vmul.f32 %v2009_v8, %v2009_v8 }
 0x14f   :  { %v986_v23 = vadd.f32 %v985_v20, %v1907_v52  ;;  %v1118_v25 = vadd.f32 %v1117_v19, %v1055_v5  ;;  %v1060_v52 = vmul.f32 %v1931_v16, %v1931_v16 }
 0x151   :  { %v1119_v28 = vadd.f32 %v1118_v25, %v1056_v24  ;;  %v987_v33 = vadd.f32 %v986_v23, %v1913_v61 }
 0x153   :  { %v988_v31 = vadd.f32 %v1905_v49, %v987_v33  ;;  %v1120_v34 = vadd.f32 %v1119_v28, %v1057_v30  ;;  %v1062_v49 = vmul.f32 %v1929_v14, %v1929_v14 }
 0x155   :  { %v1121_v35 = vadd.f32 %v1120_v34, %v1058_v22  ;;  %v989_v36 = vadd.f32 %v1909_v57, %v988_v31  ;;  %v1063_v57 = vmul.f32 %v1933_v21, %v1933_v21 }
 0x157   :  { %v990_v37 = vadd.f32 %v989_v36, %v1931_v16  ;;  %v1122_v38 = vadd.f32 %v1121_v35, %v1059_v29  ;;  %v1064_v16 = vmul.f32 %v1955_v47, %v1955_v47 }
 0x159   :  { %v1123_v39 = vadd.f32 %v1122_v38, %v1060_v52  ;;  %v991_v61 = vadd.f32 %v990_v37, %v1937_v27 }
 0x15b   :  { %v992_v42 = vadd.f32 %v1929_v14, %v991_v61  ;;  %v1124_v46 = vadd.f32 %v1123_v39, %v1061_v40  ;;  %v1066_v14 = vmul.f32 %v1953_v44, %v1953_v44 }
 0x15d   :  { %v1125_v48 = vadd.f32 %v1124_v46, %v1062_v49  ;;  %v993_v51 = vadd.f32 %v1933_v21, %v992_v42  ;;  %v1067_v21 = vmul.f32 %v1957_v55, %v1957_v55 }
 0x15f   :  { %v994_v43 = vadd.f32 %v993_v51, %v1955_v47  ;;  %v1126_v53 = vadd.f32 %v1125_v48, %v1063_v57  ;;  %v1068_v47 = vmul.f32 %v1979_v18, %v1979_v18 }
 0x161   :  { %v1127_v56 = vadd.f32 %v1126_v53, %v1064_v16  ;;  %v995_v27 = vadd.f32 %v994_v43, %v1961_v60 }
 0x163   :  { %v996_v50 = vadd.f32 %v1953_v44, %v995_v27  ;;  %v1128_v63 = vadd.f32 %v1127_v56, %v1065_v59  ;;  %v1070_v44 = vmul.f32 %v1977_v15, %v1977_v15 }
 0x165   :  { %v1129_v41 = vadd.f32 %v1128_v63, %v1066_v14  ;;  %v997_v1 = vadd.f32 %v1957_v55, %v996_v50  ;;  %v1071_v55 = vmul.f32 %v1981_v26, %v1981_v26 }
 0x167   :  { %v998_v2 = vadd.f32 %v997_v1, %v1979_v18  ;;  %v1130_v45 = vadd.f32 %v1129_v41, %v1067_v21  ;;  %v1072_v18 = vmul.f32 %v2003_v58, %v2003_v58 }
 0x169   :  { %v1131_v4 = vadd.f32 %v1130_v45, %v1068_v47  ;;  %v999_v60 = vadd.f32 %v998_v2, %v1985_v32 }
 0x16b   :  { %v1000_v0 = vadd.f32 %v1977_v15, %v999_v60  ;;  %v1132_v7 = vadd.f32 %v1131_v4, %v1069_v6  ;;  %v1074_v15 = vmul.f32 %v2001_v54, %v2001_v54 }
 0x16d   :  { %v1133_v10 = vadd.f32 %v1132_v7, %v1070_v44  ;;  %v1001_v11 = vadd.f32 %v1981_v26, %v1000_v0  ;;  %v1075_v26 = vmul.f32 %v2005_v3, %v2005_v3 }
 0x16f   :  { %v1002_v9 = vadd.f32 %v1001_v11, %v2003_v58  ;;  %v1134_v12 = vadd.f32 %v1133_v10, %v1071_v55 }
 0x171   :  { %v1135_v62 = vadd.f32 %v1134_v12, %v1072_v18  ;;  %v1003_v32 = vadd.f32 %v1002_v9, %v2009_v8 }
 0x173   :  { %v1004_v17 = vadd.f32 %v2001_v54, %v1003_v32  ;;  %v1136_v5 = vadd.f32 %v1135_v62, %v1073_v13 }
 0x175   :  { %v1005_v19 = vadd.f32 %v2005_v3, %v1004_v17  ;;  %v1137_v20 = vadd.f32 %v1136_v5, %v1074_v15 }
 0x177   :  { %v1006_v58 = vrot.slane %v1005_v19, 4  ;;  %v1138_v24 = vadd.f32 %v1137_v20, %v1075_v26 }
 0x179   :  { %v1007_v23 = vadd.f32 %v1006_v58, %v1005_v19  ;;  %v1139_v25 = vrot.slane %v1138_v24, 4 }
 0x17b   :  { %v1008_v28 = vrot.slane %v1007_v23, 2  ;;  %v1140_v33 = vadd.f32 %v1139_v25, %v1138_v24 }
 0x17d   :  { %v1009_v30 = vadd.f32 %v1008_v28, %v1007_v23  ;;  %v1141_v8 = vrot.slane %v1140_v33, 2 }
 0x17f   :  { %v1010_v22 = vrot.slane %v1009_v30, 1  ;;  %v1142_v31 = vadd.f32 %v1141_v8, %v1140_v33 }
 0x181   :  { %v1143_v34 = vrot.slane %v1142_v31, 1  ;;  %v1011_v54 = vadd.f32 %v1010_v22, %v1009_v30 }
 0x183   :  { %v1144_v29 = vadd.f32 %v1143_v34, %v1142_v31 }
 0x185   :  { %v1146_v35 = vsel %vm1145_vm0, %v1011_v54, %v1144_v29 }
 0x186   :  { %v1148_v36 = vsel %vm1147_vm1, %v1146_v35, 0.0 }
 0x187   :  { %1149 = vst [vmem:[%s2127_s3] sm:$0xff] %v1148_v36 }

// kernel: bottleneck_forward.7
= control target key start
LH: loop header
LB: loop body
LE: loop exit
PB: predicated region body
PF: predicated region fallthrough
CT: control target
= control target key end

     0   :  { %vm1329_vm0 = vcmask 1040384   ;;  %vm1331_vm1 = vcmask 1041408   ;;  %s2587_s3 = inlined_call_operand.vmem [shape: bf16[128,128], index: 3, kind: input, shape index: {}]   ;;  %s2588_s0 = inlined_call_operand.vmem [shape: bf16[512,128], index: 0, kind: input, shape index: {}]   ;;  %s2589_s1 = inlined_call_operand.vmem [shape: f32[1,128], index: 1, kind: input, shape index: {}]   ;;  %s2590_s2 = inlined_call_operand.vmem [shape: f32[1,128], index: 2, kind: input, shape index: {}]   ;;  %s2591_s4 = inlined_call_operand.vmem [shape: bf16[512,128], index: 4, kind: output, shape index: {0}]   ;;  %s2592_s5 = inlined_call_operand.vmem [shape: f32[1,8,128], index: 5, kind: output, shape index: {1}]  }
   0x1   :  { %v1966_v0 = vld [vmem:[%s2587_s3] sm:$0xff]   ;;  %v1967_v1 = vld [vmem:[%s2587_s3 + $0x8] sm:$0xff]   ;;  %v1968_v2 = vld [vmem:[%s2587_s3 + $0x10] sm:$0xff]  }
   0x2   :  { %1870 = vmatprep.subr.bf16.mxu0 %v1966_v0  ;;  %1950 = vmatprep.subr.bf16.mxu1 %v1966_v0  ;;  %v1969_v3 = vld [vmem:[%s2587_s3 + $0x18] sm:$0xff]   ;;  %v1481_v4 = vld [vmem:[%s2588_s0] sm:$0xff]   ;;  %v1768_v8 = vld [vmem:[%s2588_s0 + $0x8] sm:$0xff]  }
   0x3   :  { %1871 = vmatpush3.bf16.msra.mxu0 %v1966_v0  ;;  %1958 = vmatpush3.bf16.msra.mxu1 %v1966_v0  ;;  %v2022_v5 = vld [vmem:[%s2589_s1] ss:$0 sm:$0xff]  ;;  %v1482_v6 = vunpack.c.l.bf16 %v1481_v4  ;;  %v1483_v7 = vunpack.c.h.bf16 %v1481_v4  ;;  %v1769_v9 = vld [vmem:[%s2588_s0 + $0x10] sm:$0xff]   ;;  %v1486_v14 = vunpack.c.l.bf16 %v1768_v8  ;;  %v1487_v15 = vunpack.c.h.bf16 %v1768_v8  ;;  %v1971_v22 = vld [vmem:[%s2587_s3 + $0x28] sm:$0xff]  }
   0x4   :  { %1872 = vmatprep.subr.bf16.mxu0 %v1967_v1  ;;  %1951 = vmatprep.subr.bf16.mxu1 %v1967_v1  ;;  %v2033_v10 = vld [vmem:[%s2590_s2] ss:$0 sm:$0xff]  ;;  %v1490_v16 = vunpack.c.l.bf16 %v1769_v9  ;;  %v1491_v19 = vunpack.c.h.bf16 %v1769_v9  ;;  %v1770_v26 = vld [vmem:[%s2588_s0 + $0x18] sm:$0xff]   ;;  %v1972_v31 = vld [vmem:[%s2587_s3 + $0x30] sm:$0xff]  }
   0x5   :  { %v159_v11 = vmul.f32 %v1482_v6, %v2022_v5  ;;  %v160_v12 = vmul.f32 %v1483_v7, %v2022_v5  ;;  %v1970_v13 = vld [vmem:[%s2587_s3 + $0x20] sm:$0xff]   ;;  %v161_v23 = vmul.f32 %v1486_v14, %v2022_v5  ;;  %v162_v24 = vmul.f32 %v1487_v15, %v2022_v5  ;;  %v1772_v38 = vld [vmem:[%s2588_s0 + $0x28] sm:$0xff]   ;;  %v1773_v41 = vld [vmem:[%s2588_s0 + $0x30] sm:$0xff]  }
   0x6   :  { %v163_v25 = vmul.f32 %v1490_v16, %v2022_v5  ;;  %v164_v28 = vmul.f32 %v1491_v19, %v2022_v5  ;;  %v1771_v29 = vld [vmem:[%s2588_s0 + $0x20] sm:$0xff]   ;;  %v1494_v30 = vunpack.c.l.bf16 %v1770_v26  ;;  %v1495_v35 = vunpack.c.h.bf16 %v1770_v26  ;;  %v1774_v42 = vld [vmem:[%s2588_s0 + $0x38] sm:$0xff]   ;;  %v1776_v63 = vld [vmem:[%s2588_s0 + $0x48] sm:$0xff]  }
   0x7   :  { %1873 = vmatpush3.bf16.msra.mxu0 %v1967_v1  ;;  %1959 = vmatpush3.bf16.msra.mxu1 %v1967_v1  ;;  %v230_v17 = vadd.f32 %v2033_v10, %v159_v11  ;;  %v231_v18 = vadd.f32 %v2033_v10, %v160_v12  ;;  %v232_v32 = vadd.f32 %v2033_v10, %v161_v23  ;;  %v1498_v37 = vunpack.c.l.bf16 %v1771_v29  ;;  %v1973_v43 = vld [vmem:[%s2587_s3 + $0x38] sm:$0xff]   ;;  %v1775_v48 = vld [vmem:[%s2588_s0 + $0x40] sm:$0xff]   ;;  %v1777_v4 = vld [vmem:[%s2588_s0 + $0x50] sm:$0xff]  }
   0x8   :  { %1874 = vmatprep.subr.bf16.mxu0 %v1968_v2  ;;  %1952 = vmatprep.subr.bf16.mxu1 %v1968_v2  ;;  %v233_v33 = vadd.f32 %v2033_v10, %v162_v24  ;;  %v234_v34 = vadd.f32 %v2033_v10, %v163_v25  ;;  %v235_v36 = vadd.f32 %v2033_v10, %v164_v28  ;;  %v1499_v40 = vunpack.c.h.bf16 %v1771_v29  ;;  %v1778_v23 = vld [vmem:[%s2588_s0 + $0x58] sm:$0xff]  }
   0x9   :  { %v294_v20 = vmax.f32 %v230_v17, 0.0  ;;  %v295_v21 = vmax.f32 %v231_v18, 0.0  ;;  %v165_v39 = vmul.f32 %v1494_v30, %v2022_v5  ;;  %v296_v44 = vmax.f32 %v232_v32, 0.0 }
   0xa   :  { %v297_v45 = vmax.f32 %v233_v33, 0.0  ;;  %v298_v46 = vmax.f32 %v234_v34, 0.0  ;;  %v166_v47 = vmul.f32 %v1495_v35, %v2022_v5  ;;  %v299_v49 = vmax.f32 %v235_v36, 0.0 }
   0xb   :  { %1875 = vmatpush3.bf16.msra.mxu0 %v1968_v2  ;;  %1960 = vmatpush3.bf16.msra.mxu1 %v1968_v2  ;;  %v358_v27 = vpack.c.bf16 %v295_v21, %v294_v20  ;;  %v167_v50 = vmul.f32 %v1498_v37, %v2022_v5  ;;  %v1502_v51 = vunpack.c.l.bf16 %v1772_v38  ;;  %v1503_v52 = vunpack.c.h.bf16 %v1772_v38 }
   0xc   :  { %1876 = vmatprep.subr.bf16.mxu0 %v1969_v3  ;;  %1953 = vmatprep.subr.bf16.mxu1 %v1969_v3  ;;  %v1506_v53 = vunpack.c.l.bf16 %v1773_v41  ;;  %v1507_v54 = vunpack.c.h.bf16 %v1773_v41  ;;  %v1510_v55 = vunpack.c.l.bf16 %v1774_v42  ;;  %v1511_v56 = vunpack.c.h.bf16 %v1774_v42 }
   0xd   :  { %1886 = vmatprep.mubr.bf16.mxu0 %v358_v27  ;;  %v168_v57 = vmul.f32 %v1499_v40, %v2022_v5  ;;  %v1514_v58 = vunpack.c.l.bf16 %v1775_v48  ;;  %v1515_v59 = vunpack.c.h.bf16 %v1775_v48  ;;  %v359_v60 = vpack.c.bf16 %v297_v45, %v296_v44  ;;  %v1783_v44 = vld [vmem:[%s2588_s0 + $0x80] sm:$0xff]  }
   0xe   :  { %v236_v61 = vadd.f32 %v2033_v10, %v165_v39  ;;  %v237_v62 = vadd.f32 %v2033_v10, %v166_v47  ;;  %v360_v0 = vpack.c.bf16 %v299_v49, %v298_v46  ;;  %v238_v1 = vadd.f32 %v2033_v10, %v167_v50 }
   0xf   :  { %1877 = vmatpush3.bf16.msra.mxu0 %v1969_v3  ;;  %1961 = vmatpush3.bf16.msra.mxu1 %v1969_v3  ;;  %v169_v2 = vmul.f32 %v1502_v51, %v2022_v5  ;;  %v170_v3 = vmul.f32 %v1503_v52, %v2022_v5  ;;  %v171_v6 = vmul.f32 %v1506_v53, %v2022_v5  ;;  %v1518_v14 = vunpack.c.l.bf16 %v1776_v63  ;;  %v2126_v52 = vld [vmem:[%s2588_s0 + $0x60] sm:$0xff]  }
  0x10   :  { %1878 = vmatprep.subr.bf16.mxu0 %v1970_v13  ;;  %1954 = vmatprep.subr.bf16.mxu1 %v1970_v13  ;;  %v172_v7 = vmul.f32 %v1507_v54, %v2022_v5  ;;  %v173_v8 = vmul.f32 %v1510_v55, %v2022_v5  ;;  %v174_v9 = vmul.f32 %v1511_v56, %v2022_v5  ;;  %v300_v15 = vmax.f32 %v236_v61, 0.0 }
  0x11   :  { %v239_v11 = vadd.f32 %v2033_v10, %v168_v57  ;;  %v175_v12 = vmul.f32 %v1514_v58, %v2022_v5  ;;  %v301_v16 = vmax.f32 %v237_v62, 0.0  ;;  %v1519_v17 = vunpack.c.h.bf16 %v1776_v63 }
  0x12   :  { %v1522_v18 = vunpack.c.l.bf16 %v1777_v4  ;;  %v302_v19 = vmax.f32 %v238_v1, 0.0  ;;  %v240_v20 = vadd.f32 %v2033_v10, %v169_v2  ;;  %v241_v21 = vadd.f32 %v2033_v10, %v170_v3 }
  0x13   :  { %1879 = vmatpush3.bf16.msra.mxu0 %v1970_v13  ;;  %1962 = vmatpush3.bf16.msra.mxu1 %v1970_v13  ;;  %v176_v13 = vmul.f32 %v1515_v59, %v2022_v5  ;;  %v242_v24 = vadd.f32 %v2033_v10, %v171_v6  ;;  %v243_v25 = vadd.f32 %v2033_v10, %v172_v7  ;;  %v303_v28 = vmax.f32 %v239_v11, 0.0  ;;  %v1784_v59 = vld [vmem:[%s2588_s0 + $0x88] sm:$0xff]   ;;  %v1786_v11 = vld [vmem:[%s2588_s0 + $0x98] sm:$0xff]  }
  0x14   :  { %1880 = vmatprep.subr.bf16.mxu0 %v1971_v22  ;;  %1955 = vmatprep.subr.bf16.mxu1 %v1971_v22  ;;  %v244_v26 = vadd.f32 %v2033_v10, %v173_v8  ;;  %v245_v27 = vadd.f32 %v2033_v10, %v174_v9  ;;  %v246_v29 = vadd.f32 %v2033_v10, %v175_v12  ;;  %v1526_v35 = vunpack.c.l.bf16 %v1778_v23 }
  0x15   :  { %v247_v30 = vadd.f32 %v2033_v10, %v176_v13  ;;  %v361_v32 = vpack.c.bf16 %v301_v16, %v300_v15  ;;  %v178_v33 = vmul.f32 %v1519_v17, %v2022_v5  ;;  %v179_v34 = vmul.f32 %v1522_v18, %v2022_v5 }
  0x16   :  { %v304_v36 = vmax.f32 %v240_v20, 0.0  ;;  %v305_v37 = vmax.f32 %v241_v21, 0.0  ;;  %v1527_v39 = vunpack.c.h.bf16 %v1778_v23  ;;  %v306_v40 = vmax.f32 %v242_v24, 0.0  ;;  %v1787_v24 = vld [vmem:[%s2588_s0 + $0xa0] sm:$0xff]  }
  0x17   :  { %1881 = vmatpush3.bf16.msra.mxu0 %v1971_v22  ;;  %1963 = vmatpush3.bf16.msra.mxu1 %v1971_v22  ;;  %v1523_v22 = vunpack.c.h.bf16 %v1777_v4  ;;  %v307_v41 = vmax.f32 %v243_v25, 0.0  ;;  %v308_v42 = vmax.f32 %v244_v26, 0.0  ;;  %v362_v45 = vpack.c.bf16 %v303_v28, %v302_v19 }
  0x18   :  { %1882 = vmatprep.subr.bf16.mxu0 %v1972_v31  ;;  %1956 = vmatprep.subr.bf16.mxu1 %v1972_v31  ;;  %v310_v46 = vmax.f32 %v246_v29, 0.0  ;;  %v311_v47 = vmax.f32 %v247_v30, 0.0  ;;  %v249_v49 = vadd.f32 %v2033_v10, %v178_v33  ;;  %v2120_v50 = vadd.f32 %v2033_v10, %v179_v34  ;;  %v1788_v33 = vld [vmem:[%s2588_s0 + $0xa8] sm:$0xff]  }
  0x19   :  { %v180_v38 = vmul.f32 %v1523_v22, %v2022_v5  ;;  %v181_v51 = vmul.f32 %v1526_v35, %v2022_v5  ;;  %v182_v54 = vmul.f32 %v1527_v39, %v2022_v5  ;;  %v1546_v55 = vunpack.c.l.bf16 %v1783_v44 }
  0x1a   :  { %v363_v56 = vpack.c.bf16 %v305_v37, %v304_v36  ;;  %v364_v57 = vpack.c.bf16 %v307_v41, %v306_v40  ;;  %v1530_v62 = vunpack.c.l.bf16 %v2126_v52  ;;  %v1547_v63 = vunpack.c.h.bf16 %v1783_v44 }
  0x1b   :  { %1883 = vmatpush3.bf16.msra.mxu0 %v1972_v31  ;;  %1964 = vmatpush3.bf16.msra.mxu1 %v1972_v31  ;;  %v177_v31 = vmul.f32 %v1518_v14, %v2022_v5  ;;  %v2129_v53 = vadd.f32 %v2033_v10, %v180_v38  ;;  %v313_v1 = vmax.f32 %v249_v49, 0.0  ;;  %v314_v2 = vmax.f32 %v2120_v50, 0.0 }
  0x1c   :  { %1884 = vmatprep.subr.bf16.mxu0 %v1973_v43  ;;  %1957 = vmatprep.subr.bf16.mxu1 %v1973_v43  ;;  %v2145_v3 = vadd.f32 %v2033_v10, %v181_v51  ;;  %v191_v4 = vmul.f32 %v1546_v55, %v2022_v5  ;;  %v2150_v7 = vadd.f32 %v2033_v10, %v182_v54  ;;  %v1550_v9 = vunpack.c.l.bf16 %v1784_v59 }
  0x1d   :  { %v248_v48 = vadd.f32 %v2033_v10, %v177_v31  ;;  %v315_v6 = vmax.f32 %v2129_v53, 0.0  ;;  %v192_v8 = vmul.f32 %v1547_v63, %v2022_v5  ;;  %v1531_v12 = vunpack.c.h.bf16 %v2126_v52 }
  0x1e   :  { %v262_v13 = vadd.f32 %v2033_v10, %v191_v4  ;;  %v1551_v14 = vunpack.c.h.bf16 %v1784_v59  ;;  %v2159_v16 = vmul.f32 %v1530_v62, %v2022_v5  ;;  %v193_v18 = vmul.f32 %v1550_v9, %v2022_v5 }
  0x1f   :  { %1885 = vmatpush3.bf16.msra.mxu0 %v1973_v43  ;;  %1965 = vmatpush3.bf16.msra.mxu1 %v1973_v43  ;;  %v309_v43 = vmax.f32 %v245_v27, 0.0  ;;  %v312_v61 = vmax.f32 %v248_v48, 0.0  ;;  %v263_v17 = vadd.f32 %v2033_v10, %v192_v8  ;;  %v1558_v23 = vunpack.c.l.bf16 %v1786_v11 }
  0x20   :  { %v326_v20 = vmax.f32 %v262_v13, 0.0  ;;  %v194_v21 = vmul.f32 %v1551_v14, %v2022_v5  ;;  %v264_v27 = vadd.f32 %v2033_v10, %v193_v18  ;;  %v1559_v31 = vunpack.c.h.bf16 %v1786_v11  ;;  %v1791_v18 = vld [vmem:[%s2588_s0 + $0xc0] sm:$0xff]  }
  0x21   :  { %v2132_v58 = vpack.c.bf16 %v309_v43, %v308_v42  ;;  %v2168_v25 = vpack.c.bf16 %v313_v1, %v312_v61  ;;  %v327_v26 = vmax.f32 %v263_v17, 0.0  ;;  %v1562_v37 = vunpack.c.l.bf16 %v1787_v24  ;;  %v1790_v1 = vld [vmem:[%s2588_s0 + $0xb8] sm:$0xff]  }
  0x22   :  { %1887 = vmatmul.mubr.bf16.vlgmr.msra.gmra.mrb[0].mxu0 %v359_v60  ;;  %v2137_v60 = vpack.c.bf16 %v311_v47, %v310_v46  ;;  %v265_v29 = vadd.f32 %v2033_v10, %v194_v21  ;;  %v328_v35 = vmax.f32 %v264_v27, 0.0  ;;  %v198_v40 = vmul.f32 %v1559_v31, %v2022_v5  ;;  %v1789_v46 = vld [vmem:[%s2588_s0 + $0xb0] sm:$0xff]   ;;  %v1780_v47 = vld [vmem:[%s2588_s0 + $0x68] sm:$0xff]  }
  0x23   :  { %1890 = vmatprep.mubr.bf16.mxu0 %v360_v0  ;;  %v1785_v0 = vld [vmem:[%s2588_s0 + $0x90] sm:$0xff]   ;;  %v374_v34 = vpack.c.bf16 %v327_v26, %v326_v20  ;;  %v1563_v43 = vunpack.c.h.bf16 %v1787_v24  ;;  %v199_v44 = vmul.f32 %v1562_v37, %v2022_v5  ;;  %v1567_v54 = vunpack.c.h.bf16 %v1788_v33 }
  0x24   :  { %v1554_v15 = vunpack.c.l.bf16 %v1785_v0  ;;  %v1555_v19 = vunpack.c.h.bf16 %v1785_v0  ;;  %v329_v38 = vmax.f32 %v265_v29, 0.0  ;;  %v269_v49 = vadd.f32 %v2033_v10, %v198_v40  ;;  %v1793_v40 = vld [vmem:[%s2588_s0 + $0xd0] sm:$0xff]  }
  0x25   :  { %1918 = vmatprep.mubr.bf16.mxu1 %v374_v34  ;;  %v202_v62 = vmul.f32 %v1567_v54, %v2022_v5  ;;  %v1570_v63 = vunpack.c.l.bf16 %v1789_v46  ;;  %v1571_v0 = vunpack.c.h.bf16 %v1789_v46  ;;  %v316_v4 = vmax.f32 %v2145_v3, 0.0 }
  0x26   :  { %v195_v22 = vmul.f32 %v1554_v15, %v2022_v5  ;;  %v196_v28 = vmul.f32 %v1555_v19, %v2022_v5  ;;  %v375_v48 = vpack.c.bf16 %v329_v38, %v328_v35  ;;  %v333_v61 = vmax.f32 %v269_v49, 0.0 }
  0x27   :  { %v1534_v8 = vunpack.c.l.bf16 %v1780_v47  ;;  %v317_v13 = vmax.f32 %v2150_v7, 0.0  ;;  %v1535_v14 = vunpack.c.h.bf16 %v1780_v47  ;;  %v203_v15 = vmul.f32 %v1570_v63, %v2022_v5 }
  0x28   :  { %v266_v30 = vadd.f32 %v2033_v10, %v195_v22  ;;  %v267_v36 = vadd.f32 %v2033_v10, %v196_v28  ;;  %1919 = vmatmul.mubr.bf16.vlgmr.msra.gmra.mrb[0].mxu1 %v375_v48  ;;  %v204_v17 = vmul.f32 %v1571_v0, %v2022_v5  ;;  %v184_v3 = vmul.f32 %v1531_v12, %v2022_v5 }
  0x29   :  { %v1574_v19 = vunpack.c.l.bf16 %v1790_v1  ;;  %v1575_v20 = vunpack.c.h.bf16 %v1790_v1  ;;  %v274_v24 = vadd.f32 %v2033_v10, %v203_v15  ;;  %v1578_v27 = vunpack.c.l.bf16 %v1791_v18  ;;  %v1794_v15 = vld [vmem:[%s2588_s0 + $0xd8] sm:$0xff]  }
  0x2a   :  { %1891 = vmatmul.mubr.bf16.gmra.mrb[4].mxu0 %v361_v32  ;;  %v197_v32 = vmul.f32 %v1558_v23, %v2022_v5  ;;  %v330_v39 = vmax.f32 %v266_v30, 0.0  ;;  %v331_v42 = vmax.f32 %v267_v36, 0.0  ;;  %v273_v23 = vadd.f32 %v2033_v10, %v202_v62 }
  0x2b   :  { %1894 = vmatprep.mubr.bf16.mxu0 %v362_v45  ;;  %v1566_v45 = vunpack.c.l.bf16 %v1788_v33  ;;  %v1579_v52 = vunpack.c.h.bf16 %v1791_v18  ;;  %v368_v12 = vpack.c.bf16 %v315_v6, %v314_v2  ;;  %v254_v28 = vadd.f32 %v2033_v10, %v2159_v16  ;;  %v1782_v33 = vld [vmem:[%s2588_s0 + $0x78] sm:$0xff]   ;;  %v1792_v16 = vld [vmem:[%s2588_s0 + $0xc8] sm:$0xff]  }
  0x2c   :  { %v268_v41 = vadd.f32 %v2033_v10, %v197_v32  ;;  %v376_v55 = vpack.c.bf16 %v331_v42, %v330_v39  ;;  %v255_v31 = vadd.f32 %v2033_v10, %v184_v3  ;;  %v185_v32 = vmul.f32 %v1534_v8, %v2022_v5 }
  0x2d   :  { %v201_v59 = vmul.f32 %v1566_v45, %v2022_v5  ;;  %v205_v34 = vmul.f32 %v1574_v19, %v2022_v5  ;;  %v206_v50 = vmul.f32 %v1575_v20, %v2022_v5  ;;  %v369_v35 = vpack.c.bf16 %v317_v13, %v316_v4 }
  0x2e   :  { %v332_v51 = vmax.f32 %v268_v41, 0.0  ;;  %1922 = vmatprep.mubr.bf16.mxu1 %v376_v55  ;;  %v186_v53 = vmul.f32 %v1535_v14, %v2022_v5  ;;  %v337_v6 = vmax.f32 %v273_v23, 0.0  ;;  %v338_v36 = vmax.f32 %v274_v24, 0.0 }
  0x2f   :  { %v272_v22 = vadd.f32 %v2033_v10, %v201_v59  ;;  %v207_v38 = vmul.f32 %v1578_v27, %v2022_v5  ;;  %v208_v39 = vmul.f32 %v1579_v52, %v2022_v5  ;;  %v318_v41 = vmax.f32 %v254_v28, 0.0 }
  0x30   :  { %v377_v21 = vpack.c.bf16 %v333_v61, %v332_v51  ;;  %v319_v45 = vmax.f32 %v255_v31, 0.0  ;;  %v276_v46 = vadd.f32 %v2033_v10, %v205_v34  ;;  %v277_v47 = vadd.f32 %v2033_v10, %v206_v50 }
  0x31   :  { %v336_v2 = vmax.f32 %v272_v22, 0.0  ;;  %v1582_v48 = vunpack.c.l.bf16 %v1792_v16  ;;  %v1583_v51 = vunpack.c.h.bf16 %v1792_v16  ;;  %v1586_v54 = vunpack.c.l.bf16 %v1793_v40 }
  0x32   :  { %1895 = vmatmul.mubr.bf16.gmra.mrb[8].mxu0 %v363_v56  ;;  %v200_v56 = vmul.f32 %v1563_v43, %v2022_v5  ;;  %1923 = vmatmul.mubr.bf16.gmra.mrb[4].mxu1 %v377_v21  ;;  %v1587_v55 = vunpack.c.h.bf16 %v1793_v40  ;;  %v279_v59 = vadd.f32 %v2033_v10, %v208_v39  ;;  %v257_v61 = vadd.f32 %v2033_v10, %v186_v53  ;;  %v1795_v21 = vld [vmem:[%s2588_s0 + $0xe0] sm:$0xff]  }
  0x33   :  { %1898 = vmatprep.mubr.bf16.mxu0 %v364_v57  ;;  %v270_v57 = vadd.f32 %v2033_v10, %v199_v44  ;;  %v1542_v44 = vunpack.c.l.bf16 %v1782_v33  ;;  %v379_v49 = vpack.c.bf16 %v337_v6, %v336_v2  ;;  %v1543_v0 = vunpack.c.h.bf16 %v1782_v33 }
  0x34   :  { %v271_v9 = vadd.f32 %v2033_v10, %v200_v56  ;;  %v256_v56 = vadd.f32 %v2033_v10, %v185_v32  ;;  %v370_v1 = vpack.c.bf16 %v319_v45, %v318_v41  ;;  %v340_v4 = vmax.f32 %v276_v46, 0.0  ;;  %v1797_v41 = vld [vmem:[%s2588_s0 + $0xf0] sm:$0xff]  }
  0x35   :  { %v334_v11 = vmax.f32 %v270_v57, 0.0  ;;  %v278_v57 = vadd.f32 %v2033_v10, %v207_v38  ;;  %v341_v8 = vmax.f32 %v277_v47, 0.0  ;;  %v211_v13 = vmul.f32 %v1586_v54, %v2022_v5 }
  0x36   :  { %v335_v7 = vmax.f32 %v271_v9, 0.0  ;;  %v209_v9 = vmul.f32 %v1582_v48, %v2022_v5  ;;  %v212_v14 = vmul.f32 %v1587_v55, %v2022_v5  ;;  %v343_v3 = vmax.f32 %v279_v59, 0.0 }
  0x37   :  { %v342_v18 = vmax.f32 %v278_v57, 0.0  ;;  %v190_v20 = vmul.f32 %v1543_v0, %v2022_v5  ;;  %v381_v23 = vpack.c.bf16 %v341_v8, %v340_v4  ;;  %v282_v27 = vadd.f32 %v2033_v10, %v211_v13 }
  0x38   :  { %v378_v26 = vpack.c.bf16 %v335_v7, %v334_v11  ;;  %v210_v11 = vmul.f32 %v1583_v51, %v2022_v5  ;;  %v321_v7 = vmax.f32 %v257_v61, 0.0  ;;  %v280_v24 = vadd.f32 %v2033_v10, %v209_v9 }
  0x39   :  { %v283_v52 = vadd.f32 %v2033_v10, %v212_v14  ;;  %v382_v28 = vpack.c.bf16 %v343_v3, %v342_v18  ;;  %v261_v33 = vadd.f32 %v2033_v10, %v190_v20  ;;  %v346_v2 = vmax.f32 %v282_v27, 0.0 }
  0x3a   :  { %1899 = vmatmul.mubr.bf16.gmra.mrb[12].mxu0 %v2132_v58  ;;  %v1781_v58 = vld [vmem:[%s2588_s0 + $0x70] sm:$0xff]   ;;  %1926 = vmatprep.mubr.bf16.mxu1 %v378_v26  ;;  %v1590_v26 = vunpack.c.l.bf16 %v1794_v15  ;;  %v344_v50 = vmax.f32 %v280_v24, 0.0  ;;  %v1602_v51 = vunpack.c.l.bf16 %v1797_v41  ;;  %v1603_v54 = vunpack.c.h.bf16 %v1797_v41 }
  0x3b   :  { %1902 = vmatprep.mubr.bf16.mxu0 %v2137_v60  ;;  %v275_v60 = vadd.f32 %v2033_v10, %v204_v17  ;;  %v1538_v29 = vunpack.c.l.bf16 %v1781_v58  ;;  %v1539_v30 = vunpack.c.h.bf16 %v1781_v58  ;;  %1927 = vmatmul.mubr.bf16.gmra.mrb[8].mxu1 %v379_v49  ;;  %v189_v17 = vmul.f32 %v1542_v44, %v2022_v5 }
  0x3c   :  { %v320_v58 = vmax.f32 %v256_v56, 0.0  ;;  %v347_v6 = vmax.f32 %v283_v52, 0.0  ;;  %v325_v40 = vmax.f32 %v261_v33, 0.0  ;;  %v220_v0 = vmul.f32 %v1603_v54, %v2022_v5 }
  0x3d   :  { %v339_v37 = vmax.f32 %v275_v60, 0.0  ;;  %v187_v42 = vmul.f32 %v1538_v29, %v2022_v5  ;;  %v188_v43 = vmul.f32 %v1539_v30, %v2022_v5  ;;  %v281_v60 = vadd.f32 %v2033_v10, %v210_v11 }
  0x3e   :  { %v1594_v29 = vunpack.c.l.bf16 %v1795_v21  ;;  %v1595_v30 = vunpack.c.h.bf16 %v1795_v21  ;;  %v371_v31 = vpack.c.bf16 %v321_v7, %v320_v58  ;;  %v260_v32 = vadd.f32 %v2033_v10, %v189_v17 }
  0x3f   :  { %v258_v62 = vadd.f32 %v2033_v10, %v187_v42  ;;  %v259_v63 = vadd.f32 %v2033_v10, %v188_v43  ;;  %v345_v53 = vmax.f32 %v281_v60, 0.0  ;;  %v384_v45 = vpack.c.bf16 %v347_v6, %v346_v2 }
  0x40   :  { %v216_v38 = vmul.f32 %v1595_v30, %v2022_v5  ;;  %v324_v39 = vmax.f32 %v260_v32, 0.0  ;;  %v291_v17 = vadd.f32 %v2033_v10, %v220_v0 }
  0x41   :  { %v322_v19 = vmax.f32 %v258_v62, 0.0  ;;  %v323_v22 = vmax.f32 %v259_v63, 0.0  ;;  %v383_v44 = vpack.c.bf16 %v345_v53, %v344_v50  ;;  %v219_v63 = vmul.f32 %v1602_v51, %v2022_v5 }
  0x42   :  { %1903 = vmatmul.mubr.bf16.gmra.mrb[16].mxu0 %v2168_v25  ;;  %v380_v25 = vpack.c.bf16 %v339_v37, %v338_v36  ;;  %v1796_v36 = vld [vmem:[%s2588_s0 + $0xe8] sm:$0xff]   ;;  %v215_v37 = vmul.f32 %v1594_v29, %v2022_v5  ;;  %v287_v49 = vadd.f32 %v2033_v10, %v216_v38  ;;  %v373_v55 = vpack.c.bf16 %v325_v40, %v324_v39 }
  0x43   :  { %1906 = vmatprep.mubr.bf16.mxu0 %v368_v12  ;;  %v1591_v12 = vunpack.c.h.bf16 %v1794_v15  ;;  %v372_v34 = vpack.c.bf16 %v323_v22, %v322_v19  ;;  %v1598_v43 = vunpack.c.l.bf16 %v1796_v36  ;;  %v1599_v47 = vunpack.c.h.bf16 %v1796_v36 }
  0x44   :  { %1930 = vmatprep.mubr.bf16.mxu1 %v380_v25  ;;  %v286_v48 = vadd.f32 %v2033_v10, %v215_v37  ;;  %v351_v62 = vmax.f32 %v287_v49, 0.0  ;;  %v290_v15 = vadd.f32 %v2033_v10, %v219_v63  ;;  %v355_v20 = vmax.f32 %v291_v17, 0.0 }
  0x45   :  { %1931 = vmatmul.mubr.bf16.gmra.mrb[12].mxu1 %v381_v23  ;;  %v214_v16 = vmul.f32 %v1591_v12, %v2022_v5  ;;  %v217_v56 = vmul.f32 %v1598_v43, %v2022_v5  ;;  %v218_v59 = vmul.f32 %v1599_v47, %v2022_v5 }
  0x46   :  { %1934 = vmatprep.mubr.bf16.mxu1 %v382_v28  ;;  %v350_v61 = vmax.f32 %v286_v48, 0.0  ;;  %v354_v19 = vmax.f32 %v290_v15, 0.0 }
  0x47   :  { %v285_v46 = vadd.f32 %v2033_v10, %v214_v16  ;;  %v288_v4 = vadd.f32 %v2033_v10, %v217_v56  ;;  %v289_v9 = vadd.f32 %v2033_v10, %v218_v59 }
  0x48   :  { %v386_v14 = vpack.c.bf16 %v351_v62, %v350_v61  ;;  %v388_v24 = vpack.c.bf16 %v355_v20, %v354_v19 }
  0x49   :  { %v349_v57 = vmax.f32 %v285_v46, 0.0  ;;  %v352_v18 = vmax.f32 %v288_v4, 0.0  ;;  %v353_v3 = vmax.f32 %v289_v9, 0.0 }
  0x4a   :  { %1907 = vmatmul.mubr.bf16.gmra.mrb[20].mxu0 %v369_v35  ;;  %v213_v35 = vmul.f32 %v1590_v26, %v2022_v5 }
  0x4b   :  { %1910 = vmatprep.mubr.bf16.mxu0 %v370_v1  ;;  %v1798_v1 = vld [vmem:[%s2588_s0 + $0xf8] sm:$0xff]   ;;  %v387_v21 = vpack.c.bf16 %v353_v3, %v352_v18 }
  0x4c   :  { %v284_v42 = vadd.f32 %v2033_v10, %v213_v35  ;;  %v1606_v11 = vunpack.c.l.bf16 %v1798_v1  ;;  %v1607_v13 = vunpack.c.h.bf16 %v1798_v1 }
  0x4d   :  { %1935 = vmatmul.mubr.bf16.gmra.mrb[16].mxu1 %v383_v44 }
  0x4e   :  { %v348_v25 = vmax.f32 %v284_v42, 0.0  ;;  %1938 = vmatprep.mubr.bf16.mxu1 %v384_v45  ;;  %v221_v58 = vmul.f32 %v1606_v11, %v2022_v5  ;;  %v222_v7 = vmul.f32 %v1607_v13, %v2022_v5 }
  0x50   :  { %v385_v8 = vpack.c.bf16 %v349_v57, %v348_v25  ;;  %v292_v22 = vadd.f32 %v2033_v10, %v221_v58  ;;  %v293_v23 = vadd.f32 %v2033_v10, %v222_v7 }
  0x52   :  { %1911 = vmatmul.mubr.bf16.gmra.mrb[24].mxu0 %v371_v31  ;;  %v356_v26 = vmax.f32 %v292_v22, 0.0  ;;  %v357_v60 = vmax.f32 %v293_v23, 0.0 }
  0x53   :  { %1914 = vmatprep.mubr.bf16.mxu0 %v372_v34 }
  0x54   :  { %v389_v27 = vpack.c.bf16 %v357_v60, %v356_v26 }
  0x55   :  { %1939 = vmatmul.mubr.bf16.gmra.mrb[20].mxu1 %v385_v8 }
  0x56   :  { %1942 = vmatprep.mubr.bf16.mxu1 %v386_v14 }
  0x5a   :  { %1915 = vmatmul.mubr.bf16.gmra.mrb[28].mxu0 %v373_v55 }
  0x5d   :  { %1943 = vmatmul.mubr.bf16.gmra.mrb[24].mxu1 %v387_v21 }
  0x5e   :  { %1946 = vmatprep.mubr.bf16.mxu1 %v388_v24 }
  0x65   :  { %1947 = vmatmul.mubr.bf16.gmra.mrb[28].mxu1 %v389_v27 }
  0xf5   :  { %v1888_v52 = vpop.f32.mrb[0].mxu0 }
  0xf6   :  { %v552_v12 = vpop.f32.mrb[1].mxu0  ;;  %v1198_v10 = vmul.f32 %v1888_v52, %v1888_v52 }
  0xf7   :  { %v1889_v28 = vpop.f32.mrb[2].mxu0  ;;  %v1196_v30 = vmul.f32 %v552_v12, %v552_v12 }
  0xf8   :  { %v1616_v29 = vpack.c.bf16 %v1889_v28, %v1888_v52  ;;  %v555_v5 = vpop.f32.mrb[3].mxu0  ;;  %v1199_v35 = vmul.f32 %v1889_v28, %v1889_v28 }
  0xf9   :  { %v1611_v31 = vpack.c.bf16 %v555_v5, %v552_v12  ;;  %v1127_v32 = vadd.f32 %v555_v5, %v552_v12  ;;  %v1197_v33 = vmul.f32 %v555_v5, %v555_v5 }
  0xfa   :  { %1799 = vst [vmem:[%s2591_s4 + $0x8] sm:$0xff] %v1616_v29  }
  0xfb   :  { %1612 = vst [vmem:[%s2591_s4] sm:$0xff] %v1611_v31   ;;  %v1128_v34 = vadd.f32 %v1888_v52, %v1127_v32  ;;  %v1260_v50 = vadd.f32 %v1197_v33, %v1196_v30  ;;  %v2314_v14 = vpop.f32.mrb[0].mxu1 }
  0xfc   :  { %v2316_v15 = vpop.f32.mrb[1].mxu1 }
  0xfd   :  { %v1261_v53 = vadd.f32 %v1260_v50, %v1198_v10  ;;  %v1892_v2 = vpop.f32.mrb[4].mxu0  ;;  %v1129_v6 = vadd.f32 %v1889_v28, %v1128_v34  ;;  %v2318_v7 = vpop.f32.mrb[2].mxu1 }
  0xfe   :  { %v568_v16 = vpop.f32.mrb[5].mxu0  ;;  %v1202_v46 = vmul.f32 %v1892_v2, %v1892_v2  ;;  %v1696_v20 = vpack.c.bf16 %v2318_v7, %v2314_v14  ;;  %v2322_v21 = vpop.f32.mrb[3].mxu1 }
  0xff   :  { %v1130_v36 = vadd.f32 %v1129_v6, %v568_v16  ;;  %v1200_v37 = vmul.f32 %v568_v16, %v568_v16  ;;  %v1262_v38 = vadd.f32 %v1261_v53, %v1199_v35  ;;  %v1893_v39 = vpop.f32.mrb[6].mxu0  ;;  %v1691_v60 = vpack.c.bf16 %v2322_v21, %v2316_v15 }
 0x100   :  { %v1626_v40 = vpack.c.bf16 %v1893_v39, %v1892_v2  ;;  %v571_v41 = vpop.f32.mrb[7].mxu0  ;;  %v1203_v49 = vmul.f32 %v1893_v39, %v1893_v39  ;;  %1815 = vst [vmem:[%s2591_s4 + $0x88] sm:$0xff] %v1696_v20  }
 0x101   :  { %v1263_v42 = vadd.f32 %v1262_v38, %v1200_v37  ;;  %v1621_v43 = vpack.c.bf16 %v571_v41, %v568_v16  ;;  %v1131_v44 = vadd.f32 %v1130_v36, %v571_v41  ;;  %v1201_v45 = vmul.f32 %v571_v41, %v571_v41  ;;  %1814 = vst [vmem:[%s2591_s4 + $0x80] sm:$0xff] %v1691_v60  }
 0x102   :  { %1801 = vst [vmem:[%s2591_s4 + $0x18] sm:$0xff] %v1626_v40  }
 0x103   :  { %1800 = vst [vmem:[%s2591_s4 + $0x10] sm:$0xff] %v1621_v43   ;;  %v1132_v47 = vadd.f32 %v1892_v2, %v1131_v44  ;;  %v1264_v48 = vadd.f32 %v1263_v42, %v1201_v45 }
 0x105   :  { %v1265_v51 = vadd.f32 %v1264_v48, %v1202_v46  ;;  %v1896_v54 = vpop.f32.mrb[8].mxu0  ;;  %v1133_v55 = vadd.f32 %v1893_v39, %v1132_v47  ;;  %v2338_v33 = vpop.f32.mrb[4].mxu1 }
 0x106   :  { %v584_v56 = vpop.f32.mrb[9].mxu0  ;;  %v1206_v9 = vmul.f32 %v1896_v54, %v1896_v54  ;;  %v2340_v10 = vpop.f32.mrb[5].mxu1 }
 0x107   :  { %v1134_v25 = vadd.f32 %v1133_v55, %v584_v56  ;;  %v1204_v57 = vmul.f32 %v584_v56, %v584_v56  ;;  %v1266_v59 = vadd.f32 %v1265_v51, %v1203_v49  ;;  %v1897_v61 = vpop.f32.mrb[10].mxu0  ;;  %v2342_v2 = vpop.f32.mrb[6].mxu1 }
 0x108   :  { %v1636_v62 = vpack.c.bf16 %v1897_v61, %v1896_v54  ;;  %v587_v63 = vpop.f32.mrb[11].mxu0  ;;  %v1207_v17 = vmul.f32 %v1897_v61, %v1897_v61  ;;  %v1706_v16 = vpack.c.bf16 %v2342_v2, %v2338_v33  ;;  %v2346_v36 = vpop.f32.mrb[7].mxu1 }
 0x109   :  { %v1267_v0 = vadd.f32 %v1266_v59, %v1204_v57  ;;  %v1631_v1 = vpack.c.bf16 %v587_v63, %v584_v56  ;;  %v1135_v4 = vadd.f32 %v1134_v25, %v587_v63  ;;  %v1205_v8 = vmul.f32 %v587_v63, %v587_v63 }
 0x10a   :  { %1803 = vst [vmem:[%s2591_s4 + $0x28] sm:$0xff] %v1636_v62   ;;  %v1701_v41 = vpack.c.bf16 %v2346_v36, %v2340_v10  ;;  %1817 = vst [vmem:[%s2591_s4 + $0x98] sm:$0xff] %v1706_v16  }
 0x10b   :  { %1802 = vst [vmem:[%s2591_s4 + $0x20] sm:$0xff] %v1631_v1   ;;  %v1136_v11 = vadd.f32 %v1896_v54, %v1135_v4  ;;  %v1268_v13 = vadd.f32 %v1267_v0, %v1205_v8 }
 0x10c   :  { %1816 = vst [vmem:[%s2591_s4 + $0x90] sm:$0xff] %v1701_v41  }
 0x10d   :  { %v1269_v18 = vadd.f32 %v1268_v13, %v1206_v9  ;;  %v1900_v3 = vpop.f32.mrb[12].mxu0  ;;  %v1137_v58 = vadd.f32 %v1897_v61, %v1136_v11 }
 0x10e   :  { %v600_v19 = vpop.f32.mrb[13].mxu0  ;;  %v1210_v30 = vmul.f32 %v1900_v3, %v1900_v3  ;;  %v2362_v54 = vpop.f32.mrb[8].mxu1 }
 0x10f   :  { %v1138_v22 = vadd.f32 %v1137_v58, %v600_v19  ;;  %v1208_v23 = vmul.f32 %v600_v19, %v600_v19  ;;  %v1270_v24 = vadd.f32 %v1269_v18, %v1207_v17  ;;  %v1901_v26 = vpop.f32.mrb[14].mxu0  ;;  %v2364_v55 = vpop.f32.mrb[9].mxu1 }
 0x110   :  { %v1646_v27 = vpack.c.bf16 %v1901_v26, %v1900_v3  ;;  %v603_v52 = vpop.f32.mrb[15].mxu0  ;;  %v1211_v34 = vmul.f32 %v1901_v26, %v1901_v26  ;;  %v2366_v61 = vpop.f32.mrb[10].mxu1 }
 0x111   :  { %v1271_v12 = vadd.f32 %v1270_v24, %v1208_v23  ;;  %v1641_v28 = vpack.c.bf16 %v603_v52, %v600_v19  ;;  %v1139_v29 = vadd.f32 %v1138_v22, %v603_v52  ;;  %v1209_v5 = vmul.f32 %v603_v52, %v603_v52  ;;  %v2370_v0 = vpop.f32.mrb[11].mxu1 }
 0x112   :  { %1805 = vst [vmem:[%s2591_s4 + $0x38] sm:$0xff] %v1646_v27   ;;  %v1716_v63 = vpack.c.bf16 %v2366_v61, %v2362_v54  ;;  %v1711_v11 = vpack.c.bf16 %v2370_v0, %v2364_v55 }
 0x113   :  { %1804 = vst [vmem:[%s2591_s4 + $0x30] sm:$0xff] %v1641_v28   ;;  %v1140_v31 = vadd.f32 %v1900_v3, %v1139_v29  ;;  %v1272_v32 = vadd.f32 %v1271_v12, %v1209_v5 }
 0x114   :  { %1819 = vst [vmem:[%s2591_s4 + $0xa8] sm:$0xff] %v1716_v63   ;;  %1818 = vst [vmem:[%s2591_s4 + $0xa0] sm:$0xff] %v1711_v11  }
 0x115   :  { %v1273_v50 = vadd.f32 %v1272_v32, %v1210_v30  ;;  %v1904_v35 = vpop.f32.mrb[16].mxu0  ;;  %v1141_v53 = vadd.f32 %v1901_v26, %v1140_v31 }
 0x116   :  { %v616_v6 = vpop.f32.mrb[17].mxu0  ;;  %v1214_v48 = vmul.f32 %v1904_v35, %v1904_v35 }
 0x117   :  { %v1142_v37 = vadd.f32 %v1141_v53, %v616_v6  ;;  %v1212_v38 = vmul.f32 %v616_v6, %v616_v6  ;;  %v1274_v39 = vadd.f32 %v1273_v50, %v1211_v34  ;;  %v1905_v40 = vpop.f32.mrb[18].mxu0 }
 0x118   :  { %v1656_v42 = vpack.c.bf16 %v1905_v40, %v1904_v35  ;;  %v619_v43 = vpop.f32.mrb[19].mxu0  ;;  %v1215_v56 = vmul.f32 %v1905_v40, %v1905_v40  ;;  %v2386_v24 = vpop.f32.mrb[12].mxu1 }
 0x119   :  { %v1275_v44 = vadd.f32 %v1274_v39, %v1212_v38  ;;  %v1651_v45 = vpack.c.bf16 %v619_v43, %v616_v6  ;;  %v1143_v46 = vadd.f32 %v1142_v37, %v619_v43  ;;  %v1213_v47 = vmul.f32 %v619_v43, %v619_v43  ;;  %v2388_v26 = vpop.f32.mrb[13].mxu1 }
 0x11a   :  { %1807 = vst [vmem:[%s2591_s4 + $0x48] sm:$0xff] %v1656_v42   ;;  %v2390_v28 = vpop.f32.mrb[14].mxu1 }
 0x11b   :  { %1806 = vst [vmem:[%s2591_s4 + $0x40] sm:$0xff] %v1651_v45   ;;  %v1144_v49 = vadd.f32 %v1904_v35, %v1143_v46  ;;  %v1276_v51 = vadd.f32 %v1275_v44, %v1213_v47  ;;  %v1726_v5 = vpack.c.bf16 %v2390_v28, %v2386_v24  ;;  %v2394_v30 = vpop.f32.mrb[15].mxu1 }
 0x11c   :  { %v1721_v35 = vpack.c.bf16 %v2394_v30, %v2388_v26 }
 0x11d   :  { %v1277_v25 = vadd.f32 %v1276_v51, %v1214_v48  ;;  %v1908_v57 = vpop.f32.mrb[20].mxu0  ;;  %v1145_v59 = vadd.f32 %v1905_v40, %v1144_v49  ;;  %1821 = vst [vmem:[%s2591_s4 + $0xb8] sm:$0xff] %v1726_v5  }
 0x11e   :  { %v632_v62 = vpop.f32.mrb[21].mxu0  ;;  %v1218_v20 = vmul.f32 %v1908_v57, %v1908_v57  ;;  %1820 = vst [vmem:[%s2591_s4 + $0xb0] sm:$0xff] %v1721_v35   ;;  %v1229_v35 = vmul.f32 %v2322_v21, %v2322_v21 }
 0x11f   :  { %v1146_v1 = vadd.f32 %v1145_v59, %v632_v62  ;;  %v1216_v4 = vmul.f32 %v632_v62, %v632_v62  ;;  %v1278_v8 = vadd.f32 %v1277_v25, %v1215_v56  ;;  %v1909_v9 = vpop.f32.mrb[22].mxu0 }
 0x120   :  { %v1666_v13 = vpack.c.bf16 %v1909_v9, %v1908_v57  ;;  %v635_v17 = vpop.f32.mrb[23].mxu0  ;;  %v1219_v60 = vmul.f32 %v1909_v9, %v1909_v9  ;;  %v2410_v43 = vpop.f32.mrb[16].mxu1 }
 0x121   :  { %v1279_v18 = vadd.f32 %v1278_v8, %v1216_v4  ;;  %v1661_v3 = vpack.c.bf16 %v635_v17, %v632_v62  ;;  %v1147_v58 = vadd.f32 %v1146_v1, %v635_v17  ;;  %v1217_v19 = vmul.f32 %v635_v17, %v635_v17  ;;  %v2412_v44 = vpop.f32.mrb[17].mxu1 }
 0x122   :  { %1809 = vst [vmem:[%s2591_s4 + $0x58] sm:$0xff] %v1666_v13   ;;  %v2414_v49 = vpop.f32.mrb[18].mxu1 }
 0x123   :  { %1808 = vst [vmem:[%s2591_s4 + $0x50] sm:$0xff] %v1661_v3   ;;  %v1148_v22 = vadd.f32 %v1908_v57, %v1147_v58  ;;  %v1280_v23 = vadd.f32 %v1279_v18, %v1217_v19  ;;  %v1736_v56 = vpack.c.bf16 %v2414_v49, %v2410_v43  ;;  %v2418_v25 = vpop.f32.mrb[19].mxu1 }
 0x124   :  { %v1731_v1 = vpack.c.bf16 %v2418_v25, %v2412_v44 }
 0x125   :  { %v1281_v27 = vadd.f32 %v1280_v23, %v1218_v20  ;;  %v1912_v52 = vpop.f32.mrb[24].mxu0  ;;  %v1149_v12 = vadd.f32 %v1909_v9, %v1148_v22  ;;  %1823 = vst [vmem:[%s2591_s4 + $0xc8] sm:$0xff] %v1736_v56  }
 0x126   :  { %v648_v29 = vpop.f32.mrb[25].mxu0  ;;  %v1222_v40 = vmul.f32 %v1912_v52, %v1912_v52  ;;  %1822 = vst [vmem:[%s2591_s4 + $0xc0] sm:$0xff] %v1731_v1  }
 0x127   :  { %v1150_v31 = vadd.f32 %v1149_v12, %v648_v29  ;;  %v1220_v32 = vmul.f32 %v648_v29, %v648_v29  ;;  %v1282_v34 = vadd.f32 %v1281_v27, %v1219_v60  ;;  %v1913_v50 = vpop.f32.mrb[26].mxu0  ;;  %v1228_v27 = vmul.f32 %v2316_v15, %v2316_v15 }
 0x128   :  { %v1676_v53 = vpack.c.bf16 %v1913_v50, %v1912_v52  ;;  %v651_v6 = vpop.f32.mrb[27].mxu0  ;;  %v1223_v45 = vmul.f32 %v1913_v50, %v1913_v50  ;;  %v2434_v19 = vpop.f32.mrb[20].mxu1 }
 0x129   :  { %v1283_v16 = vadd.f32 %v1282_v34, %v1220_v32  ;;  %v1671_v37 = vpack.c.bf16 %v651_v6, %v648_v29  ;;  %v1151_v38 = vadd.f32 %v1150_v31, %v651_v6  ;;  %v1221_v39 = vmul.f32 %v651_v6, %v651_v6  ;;  %v2436_v20 = vpop.f32.mrb[21].mxu1 }
 0x12a   :  { %1811 = vst [vmem:[%s2591_s4 + $0x68] sm:$0xff] %v1676_v53  }
 0x12b   :  { %1810 = vst [vmem:[%s2591_s4 + $0x60] sm:$0xff] %v1671_v37   ;;  %v1152_v41 = vadd.f32 %v1912_v52, %v1151_v38  ;;  %v1284_v42 = vadd.f32 %v1283_v16, %v1221_v39  ;;  %v2440_v52 = vpop.f32.mrb[22].mxu1  ;;  %v1231_v38 = vmul.f32 %v2318_v7, %v2318_v7 }
 0x12c   :  { %v1746_v12 = vpack.c.bf16 %v2440_v52, %v2434_v19  ;;  %v2444_v29 = vpop.f32.mrb[23].mxu1 }
 0x12d   :  { %v1285_v46 = vadd.f32 %v1284_v42, %v1222_v40  ;;  %v1916_v47 = vpop.f32.mrb[28].mxu0  ;;  %v1153_v48 = vadd.f32 %v1913_v50, %v1152_v41  ;;  %v1741_v32 = vpack.c.bf16 %v2444_v29, %v2436_v20  ;;  %v1232_v40 = vmul.f32 %v2340_v10, %v2340_v10 }
 0x12e   :  { %v664_v51 = vpop.f32.mrb[29].mxu0  ;;  %v1226_v18 = vmul.f32 %v1916_v47, %v1916_v47  ;;  %1825 = vst [vmem:[%s2591_s4 + $0xd8] sm:$0xff] %v1746_v12   ;;  %v1240_v12 = vmul.f32 %v2388_v26, %v2388_v26 }
 0x12f   :  { %v1154_v57 = vadd.f32 %v1153_v48, %v664_v51  ;;  %v1224_v59 = vmul.f32 %v664_v51, %v664_v51  ;;  %v1286_v62 = vadd.f32 %v1285_v46, %v1223_v45  ;;  %v1917_v63 = vpop.f32.mrb[30].mxu0  ;;  %1824 = vst [vmem:[%s2591_s4 + $0xd0] sm:$0xff] %v1741_v32  }
 0x130   :  { %v1686_v4 = vpack.c.bf16 %v1917_v63, %v1916_v47  ;;  %v667_v8 = vpop.f32.mrb[31].mxu0  ;;  %v1227_v22 = vmul.f32 %v1917_v63, %v1917_v63  ;;  %v2461_v16 = vpop.f32.mrb[24].mxu1 }
 0x131   :  { %v1287_v9 = vadd.f32 %v1286_v62, %v1224_v59  ;;  %v1681_v11 = vpack.c.bf16 %v667_v8, %v664_v51  ;;  %v1155_v13 = vadd.f32 %v1154_v57, %v667_v8  ;;  %v1225_v17 = vmul.f32 %v667_v8, %v667_v8  ;;  %v2463_v37 = vpop.f32.mrb[25].mxu1 }
 0x132   :  { %1813 = vst [vmem:[%s2591_s4 + $0x78] sm:$0xff] %v1686_v4   ;;  %v2470_v41 = vpop.f32.mrb[26].mxu1  ;;  %v1233_v51 = vmul.f32 %v2346_v36, %v2346_v36  ;;  %v1236_v4 = vmul.f32 %v2364_v55, %v2364_v55 }
 0x133   :  { %1812 = vst [vmem:[%s2591_s4 + $0x70] sm:$0xff] %v1681_v11   ;;  %v1156_v3 = vadd.f32 %v1916_v47, %v1155_v13  ;;  %v1288_v58 = vadd.f32 %v1287_v9, %v1225_v17  ;;  %v1756_v42 = vpack.c.bf16 %v2470_v41, %v2461_v16 }
 0x135   :  { %v1289_v23 = vadd.f32 %v1288_v58, %v1226_v18  ;;  %v1157_v60 = vadd.f32 %v1917_v63, %v1156_v3  ;;  %1827 = vst [vmem:[%s2591_s4 + $0xe8] sm:$0xff] %v1756_v42   ;;  %v1235_v63 = vmul.f32 %v2342_v2, %v2342_v2  ;;  %v1237_v3 = vmul.f32 %v2370_v0, %v2370_v0 }
 0x137   :  { %v1158_v5 = vadd.f32 %v1157_v60, %v2316_v15  ;;  %v1290_v31 = vadd.f32 %v1289_v23, %v1227_v22  ;;  %v1230_v15 = vmul.f32 %v2314_v14, %v2314_v14  ;;  %v1239_v23 = vmul.f32 %v2366_v61, %v2366_v61 }
 0x139   :  { %v1291_v34 = vadd.f32 %v1290_v31, %v1228_v27  ;;  %v1159_v50 = vadd.f32 %v1158_v5, %v2322_v21 }
 0x13b   :  { %v1160_v53 = vadd.f32 %v2314_v14, %v1159_v50  ;;  %v1292_v6 = vadd.f32 %v1291_v34, %v1229_v35  ;;  %v2474_v14 = vpop.f32.mrb[27].mxu1  ;;  %v1241_v34 = vmul.f32 %v2394_v30, %v2394_v30 }
 0x13c   :  { %v1751_v47 = vpack.c.bf16 %v2474_v14, %v2463_v37  ;;  %v2491_v59 = vpop.f32.mrb[28].mxu1 }
 0x13d   :  { %v1293_v39 = vadd.f32 %v1292_v6, %v1230_v15  ;;  %v1161_v21 = vadd.f32 %v2318_v7, %v1160_v53  ;;  %v2493_v62 = vpop.f32.mrb[29].mxu1 }
 0x13e   :  { %1826 = vst [vmem:[%s2591_s4 + $0xe0] sm:$0xff] %v1751_v47   ;;  %v2500_v8 = vpop.f32.mrb[30].mxu1 }
 0x13f   :  { %v1162_v45 = vadd.f32 %v1161_v21, %v2340_v10  ;;  %v1294_v46 = vadd.f32 %v1293_v39, %v1231_v38  ;;  %v1234_v10 = vmul.f32 %v2338_v33, %v2338_v33  ;;  %v1766_v9 = vpack.c.bf16 %v2500_v8, %v2491_v59 }
 0x140   :  { %v1245_v21 = vmul.f32 %v2418_v25, %v2418_v25 }
 0x141   :  { %v1295_v7 = vadd.f32 %v1294_v46, %v1232_v40  ;;  %v1163_v48 = vadd.f32 %v1162_v45, %v2346_v36  ;;  %1829 = vst [vmem:[%s2591_s4 + $0xf8] sm:$0xff] %v1766_v9   ;;  %v1253_v9 = vmul.f32 %v2474_v14, %v2474_v14 }
 0x143   :  { %v1164_v56 = vadd.f32 %v2338_v33, %v1163_v48  ;;  %v1296_v57 = vadd.f32 %v1295_v7, %v1233_v51  ;;  %v2504_v33 = vpop.f32.mrb[31].mxu1  ;;  %v1249_v51 = vmul.f32 %v2444_v29, %v2444_v29 }
 0x144   :  { %v1761_v17 = vpack.c.bf16 %v2504_v33, %v2493_v62 }
 0x145   :  { %v1297_v1 = vadd.f32 %v1296_v57, %v1234_v10  ;;  %v1165_v36 = vadd.f32 %v2342_v2, %v1164_v56 }
 0x146   :  { %1828 = vst [vmem:[%s2591_s4 + $0xf0] sm:$0xff] %v1761_v17  }
 0x147   :  { %v1166_v11 = vadd.f32 %v1165_v36, %v2364_v55  ;;  %v1298_v13 = vadd.f32 %v1297_v1, %v1235_v63  ;;  %v1238_v55 = vmul.f32 %v2362_v54, %v2362_v54 }
 0x149   :  { %v1299_v2 = vadd.f32 %v1298_v13, %v1236_v4  ;;  %v1167_v18 = vadd.f32 %v1166_v11, %v2370_v0 }
 0x14b   :  { %v1168_v58 = vadd.f32 %v2362_v54, %v1167_v18  ;;  %v1300_v22 = vadd.f32 %v1299_v2, %v1237_v3  ;;  %v1242_v54 = vmul.f32 %v2386_v24, %v2386_v24 }
 0x14d   :  { %v1301_v60 = vadd.f32 %v1300_v22, %v1238_v55  ;;  %v1169_v27 = vadd.f32 %v2366_v61, %v1168_v58  ;;  %v1243_v61 = vmul.f32 %v2390_v28, %v2390_v28  ;;  %v1257_v58 = vmul.f32 %v2504_v33, %v2504_v33 }
 0x14f   :  { %v1170_v0 = vadd.f32 %v1169_v27, %v2388_v26  ;;  %v1302_v5 = vadd.f32 %v1301_v60, %v1239_v23  ;;  %v1244_v26 = vmul.f32 %v2412_v44, %v2412_v44 }
 0x151   :  { %v1303_v31 = vadd.f32 %v1302_v5, %v1240_v12  ;;  %v1171_v32 = vadd.f32 %v1170_v0, %v2394_v30 }
 0x153   :  { %v1172_v50 = vadd.f32 %v2386_v24, %v1171_v32  ;;  %v1304_v35 = vadd.f32 %v1303_v31, %v1241_v34  ;;  %v1246_v24 = vmul.f32 %v2410_v43, %v2410_v43 }
 0x155   :  { %v1305_v15 = vadd.f32 %v1304_v35, %v1242_v54  ;;  %v1173_v53 = vadd.f32 %v2390_v28, %v1172_v50  ;;  %v1247_v28 = vmul.f32 %v2414_v49, %v2414_v49 }
 0x157   :  { %v1174_v6 = vadd.f32 %v1173_v53, %v2412_v44  ;;  %v1306_v38 = vadd.f32 %v1305_v15, %v1243_v61  ;;  %v1248_v44 = vmul.f32 %v2436_v20, %v2436_v20 }
 0x159   :  { %v1307_v39 = vadd.f32 %v1306_v38, %v1244_v26  ;;  %v1175_v30 = vadd.f32 %v1174_v6, %v2418_v25 }
 0x15b   :  { %v1176_v40 = vadd.f32 %v2410_v43, %v1175_v30  ;;  %v1308_v42 = vadd.f32 %v1307_v39, %v1245_v21  ;;  %v1250_v43 = vmul.f32 %v2434_v19, %v2434_v19 }
 0x15d   :  { %v1309_v45 = vadd.f32 %v1308_v42, %v1246_v24  ;;  %v1177_v46 = vadd.f32 %v2414_v49, %v1176_v40  ;;  %v1251_v49 = vmul.f32 %v2440_v52, %v2440_v52 }
 0x15f   :  { %v1178_v47 = vadd.f32 %v1177_v46, %v2436_v20  ;;  %v1310_v7 = vadd.f32 %v1309_v45, %v1247_v28  ;;  %v1252_v20 = vmul.f32 %v2463_v37, %v2463_v37 }
 0x161   :  { %v1311_v48 = vadd.f32 %v1310_v7, %v1248_v44  ;;  %v1179_v25 = vadd.f32 %v1178_v47, %v2444_v29 }
 0x163   :  { %v1180_v10 = vadd.f32 %v2434_v19, %v1179_v25  ;;  %v1312_v56 = vadd.f32 %v1311_v48, %v1249_v51  ;;  %v1254_v19 = vmul.f32 %v2461_v16, %v2461_v16 }
 0x165   :  { %v1313_v57 = vadd.f32 %v1312_v56, %v1250_v43  ;;  %v1181_v63 = vadd.f32 %v2440_v52, %v1180_v10  ;;  %v1255_v52 = vmul.f32 %v2470_v41, %v2470_v41 }
 0x167   :  { %v1182_v1 = vadd.f32 %v1181_v63, %v2463_v37  ;;  %v1314_v36 = vadd.f32 %v1313_v57, %v1251_v49  ;;  %v1256_v37 = vmul.f32 %v2493_v62, %v2493_v62 }
 0x169   :  { %v1315_v4 = vadd.f32 %v1314_v36, %v1252_v20  ;;  %v1183_v29 = vadd.f32 %v1182_v1, %v2474_v14 }
 0x16b   :  { %v1184_v11 = vadd.f32 %v2461_v16, %v1183_v29  ;;  %v1316_v13 = vadd.f32 %v1315_v4, %v1253_v9  ;;  %v1258_v16 = vmul.f32 %v2491_v59, %v2491_v59 }
 0x16d   :  { %v1317_v17 = vadd.f32 %v1316_v13, %v1254_v19  ;;  %v1185_v2 = vadd.f32 %v2470_v41, %v1184_v11  ;;  %v1259_v41 = vmul.f32 %v2500_v8, %v2500_v8 }
 0x16f   :  { %v1186_v18 = vadd.f32 %v1185_v2, %v2493_v62  ;;  %v1318_v3 = vadd.f32 %v1317_v17, %v1255_v52 }
 0x171   :  { %v1319_v55 = vadd.f32 %v1318_v3, %v1256_v37  ;;  %v1187_v14 = vadd.f32 %v1186_v18, %v2504_v33 }
 0x173   :  { %v1188_v22 = vadd.f32 %v2491_v59, %v1187_v14  ;;  %v1320_v23 = vadd.f32 %v1319_v55, %v1257_v58 }
 0x175   :  { %v1189_v60 = vadd.f32 %v2500_v8, %v1188_v22  ;;  %v1321_v27 = vadd.f32 %v1320_v23, %v1258_v16 }
 0x177   :  { %v1190_v62 = vrot.slane %v1189_v60, 4  ;;  %v1322_v12 = vadd.f32 %v1321_v27, %v1259_v41 }
 0x179   :  { %v1191_v0 = vadd.f32 %v1190_v62, %v1189_v60  ;;  %v1323_v5 = vrot.slane %v1322_v12, 4 }
 0x17b   :  { %v1192_v31 = vrot.slane %v1191_v0, 2  ;;  %v1324_v32 = vadd.f32 %v1323_v5, %v1322_v12 }
 0x17d   :  { %v1193_v34 = vadd.f32 %v1192_v31, %v1191_v0  ;;  %v1325_v33 = vrot.slane %v1324_v32, 2 }
 0x17f   :  { %v1194_v54 = vrot.slane %v1193_v34, 1  ;;  %v1326_v50 = vadd.f32 %v1325_v33, %v1324_v32 }
 0x181   :  { %v1327_v35 = vrot.slane %v1326_v50, 1  ;;  %v1195_v59 = vadd.f32 %v1194_v54, %v1193_v34 }
 0x183   :  { %v1328_v61 = vadd.f32 %v1327_v35, %v1326_v50 }
 0x185   :  { %v1330_v15 = vsel %vm1329_vm0, %v1195_v59, %v1328_v61 }
 0x186   :  { %v1332_v53 = vsel %vm1331_vm1, %v1330_v15, 0.0 }
 0x187   :  { %1333 = vst [vmem:[%s2592_s5] sm:$0xff] %v1332_v53 }

// kernel: bottleneck_forward.9
= control target key start
LH: loop header
LB: loop body
LE: loop exit
PB: predicated region body
PF: predicated region fallthrough
CT: control target
= control target key end

     0   :  { %s2279_s0 = inlined_call_operand.vmem [shape: bf16[512,128], index: 0, kind: input, shape index: {}]   ;;  %s2280_s1 = inlined_call_operand.vmem [shape: f32[1,128], index: 1, kind: input, shape index: {}]   ;;  %s2281_s2 = inlined_call_operand.vmem [shape: f32[1,128], index: 2, kind: input, shape index: {}]   ;;  %s2282_s3 = inlined_call_operand.vmem [shape: bf16[512,128], index: 3, kind: input, shape index: {}]   ;;  %s2283_s4 = inlined_call_operand.vmem [shape: f32[1,128], index: 4, kind: input, shape index: {}]   ;;  %s2284_s5 = inlined_call_operand.vmem [shape: f32[1,128], index: 5, kind: input, shape index: {}]   ;;  %s2285_s6 = inlined_call_operand.vmem [shape: bf16[512,128], index: 6, kind: output, shape index: {}]  }
   0x1   :  { %v1148_v0 = vld [vmem:[%s2279_s0] sm:$0xff]   ;;  %v1563_v9 = vld [vmem:[%s2279_s0 + $0x8] sm:$0xff]   ;;  %v1564_v20 = vld [vmem:[%s2279_s0 + $0x10] sm:$0xff]  }
   0x2   :  { %v1701_v1 = vld [vmem:[%s2280_s1] ss:$0 sm:$0xff]  ;;  %v1149_v2 = vunpack.c.l.bf16 %v1148_v0  ;;  %v1150_v3 = vunpack.c.h.bf16 %v1148_v0  ;;  %v1594_v10 = vld [vmem:[%s2282_s3 + $0x8] sm:$0xff]   ;;  %v1153_v14 = vunpack.c.l.bf16 %v1563_v9  ;;  %v1154_v15 = vunpack.c.h.bf16 %v1563_v9  ;;  %v1595_v29 = vld [vmem:[%s2282_s3 + $0x10] sm:$0xff]  }
   0x3   :  { %v1276_v4 = vld [vmem:[%s2282_s3] sm:$0xff]   ;;  %v1281_v18 = vunpack.c.l.bf16 %v1594_v10  ;;  %v1282_v19 = vunpack.c.h.bf16 %v1594_v10  ;;  %v1157_v32 = vunpack.c.l.bf16 %v1564_v20  ;;  %v1158_v33 = vunpack.c.h.bf16 %v1564_v20  ;;  %v1565_v42 = vld [vmem:[%s2279_s0 + $0x18] sm:$0xff]  }
   0x4   :  { %v1709_v5 = vld [vmem:[%s2283_s4] ss:$0 sm:$0xff]  ;;  %v1277_v7 = vunpack.c.l.bf16 %v1276_v4  ;;  %v1278_v8 = vunpack.c.h.bf16 %v1276_v4  ;;  %v158_v11 = vmul.f32 %v1149_v2, %v1701_v1  ;;  %v159_v12 = vmul.f32 %v1150_v3, %v1701_v1  ;;  %v1596_v47 = vld [vmem:[%s2282_s3 + $0x18] sm:$0xff]  }
   0x5   :  { %v1714_v6 = vld [vmem:[%s2281_s2] ss:$0 sm:$0xff]  ;;  %v160_v23 = vmul.f32 %v1153_v14, %v1701_v1  ;;  %v161_v24 = vmul.f32 %v1154_v15, %v1701_v1  ;;  %v430_v27 = vmul.f32 %v1281_v18, %v1709_v5  ;;  %v431_v28 = vmul.f32 %v1282_v19, %v1709_v5  ;;  %v1567_v14 = vld [vmem:[%s2279_s0 + $0x28] sm:$0xff]  }
   0x6   :  { %v1727_v13 = vld [vmem:[%s2284_s5] ss:$0 sm:$0xff]  ;;  %v428_v16 = vmul.f32 %v1277_v7, %v1709_v5  ;;  %v429_v17 = vmul.f32 %v1278_v8, %v1709_v5  ;;  %v229_v21 = vadd.f32 %v1714_v6, %v158_v11  ;;  %v230_v22 = vadd.f32 %v1714_v6, %v159_v12 }
   0x7   :  { %v231_v30 = vadd.f32 %v1714_v6, %v160_v23  ;;  %v232_v31 = vadd.f32 %v1714_v6, %v161_v24  ;;  %v501_v36 = vadd.f32 %v1727_v13, %v430_v27  ;;  %v502_v37 = vadd.f32 %v1727_v13, %v431_v28  ;;  %v1566_v52 = vld [vmem:[%s2279_s0 + $0x20] sm:$0xff]   ;;  %v1598_v23 = vld [vmem:[%s2282_s3 + $0x28] sm:$0xff]  }
   0x8   :  { %v499_v25 = vadd.f32 %v1727_v13, %v428_v16  ;;  %v500_v26 = vadd.f32 %v1727_v13, %v429_v17  ;;  %v162_v38 = vmul.f32 %v1157_v32, %v1701_v1  ;;  %v163_v39 = vmul.f32 %v1158_v33, %v1701_v1  ;;  %v1597_v8 = vld [vmem:[%s2282_s3 + $0x20] sm:$0xff]   ;;  %v1568_v32 = vld [vmem:[%s2279_s0 + $0x30] sm:$0xff]  }
   0x9   :  { %v1285_v40 = vunpack.c.l.bf16 %v1595_v29  ;;  %v1286_v41 = vunpack.c.h.bf16 %v1595_v29  ;;  %v565_v45 = vadd.f32 %v501_v36, %v231_v30  ;;  %v566_v46 = vadd.f32 %v502_v37, %v232_v31 }
   0xa   :  { %v563_v34 = vadd.f32 %v499_v25, %v229_v21  ;;  %v564_v35 = vadd.f32 %v500_v26, %v230_v22  ;;  %v233_v48 = vadd.f32 %v1714_v6, %v162_v38  ;;  %v234_v49 = vadd.f32 %v1714_v6, %v163_v39 }
   0xb   :  { %v432_v50 = vmul.f32 %v1285_v40, %v1709_v5  ;;  %v433_v51 = vmul.f32 %v1286_v41, %v1709_v5  ;;  %v629_v54 = vmax.f32 %v565_v45, 0.0  ;;  %v630_v55 = vmax.f32 %v566_v46, 0.0  ;;  %v1599_v45 = vld [vmem:[%s2282_s3 + $0x30] sm:$0xff]  }
   0xc   :  { %v627_v43 = vmax.f32 %v563_v34, 0.0  ;;  %v628_v44 = vmax.f32 %v564_v35, 0.0  ;;  %v1161_v56 = vunpack.c.l.bf16 %v1565_v42  ;;  %v1162_v59 = vunpack.c.h.bf16 %v1565_v42 }
   0xd   :  { %v503_v57 = vadd.f32 %v1727_v13, %v432_v50  ;;  %v504_v58 = vadd.f32 %v1727_v13, %v433_v51  ;;  %v1289_v60 = vunpack.c.l.bf16 %v1596_v47  ;;  %v1411_v61 = vpack.c.bf16 %v630_v55, %v629_v54  ;;  %v1569_v54 = vld [vmem:[%s2279_s0 + $0x38] sm:$0xff]  }
   0xe   :  { %v1406_v53 = vpack.c.bf16 %v628_v44, %v627_v43  ;;  %v164_v62 = vmul.f32 %v1161_v56, %v1701_v1  ;;  %v1290_v63 = vunpack.c.h.bf16 %v1596_v47  ;;  %v1165_v0 = vunpack.c.l.bf16 %v1566_v52 }
   0xf   :  { %v567_v2 = vadd.f32 %v503_v57, %v233_v48  ;;  %v568_v3 = vadd.f32 %v504_v58, %v234_v49  ;;  %v165_v4 = vmul.f32 %v1162_v59, %v1701_v1  ;;  %v434_v7 = vmul.f32 %v1289_v60, %v1709_v5  ;;  %1625 = vst [vmem:[%s2285_s6 + $0x8] sm:$0xff] %v1411_v61  }
  0x10   :  { %1407 = vst [vmem:[%s2285_s6] sm:$0xff] %v1406_v53   ;;  %v235_v9 = vadd.f32 %v1714_v6, %v164_v62  ;;  %v435_v10 = vmul.f32 %v1290_v63, %v1709_v5  ;;  %v1166_v11 = vunpack.c.h.bf16 %v1566_v52  ;;  %v166_v12 = vmul.f32 %v1165_v0, %v1701_v1 }
  0x11   :  { %v631_v15 = vmax.f32 %v567_v2, 0.0  ;;  %v632_v16 = vmax.f32 %v568_v3, 0.0  ;;  %v236_v17 = vadd.f32 %v1714_v6, %v165_v4  ;;  %v505_v18 = vadd.f32 %v1727_v13, %v434_v7  ;;  %v1600_v4 = vld [vmem:[%s2282_s3 + $0x38] sm:$0xff]   ;;  %v1570_v7 = vld [vmem:[%s2279_s0 + $0x40] sm:$0xff]  }
  0x12   :  { %v506_v19 = vadd.f32 %v1727_v13, %v435_v10  ;;  %v167_v20 = vmul.f32 %v1166_v11, %v1701_v1  ;;  %v237_v21 = vadd.f32 %v1714_v6, %v166_v12  ;;  %v1293_v22 = vunpack.c.l.bf16 %v1597_v8 }
  0x13   :  { %v1416_v24 = vpack.c.bf16 %v632_v16, %v631_v15  ;;  %v569_v25 = vadd.f32 %v505_v18, %v235_v9  ;;  %v1294_v26 = vunpack.c.h.bf16 %v1597_v8  ;;  %v1169_v27 = vunpack.c.l.bf16 %v1567_v14 }
  0x14   :  { %v570_v28 = vadd.f32 %v506_v19, %v236_v17  ;;  %v238_v29 = vadd.f32 %v1714_v6, %v167_v20  ;;  %v436_v30 = vmul.f32 %v1293_v22, %v1709_v5  ;;  %v1170_v31 = vunpack.c.h.bf16 %v1567_v14 }
  0x15   :  { %1626 = vst [vmem:[%s2285_s6 + $0x10] sm:$0xff] %v1416_v24   ;;  %v633_v33 = vmax.f32 %v569_v25, 0.0  ;;  %v437_v34 = vmul.f32 %v1294_v26, %v1709_v5  ;;  %v168_v35 = vmul.f32 %v1169_v27, %v1701_v1  ;;  %v1297_v36 = vunpack.c.l.bf16 %v1598_v23 }
  0x16   :  { %v634_v37 = vmax.f32 %v570_v28, 0.0  ;;  %v507_v38 = vadd.f32 %v1727_v13, %v436_v30  ;;  %v169_v39 = vmul.f32 %v1170_v31, %v1701_v1  ;;  %v1298_v40 = vunpack.c.h.bf16 %v1598_v23  ;;  %v1571_v30 = vld [vmem:[%s2279_s0 + $0x48] sm:$0xff]  }
  0x17   :  { %v508_v41 = vadd.f32 %v1727_v13, %v437_v34  ;;  %v239_v42 = vadd.f32 %v1714_v6, %v168_v35  ;;  %v438_v43 = vmul.f32 %v1297_v36, %v1709_v5  ;;  %v1173_v44 = vunpack.c.l.bf16 %v1568_v32 }
  0x18   :  { %v1421_v46 = vpack.c.bf16 %v634_v37, %v633_v33  ;;  %v571_v47 = vadd.f32 %v507_v38, %v237_v21  ;;  %v240_v48 = vadd.f32 %v1714_v6, %v169_v39  ;;  %v439_v49 = vmul.f32 %v1298_v40, %v1709_v5  ;;  %v1601_v21 = vld [vmem:[%s2282_s3 + $0x40] sm:$0xff]   ;;  %v1602_v39 = vld [vmem:[%s2282_s3 + $0x48] sm:$0xff]  }
  0x19   :  { %v572_v50 = vadd.f32 %v508_v41, %v238_v29  ;;  %v509_v51 = vadd.f32 %v1727_v13, %v438_v43  ;;  %v1174_v52 = vunpack.c.h.bf16 %v1568_v32  ;;  %v170_v53 = vmul.f32 %v1173_v44, %v1701_v1 }
  0x1a   :  { %1627 = vst [vmem:[%s2285_s6 + $0x18] sm:$0xff] %v1421_v46   ;;  %v635_v55 = vmax.f32 %v571_v47, 0.0  ;;  %v510_v56 = vadd.f32 %v1727_v13, %v439_v49  ;;  %v1301_v57 = vunpack.c.l.bf16 %v1599_v45  ;;  %v1302_v58 = vunpack.c.h.bf16 %v1599_v45 }
  0x1b   :  { %v636_v59 = vmax.f32 %v572_v50, 0.0  ;;  %v573_v60 = vadd.f32 %v509_v51, %v239_v42  ;;  %v171_v61 = vmul.f32 %v1174_v52, %v1701_v1  ;;  %v241_v62 = vadd.f32 %v1714_v6, %v170_v53  ;;  %v1572_v52 = vld [vmem:[%s2279_s0 + $0x50] sm:$0xff]  }
  0x1c   :  { %v574_v63 = vadd.f32 %v510_v56, %v240_v48  ;;  %v440_v0 = vmul.f32 %v1301_v57, %v1709_v5  ;;  %v441_v2 = vmul.f32 %v1302_v58, %v1709_v5  ;;  %v1177_v3 = vunpack.c.l.bf16 %v1569_v54 }
  0x1d   :  { %v1426_v8 = vpack.c.bf16 %v636_v59, %v635_v55  ;;  %v637_v9 = vmax.f32 %v573_v60, 0.0  ;;  %v242_v10 = vadd.f32 %v1714_v6, %v171_v61  ;;  %v1178_v11 = vunpack.c.h.bf16 %v1569_v54  ;;  %v1603_v61 = vld [vmem:[%s2282_s3 + $0x50] sm:$0xff]  }
  0x1e   :  { %v638_v12 = vmax.f32 %v574_v63, 0.0  ;;  %v511_v14 = vadd.f32 %v1727_v13, %v440_v0  ;;  %v512_v15 = vadd.f32 %v1727_v13, %v441_v2  ;;  %v172_v16 = vmul.f32 %v1177_v3, %v1701_v1  ;;  %v1573_v3 = vld [vmem:[%s2279_s0 + $0x58] sm:$0xff]  }
  0x1f   :  { %1628 = vst [vmem:[%s2285_s6 + $0x20] sm:$0xff] %v1426_v8   ;;  %v173_v17 = vmul.f32 %v1178_v11, %v1701_v1  ;;  %v1305_v18 = vunpack.c.l.bf16 %v1600_v4  ;;  %v1306_v19 = vunpack.c.h.bf16 %v1600_v4  ;;  %v1181_v20 = vunpack.c.l.bf16 %v1570_v7 }
  0x20   :  { %v1431_v22 = vpack.c.bf16 %v638_v12, %v637_v9  ;;  %v575_v23 = vadd.f32 %v511_v14, %v241_v62  ;;  %v576_v24 = vadd.f32 %v512_v15, %v242_v10  ;;  %v243_v25 = vadd.f32 %v1714_v6, %v172_v16 }
  0x21   :  { %v244_v26 = vadd.f32 %v1714_v6, %v173_v17  ;;  %v442_v27 = vmul.f32 %v1305_v18, %v1709_v5  ;;  %v443_v28 = vmul.f32 %v1306_v19, %v1709_v5  ;;  %v1182_v29 = vunpack.c.h.bf16 %v1570_v7  ;;  %v1604_v19 = vld [vmem:[%s2282_s3 + $0x58] sm:$0xff]  }
  0x22   :  { %1629 = vst [vmem:[%s2285_s6 + $0x28] sm:$0xff] %v1431_v22   ;;  %v639_v31 = vmax.f32 %v575_v23, 0.0  ;;  %v640_v32 = vmax.f32 %v576_v24, 0.0  ;;  %v174_v33 = vmul.f32 %v1181_v20, %v1701_v1  ;;  %v1309_v34 = vunpack.c.l.bf16 %v1601_v21  ;;  %v1574_v24 = vld [vmem:[%s2279_s0 + $0x60] sm:$0xff]  }
  0x23   :  { %v513_v35 = vadd.f32 %v1727_v13, %v442_v27  ;;  %v514_v36 = vadd.f32 %v1727_v13, %v443_v28  ;;  %v175_v37 = vmul.f32 %v1182_v29, %v1701_v1  ;;  %v1310_v38 = vunpack.c.h.bf16 %v1601_v21 }
  0x24   :  { %v1436_v40 = vpack.c.bf16 %v640_v32, %v639_v31  ;;  %v245_v41 = vadd.f32 %v1714_v6, %v174_v33  ;;  %v444_v42 = vmul.f32 %v1309_v34, %v1709_v5  ;;  %v1185_v43 = vunpack.c.l.bf16 %v1571_v30 }
  0x25   :  { %v577_v44 = vadd.f32 %v513_v35, %v243_v25  ;;  %v578_v45 = vadd.f32 %v514_v36, %v244_v26  ;;  %v246_v46 = vadd.f32 %v1714_v6, %v175_v37  ;;  %v445_v47 = vmul.f32 %v1310_v38, %v1709_v5  ;;  %v1605_v37 = vld [vmem:[%s2282_s3 + $0x60] sm:$0xff]  }
  0x26   :  { %1630 = vst [vmem:[%s2285_s6 + $0x30] sm:$0xff] %v1436_v40   ;;  %v515_v48 = vadd.f32 %v1727_v13, %v444_v42  ;;  %v1186_v49 = vunpack.c.h.bf16 %v1571_v30  ;;  %v176_v50 = vmul.f32 %v1185_v43, %v1701_v1  ;;  %v1313_v51 = vunpack.c.l.bf16 %v1602_v39 }
  0x27   :  { %v641_v53 = vmax.f32 %v577_v44, 0.0  ;;  %v642_v54 = vmax.f32 %v578_v45, 0.0  ;;  %v516_v55 = vadd.f32 %v1727_v13, %v445_v47  ;;  %v1314_v56 = vunpack.c.h.bf16 %v1602_v39 }
  0x28   :  { %v579_v57 = vadd.f32 %v515_v48, %v245_v41  ;;  %v177_v58 = vmul.f32 %v1186_v49, %v1701_v1  ;;  %v247_v59 = vadd.f32 %v1714_v6, %v176_v50  ;;  %v446_v60 = vmul.f32 %v1313_v51, %v1709_v5 }
  0x29   :  { %v1441_v62 = vpack.c.bf16 %v642_v54, %v641_v53  ;;  %v580_v63 = vadd.f32 %v516_v55, %v246_v46  ;;  %v447_v0 = vmul.f32 %v1314_v56, %v1709_v5  ;;  %v1189_v2 = vunpack.c.l.bf16 %v1572_v52  ;;  %v1575_v46 = vld [vmem:[%s2279_s0 + $0x68] sm:$0xff]  }
  0x2a   :  { %v643_v4 = vmax.f32 %v579_v57, 0.0  ;;  %v248_v7 = vadd.f32 %v1714_v6, %v177_v58  ;;  %v517_v8 = vadd.f32 %v1727_v13, %v446_v60  ;;  %v1190_v9 = vunpack.c.h.bf16 %v1572_v52 }
  0x2b   :  { %1631 = vst [vmem:[%s2285_s6 + $0x38] sm:$0xff] %v1441_v62   ;;  %v644_v10 = vmax.f32 %v580_v63, 0.0  ;;  %v518_v11 = vadd.f32 %v1727_v13, %v447_v0  ;;  %v178_v12 = vmul.f32 %v1189_v2, %v1701_v1  ;;  %v1317_v14 = vunpack.c.l.bf16 %v1603_v61  ;;  %v1576_v0 = vld [vmem:[%s2279_s0 + $0x70] sm:$0xff]  }
  0x2c   :  { %v581_v15 = vadd.f32 %v517_v8, %v247_v59  ;;  %v179_v16 = vmul.f32 %v1190_v9, %v1701_v1  ;;  %v1318_v17 = vunpack.c.h.bf16 %v1603_v61  ;;  %v1193_v18 = vunpack.c.l.bf16 %v1573_v3  ;;  %v1606_v59 = vld [vmem:[%s2282_s3 + $0x68] sm:$0xff]  }
  0x2d   :  { %v1446_v20 = vpack.c.bf16 %v644_v10, %v643_v4  ;;  %v582_v21 = vadd.f32 %v518_v11, %v248_v7  ;;  %v249_v22 = vadd.f32 %v1714_v6, %v178_v12  ;;  %v448_v23 = vmul.f32 %v1317_v14, %v1709_v5 }
  0x2e   :  { %v645_v25 = vmax.f32 %v581_v15, 0.0  ;;  %v250_v26 = vadd.f32 %v1714_v6, %v179_v16  ;;  %v449_v27 = vmul.f32 %v1318_v17, %v1709_v5  ;;  %v1194_v28 = vunpack.c.h.bf16 %v1573_v3  ;;  %v1607_v17 = vld [vmem:[%s2282_s3 + $0x70] sm:$0xff]  }
  0x2f   :  { %1632 = vst [vmem:[%s2285_s6 + $0x40] sm:$0xff] %v1446_v20   ;;  %v646_v29 = vmax.f32 %v582_v21, 0.0  ;;  %v519_v30 = vadd.f32 %v1727_v13, %v448_v23  ;;  %v180_v31 = vmul.f32 %v1193_v18, %v1701_v1  ;;  %v1321_v32 = vunpack.c.l.bf16 %v1604_v19 }
  0x30   :  { %v520_v33 = vadd.f32 %v1727_v13, %v449_v27  ;;  %v181_v34 = vmul.f32 %v1194_v28, %v1701_v1  ;;  %v1322_v35 = vunpack.c.h.bf16 %v1604_v19  ;;  %v1197_v36 = vunpack.c.l.bf16 %v1574_v24 }
  0x31   :  { %v1451_v38 = vpack.c.bf16 %v646_v29, %v645_v25  ;;  %v583_v39 = vadd.f32 %v519_v30, %v249_v22  ;;  %v251_v40 = vadd.f32 %v1714_v6, %v180_v31  ;;  %v450_v41 = vmul.f32 %v1321_v32, %v1709_v5  ;;  %v1577_v22 = vld [vmem:[%s2279_s0 + $0x78] sm:$0xff]  }
  0x32   :  { %v584_v42 = vadd.f32 %v520_v33, %v250_v26  ;;  %v252_v43 = vadd.f32 %v1714_v6, %v181_v34  ;;  %v451_v44 = vmul.f32 %v1322_v35, %v1709_v5  ;;  %v1198_v45 = vunpack.c.h.bf16 %v1574_v24  ;;  %v1608_v35 = vld [vmem:[%s2282_s3 + $0x78] sm:$0xff]  }
  0x33   :  { %1633 = vst [vmem:[%s2285_s6 + $0x48] sm:$0xff] %v1451_v38   ;;  %v647_v47 = vmax.f32 %v583_v39, 0.0  ;;  %v521_v48 = vadd.f32 %v1727_v13, %v450_v41  ;;  %v182_v49 = vmul.f32 %v1197_v36, %v1701_v1  ;;  %v1325_v50 = vunpack.c.l.bf16 %v1605_v37 }
  0x34   :  { %v648_v51 = vmax.f32 %v584_v42, 0.0  ;;  %v522_v52 = vadd.f32 %v1727_v13, %v451_v44  ;;  %v183_v53 = vmul.f32 %v1198_v45, %v1701_v1  ;;  %v1326_v54 = vunpack.c.h.bf16 %v1605_v37  ;;  %v1578_v44 = vld [vmem:[%s2279_s0 + $0x80] sm:$0xff]  }
  0x35   :  { %v585_v55 = vadd.f32 %v521_v48, %v251_v40  ;;  %v253_v56 = vadd.f32 %v1714_v6, %v182_v49  ;;  %v452_v57 = vmul.f32 %v1325_v50, %v1709_v5  ;;  %v1201_v58 = vunpack.c.l.bf16 %v1575_v46 }
  0x36   :  { %v1456_v60 = vpack.c.bf16 %v648_v51, %v647_v47  ;;  %v586_v61 = vadd.f32 %v522_v52, %v252_v43  ;;  %v254_v62 = vadd.f32 %v1714_v6, %v183_v53  ;;  %v453_v63 = vmul.f32 %v1326_v54, %v1709_v5  ;;  %v1609_v53 = vld [vmem:[%s2282_s3 + $0x80] sm:$0xff]  }
  0x37   :  { %v649_v2 = vmax.f32 %v585_v55, 0.0  ;;  %v523_v3 = vadd.f32 %v1727_v13, %v452_v57  ;;  %v1202_v4 = vunpack.c.h.bf16 %v1575_v46  ;;  %v184_v7 = vmul.f32 %v1201_v58, %v1701_v1 }
  0x38   :  { %1634 = vst [vmem:[%s2285_s6 + $0x50] sm:$0xff] %v1456_v60   ;;  %v650_v8 = vmax.f32 %v586_v61, 0.0  ;;  %v524_v9 = vadd.f32 %v1727_v13, %v453_v63  ;;  %v1329_v10 = vunpack.c.l.bf16 %v1606_v59  ;;  %v1330_v11 = vunpack.c.h.bf16 %v1606_v59 }
  0x39   :  { %v587_v12 = vadd.f32 %v523_v3, %v253_v56  ;;  %v185_v14 = vmul.f32 %v1202_v4, %v1701_v1  ;;  %v255_v15 = vadd.f32 %v1714_v6, %v184_v7  ;;  %v1205_v16 = vunpack.c.l.bf16 %v1576_v0 }
  0x3a   :  { %v1461_v18 = vpack.c.bf16 %v650_v8, %v649_v2  ;;  %v588_v19 = vadd.f32 %v524_v9, %v254_v62  ;;  %v454_v20 = vmul.f32 %v1329_v10, %v1709_v5  ;;  %v455_v21 = vmul.f32 %v1330_v11, %v1709_v5  ;;  %v1579_v62 = vld [vmem:[%s2279_s0 + $0x88] sm:$0xff]  }
  0x3b   :  { %v651_v23 = vmax.f32 %v587_v12, 0.0  ;;  %v256_v24 = vadd.f32 %v1714_v6, %v185_v14  ;;  %v1206_v25 = vunpack.c.h.bf16 %v1576_v0  ;;  %v186_v26 = vmul.f32 %v1205_v16, %v1701_v1 }
  0x3c   :  { %1635 = vst [vmem:[%s2285_s6 + $0x58] sm:$0xff] %v1461_v18   ;;  %v652_v27 = vmax.f32 %v588_v19, 0.0  ;;  %v525_v28 = vadd.f32 %v1727_v13, %v454_v20  ;;  %v526_v29 = vadd.f32 %v1727_v13, %v455_v21  ;;  %v1333_v30 = vunpack.c.l.bf16 %v1607_v17  ;;  %v1580_v20 = vld [vmem:[%s2279_s0 + $0x90] sm:$0xff]  }
  0x3d   :  { %v187_v31 = vmul.f32 %v1206_v25, %v1701_v1  ;;  %v257_v32 = vadd.f32 %v1714_v6, %v186_v26  ;;  %v1334_v33 = vunpack.c.h.bf16 %v1607_v17  ;;  %v1209_v34 = vunpack.c.l.bf16 %v1577_v22 }
  0x3e   :  { %v1466_v36 = vpack.c.bf16 %v652_v27, %v651_v23  ;;  %v589_v37 = vadd.f32 %v525_v28, %v255_v15  ;;  %v590_v38 = vadd.f32 %v526_v29, %v256_v24  ;;  %v456_v39 = vmul.f32 %v1333_v30, %v1709_v5  ;;  %v1610_v15 = vld [vmem:[%s2282_s3 + $0x88] sm:$0xff]  }
  0x3f   :  { %v258_v40 = vadd.f32 %v1714_v6, %v187_v31  ;;  %v457_v41 = vmul.f32 %v1334_v33, %v1709_v5  ;;  %v1210_v42 = vunpack.c.h.bf16 %v1577_v22  ;;  %v188_v43 = vmul.f32 %v1209_v34, %v1701_v1  ;;  %v1611_v33 = vld [vmem:[%s2282_s3 + $0x90] sm:$0xff]  }
  0x40   :  { %1636 = vst [vmem:[%s2285_s6 + $0x60] sm:$0xff] %v1466_v36   ;;  %v653_v45 = vmax.f32 %v589_v37, 0.0  ;;  %v654_v46 = vmax.f32 %v590_v38, 0.0  ;;  %v527_v47 = vadd.f32 %v1727_v13, %v456_v39  ;;  %v1337_v48 = vunpack.c.l.bf16 %v1608_v35  ;;  %v1581_v38 = vld [vmem:[%s2279_s0 + $0x98] sm:$0xff]  }
  0x41   :  { %v528_v49 = vadd.f32 %v1727_v13, %v457_v41  ;;  %v189_v50 = vmul.f32 %v1210_v42, %v1701_v1  ;;  %v259_v51 = vadd.f32 %v1714_v6, %v188_v43  ;;  %v1338_v52 = vunpack.c.h.bf16 %v1608_v35 }
  0x42   :  { %v1471_v54 = vpack.c.bf16 %v654_v46, %v653_v45  ;;  %v591_v55 = vadd.f32 %v527_v47, %v257_v32  ;;  %v458_v56 = vmul.f32 %v1337_v48, %v1709_v5  ;;  %v1213_v57 = vunpack.c.l.bf16 %v1578_v44 }
  0x43   :  { %v592_v58 = vadd.f32 %v528_v49, %v258_v40  ;;  %v260_v59 = vadd.f32 %v1714_v6, %v189_v50  ;;  %v459_v60 = vmul.f32 %v1338_v52, %v1709_v5  ;;  %v1214_v61 = vunpack.c.h.bf16 %v1578_v44 }
  0x44   :  { %1637 = vst [vmem:[%s2285_s6 + $0x68] sm:$0xff] %v1471_v54   ;;  %v655_v63 = vmax.f32 %v591_v55, 0.0  ;;  %v529_v0 = vadd.f32 %v1727_v13, %v458_v56  ;;  %v190_v2 = vmul.f32 %v1213_v57, %v1701_v1  ;;  %v1341_v3 = vunpack.c.l.bf16 %v1609_v53 }
  0x45   :  { %v656_v4 = vmax.f32 %v592_v58, 0.0  ;;  %v530_v7 = vadd.f32 %v1727_v13, %v459_v60  ;;  %v191_v8 = vmul.f32 %v1214_v61, %v1701_v1  ;;  %v1342_v9 = vunpack.c.h.bf16 %v1609_v53  ;;  %v1582_v60 = vld [vmem:[%s2279_s0 + $0xa0] sm:$0xff]  }
  0x46   :  { %v593_v10 = vadd.f32 %v529_v0, %v259_v51  ;;  %v261_v11 = vadd.f32 %v1714_v6, %v190_v2  ;;  %v460_v12 = vmul.f32 %v1341_v3, %v1709_v5  ;;  %v1217_v14 = vunpack.c.l.bf16 %v1579_v62  ;;  %v1612_v51 = vld [vmem:[%s2282_s3 + $0x98] sm:$0xff]  }
  0x47   :  { %v1476_v16 = vpack.c.bf16 %v656_v4, %v655_v63  ;;  %v594_v17 = vadd.f32 %v530_v7, %v260_v59  ;;  %v262_v18 = vadd.f32 %v1714_v6, %v191_v8  ;;  %v461_v19 = vmul.f32 %v1342_v9, %v1709_v5  ;;  %v1613_v8 = vld [vmem:[%s2282_s3 + $0xa0] sm:$0xff]  }
  0x48   :  { %v657_v21 = vmax.f32 %v593_v10, 0.0  ;;  %v531_v22 = vadd.f32 %v1727_v13, %v460_v12  ;;  %v1218_v23 = vunpack.c.h.bf16 %v1579_v62  ;;  %v192_v24 = vmul.f32 %v1217_v14, %v1701_v1 }
  0x49   :  { %1638 = vst [vmem:[%s2285_s6 + $0x70] sm:$0xff] %v1476_v16   ;;  %v658_v25 = vmax.f32 %v594_v17, 0.0  ;;  %v532_v26 = vadd.f32 %v1727_v13, %v461_v19  ;;  %v1345_v27 = vunpack.c.l.bf16 %v1610_v15  ;;  %v1346_v28 = vunpack.c.h.bf16 %v1610_v15 }
  0x4a   :  { %v595_v29 = vadd.f32 %v531_v22, %v261_v11  ;;  %v193_v30 = vmul.f32 %v1218_v23, %v1701_v1  ;;  %v263_v31 = vadd.f32 %v1714_v6, %v192_v24  ;;  %v1221_v32 = vunpack.c.l.bf16 %v1580_v20 }
  0x4b   :  { %v1481_v34 = vpack.c.bf16 %v658_v25, %v657_v21  ;;  %v596_v35 = vadd.f32 %v532_v26, %v262_v18  ;;  %v462_v36 = vmul.f32 %v1345_v27, %v1709_v5  ;;  %v463_v37 = vmul.f32 %v1346_v28, %v1709_v5  ;;  %v1583_v18 = vld [vmem:[%s2279_s0 + $0xa8] sm:$0xff]  }
  0x4c   :  { %v659_v39 = vmax.f32 %v595_v29, 0.0  ;;  %v264_v40 = vadd.f32 %v1714_v6, %v193_v30  ;;  %v1222_v41 = vunpack.c.h.bf16 %v1580_v20  ;;  %v194_v42 = vmul.f32 %v1221_v32, %v1701_v1 }
  0x4d   :  { %1639 = vst [vmem:[%s2285_s6 + $0x78] sm:$0xff] %v1481_v34   ;;  %v660_v43 = vmax.f32 %v596_v35, 0.0  ;;  %v533_v44 = vadd.f32 %v1727_v13, %v462_v36  ;;  %v534_v45 = vadd.f32 %v1727_v13, %v463_v37  ;;  %v1349_v46 = vunpack.c.l.bf16 %v1611_v33  ;;  %v1584_v36 = vld [vmem:[%s2279_s0 + $0xb0] sm:$0xff]  }
  0x4e   :  { %v195_v47 = vmul.f32 %v1222_v41, %v1701_v1  ;;  %v265_v48 = vadd.f32 %v1714_v6, %v194_v42  ;;  %v1350_v49 = vunpack.c.h.bf16 %v1611_v33  ;;  %v1225_v50 = vunpack.c.l.bf16 %v1581_v38 }
  0x4f   :  { %v1486_v52 = vpack.c.bf16 %v660_v43, %v659_v39  ;;  %v597_v53 = vadd.f32 %v533_v44, %v263_v31  ;;  %v598_v54 = vadd.f32 %v534_v45, %v264_v40  ;;  %v464_v55 = vmul.f32 %v1349_v46, %v1709_v5  ;;  %v1614_v31 = vld [vmem:[%s2282_s3 + $0xa8] sm:$0xff]  }
  0x50   :  { %v266_v56 = vadd.f32 %v1714_v6, %v195_v47  ;;  %v465_v57 = vmul.f32 %v1350_v49, %v1709_v5  ;;  %v1226_v58 = vunpack.c.h.bf16 %v1581_v38  ;;  %v196_v59 = vmul.f32 %v1225_v50, %v1701_v1  ;;  %v1615_v49 = vld [vmem:[%s2282_s3 + $0xb0] sm:$0xff]  }
  0x51   :  { %1640 = vst [vmem:[%s2285_s6 + $0x80] sm:$0xff] %v1486_v52   ;;  %v661_v61 = vmax.f32 %v597_v53, 0.0  ;;  %v662_v62 = vmax.f32 %v598_v54, 0.0  ;;  %v535_v63 = vadd.f32 %v1727_v13, %v464_v55  ;;  %v1353_v0 = vunpack.c.l.bf16 %v1612_v51  ;;  %v1585_v54 = vld [vmem:[%s2279_s0 + $0xb8] sm:$0xff]  }
  0x52   :  { %v536_v2 = vadd.f32 %v1727_v13, %v465_v57  ;;  %v197_v3 = vmul.f32 %v1226_v58, %v1701_v1  ;;  %v267_v4 = vadd.f32 %v1714_v6, %v196_v59  ;;  %v1354_v7 = vunpack.c.h.bf16 %v1612_v51 }
  0x53   :  { %v1491_v9 = vpack.c.bf16 %v662_v62, %v661_v61  ;;  %v599_v10 = vadd.f32 %v535_v63, %v265_v48  ;;  %v466_v11 = vmul.f32 %v1353_v0, %v1709_v5  ;;  %v1229_v12 = vunpack.c.l.bf16 %v1582_v60 }
  0x54   :  { %v600_v14 = vadd.f32 %v536_v2, %v266_v56  ;;  %v268_v15 = vadd.f32 %v1714_v6, %v197_v3  ;;  %v467_v16 = vmul.f32 %v1354_v7, %v1709_v5  ;;  %v1230_v17 = vunpack.c.h.bf16 %v1582_v60 }
  0x55   :  { %1641 = vst [vmem:[%s2285_s6 + $0x88] sm:$0xff] %v1491_v9   ;;  %v663_v19 = vmax.f32 %v599_v10, 0.0  ;;  %v537_v20 = vadd.f32 %v1727_v13, %v466_v11  ;;  %v198_v21 = vmul.f32 %v1229_v12, %v1701_v1  ;;  %v1357_v22 = vunpack.c.l.bf16 %v1613_v8 }
  0x56   :  { %v664_v23 = vmax.f32 %v600_v14, 0.0  ;;  %v538_v24 = vadd.f32 %v1727_v13, %v467_v16  ;;  %v199_v25 = vmul.f32 %v1230_v17, %v1701_v1  ;;  %v1358_v26 = vunpack.c.h.bf16 %v1613_v8  ;;  %v1586_v16 = vld [vmem:[%s2279_s0 + $0xc0] sm:$0xff]  }
  0x57   :  { %v601_v27 = vadd.f32 %v537_v20, %v267_v4  ;;  %v269_v28 = vadd.f32 %v1714_v6, %v198_v21  ;;  %v468_v29 = vmul.f32 %v1357_v22, %v1709_v5  ;;  %v1233_v30 = vunpack.c.l.bf16 %v1583_v18  ;;  %v1616_v4 = vld [vmem:[%s2282_s3 + $0xb8] sm:$0xff]  }
  0x58   :  { %v1496_v32 = vpack.c.bf16 %v664_v23, %v663_v19  ;;  %v602_v33 = vadd.f32 %v538_v24, %v268_v15  ;;  %v270_v34 = vadd.f32 %v1714_v6, %v199_v25  ;;  %v469_v35 = vmul.f32 %v1358_v26, %v1709_v5  ;;  %v1617_v25 = vld [vmem:[%s2282_s3 + $0xc0] sm:$0xff]  }
  0x59   :  { %v665_v37 = vmax.f32 %v601_v27, 0.0  ;;  %v539_v38 = vadd.f32 %v1727_v13, %v468_v29  ;;  %v1234_v39 = vunpack.c.h.bf16 %v1583_v18  ;;  %v200_v40 = vmul.f32 %v1233_v30, %v1701_v1 }
  0x5a   :  { %1642 = vst [vmem:[%s2285_s6 + $0x90] sm:$0xff] %v1496_v32   ;;  %v666_v41 = vmax.f32 %v602_v33, 0.0  ;;  %v540_v42 = vadd.f32 %v1727_v13, %v469_v35  ;;  %v1361_v43 = vunpack.c.l.bf16 %v1614_v31  ;;  %v1362_v44 = vunpack.c.h.bf16 %v1614_v31 }
  0x5b   :  { %v603_v45 = vadd.f32 %v539_v38, %v269_v28  ;;  %v201_v46 = vmul.f32 %v1234_v39, %v1701_v1  ;;  %v271_v47 = vadd.f32 %v1714_v6, %v200_v40  ;;  %v1237_v48 = vunpack.c.l.bf16 %v1584_v36 }
  0x5c   :  { %v1501_v50 = vpack.c.bf16 %v666_v41, %v665_v37  ;;  %v604_v51 = vadd.f32 %v540_v42, %v270_v34  ;;  %v470_v52 = vmul.f32 %v1361_v43, %v1709_v5  ;;  %v471_v53 = vmul.f32 %v1362_v44, %v1709_v5  ;;  %v1587_v34 = vld [vmem:[%s2279_s0 + $0xc8] sm:$0xff]  }
  0x5d   :  { %v667_v55 = vmax.f32 %v603_v45, 0.0  ;;  %v272_v56 = vadd.f32 %v1714_v6, %v201_v46  ;;  %v1238_v57 = vunpack.c.h.bf16 %v1584_v36  ;;  %v202_v58 = vmul.f32 %v1237_v48, %v1701_v1 }
  0x5e   :  { %1643 = vst [vmem:[%s2285_s6 + $0x98] sm:$0xff] %v1501_v50   ;;  %v668_v59 = vmax.f32 %v604_v51, 0.0  ;;  %v541_v60 = vadd.f32 %v1727_v13, %v470_v52  ;;  %v542_v61 = vadd.f32 %v1727_v13, %v471_v53  ;;  %v1365_v62 = vunpack.c.l.bf16 %v1615_v49  ;;  %v1588_v52 = vld [vmem:[%s2279_s0 + $0xd0] sm:$0xff]  }
  0x5f   :  { %v203_v63 = vmul.f32 %v1238_v57, %v1701_v1  ;;  %v273_v0 = vadd.f32 %v1714_v6, %v202_v58  ;;  %v1366_v2 = vunpack.c.h.bf16 %v1615_v49  ;;  %v1241_v3 = vunpack.c.l.bf16 %v1585_v54 }
  0x60   :  { %v1506_v7 = vpack.c.bf16 %v668_v59, %v667_v55  ;;  %v605_v8 = vadd.f32 %v541_v60, %v271_v47  ;;  %v606_v9 = vadd.f32 %v542_v61, %v272_v56  ;;  %v472_v10 = vmul.f32 %v1365_v62, %v1709_v5  ;;  %v1618_v47 = vld [vmem:[%s2282_s3 + $0xc8] sm:$0xff]  }
  0x61   :  { %v274_v11 = vadd.f32 %v1714_v6, %v203_v63  ;;  %v473_v12 = vmul.f32 %v1366_v2, %v1709_v5  ;;  %v1242_v14 = vunpack.c.h.bf16 %v1585_v54  ;;  %v204_v15 = vmul.f32 %v1241_v3, %v1701_v1  ;;  %v1619_v2 = vld [vmem:[%s2282_s3 + $0xd0] sm:$0xff]  }
  0x62   :  { %1644 = vst [vmem:[%s2285_s6 + $0xa0] sm:$0xff] %v1506_v7   ;;  %v669_v17 = vmax.f32 %v605_v8, 0.0  ;;  %v670_v18 = vmax.f32 %v606_v9, 0.0  ;;  %v543_v19 = vadd.f32 %v1727_v13, %v472_v10  ;;  %v1369_v20 = vunpack.c.l.bf16 %v1616_v4  ;;  %v1589_v9 = vld [vmem:[%s2279_s0 + $0xd8] sm:$0xff]  }
  0x63   :  { %v544_v21 = vadd.f32 %v1727_v13, %v473_v12  ;;  %v205_v22 = vmul.f32 %v1242_v14, %v1701_v1  ;;  %v275_v23 = vadd.f32 %v1714_v6, %v204_v15  ;;  %v1370_v24 = vunpack.c.h.bf16 %v1616_v4  ;;  %v2158_v12 = vld [vmem:[%s2280_s1] ss:$0 sm:$0xff] }
  0x64   :  { %v1511_v26 = vpack.c.bf16 %v670_v18, %v669_v17  ;;  %v607_v27 = vadd.f32 %v543_v19, %v273_v0  ;;  %v474_v28 = vmul.f32 %v1369_v20, %v1709_v5  ;;  %v1245_v29 = vunpack.c.l.bf16 %v1586_v16  ;;  %v2170_v18 = vld [vmem:[%s2281_s2] ss:$0 sm:$0xff] }
  0x65   :  { %v608_v30 = vadd.f32 %v544_v21, %v274_v11  ;;  %v276_v31 = vadd.f32 %v1714_v6, %v205_v22  ;;  %v475_v32 = vmul.f32 %v1370_v24, %v1709_v5  ;;  %v1246_v33 = vunpack.c.h.bf16 %v1586_v16  ;;  %v1620_v22 = vld [vmem:[%s2282_s3 + $0xd8] sm:$0xff]  }
  0x66   :  { %1645 = vst [vmem:[%s2285_s6 + $0xa8] sm:$0xff] %v1511_v26   ;;  %v671_v35 = vmax.f32 %v607_v27, 0.0  ;;  %v545_v36 = vadd.f32 %v1727_v13, %v474_v28  ;;  %v206_v37 = vmul.f32 %v1245_v29, %v1701_v1  ;;  %v1373_v38 = vunpack.c.l.bf16 %v1617_v25 }
  0x67   :  { %v672_v39 = vmax.f32 %v608_v30, 0.0  ;;  %v546_v40 = vadd.f32 %v1727_v13, %v475_v32  ;;  %v207_v41 = vmul.f32 %v1246_v33, %v1701_v1  ;;  %v1374_v42 = vunpack.c.h.bf16 %v1617_v25 }
  0x68   :  { %v609_v43 = vadd.f32 %v545_v36, %v275_v23  ;;  %v277_v44 = vadd.f32 %v1714_v6, %v206_v37  ;;  %v476_v45 = vmul.f32 %v1373_v38, %v1709_v5  ;;  %v1249_v46 = vunpack.c.l.bf16 %v1587_v34 }
  0x69   :  { %v1516_v48 = vpack.c.bf16 %v672_v39, %v671_v35  ;;  %v610_v49 = vadd.f32 %v546_v40, %v276_v31  ;;  %v278_v50 = vadd.f32 %v1714_v6, %v207_v41  ;;  %v477_v51 = vmul.f32 %v1374_v42, %v1709_v5  ;;  %v1590_v31 = vld [vmem:[%s2279_s0 + $0xe0] sm:$0xff]  }
  0x6a   :  { %v673_v53 = vmax.f32 %v609_v43, 0.0  ;;  %v547_v54 = vadd.f32 %v1727_v13, %v476_v45  ;;  %v1250_v55 = vunpack.c.h.bf16 %v1587_v34  ;;  %v208_v56 = vmul.f32 %v1249_v46, %v1701_v1  ;;  %v2194_v34 = vld [vmem:[%s2284_s5] ss:$0 sm:$0xff] }
  0x6b   :  { %1646 = vst [vmem:[%s2285_s6 + $0xb0] sm:$0xff] %v1516_v48   ;;  %v674_v57 = vmax.f32 %v610_v49, 0.0  ;;  %v548_v58 = vadd.f32 %v1727_v13, %v477_v51  ;;  %v1377_v59 = vunpack.c.l.bf16 %v1618_v47  ;;  %v1378_v60 = vunpack.c.h.bf16 %v1618_v47  ;;  %v1621_v41 = vld [vmem:[%s2282_s3 + $0xe0] sm:$0xff]  }
  0x6c   :  { %v611_v61 = vadd.f32 %v547_v54, %v277_v44  ;;  %v209_v62 = vmul.f32 %v1250_v55, %v1701_v1  ;;  %v279_v63 = vadd.f32 %v1714_v6, %v208_v56  ;;  %v1253_v0 = vunpack.c.l.bf16 %v1588_v52 }
  0x6d   :  { %v1521_v3 = vpack.c.bf16 %v674_v57, %v673_v53  ;;  %v612_v4 = vadd.f32 %v548_v58, %v278_v50  ;;  %v478_v7 = vmul.f32 %v1377_v59, %v1709_v5  ;;  %v479_v8 = vmul.f32 %v1378_v60, %v1709_v5  ;;  %v1591_v50 = vld [vmem:[%s2279_s0 + $0xe8] sm:$0xff]  }
  0x6e   :  { %v675_v10 = vmax.f32 %v611_v61, 0.0  ;;  %v280_v1 = vadd.f32 %v1714_v6, %v209_v62  ;;  %v1254_v11 = vunpack.c.h.bf16 %v1588_v52  ;;  %v210_v14 = vmul.f32 %v2158_v12, %v1253_v0 }
  0x6f   :  { %1647 = vst [vmem:[%s2285_s6 + $0xb8] sm:$0xff] %v1521_v3   ;;  %v676_v5 = vmax.f32 %v612_v4, 0.0  ;;  %v549_v15 = vadd.f32 %v1727_v13, %v478_v7  ;;  %v550_v16 = vadd.f32 %v1727_v13, %v479_v8  ;;  %v1381_v17 = vunpack.c.l.bf16 %v1619_v2  ;;  %v2179_v13 = vld [vmem:[%s2283_s4] ss:$0 sm:$0xff]  ;;  %v1592_v7 = vld [vmem:[%s2279_s0 + $0xf0] sm:$0xff]  }
  0x70   :  { %v211_v6 = vmul.f32 %v2158_v12, %v1254_v11  ;;  %v281_v19 = vadd.f32 %v2170_v18, %v210_v14  ;;  %v1382_v20 = vunpack.c.h.bf16 %v1619_v2  ;;  %v1257_v21 = vunpack.c.l.bf16 %v1589_v9 }
  0x71   :  { %v1526_v23 = vpack.c.bf16 %v676_v5, %v675_v10  ;;  %v613_v24 = vadd.f32 %v549_v15, %v279_v63  ;;  %v614_v25 = vadd.f32 %v550_v16, %v280_v1  ;;  %v480_v26 = vmul.f32 %v2179_v13, %v1381_v17  ;;  %v1622_v63 = vld [vmem:[%s2282_s3 + $0xe8] sm:$0xff]  }
  0x72   :  { %v282_v27 = vadd.f32 %v2170_v18, %v211_v6  ;;  %v481_v28 = vmul.f32 %v2179_v13, %v1382_v20  ;;  %v1258_v29 = vunpack.c.h.bf16 %v1589_v9  ;;  %v212_v30 = vmul.f32 %v2158_v12, %v1257_v21  ;;  %v1623_v20 = vld [vmem:[%s2282_s3 + $0xf0] sm:$0xff]  }
  0x73   :  { %1648 = vst [vmem:[%s2285_s6 + $0xc0] sm:$0xff] %v1526_v23   ;;  %v677_v32 = vmax.f32 %v613_v24, 0.0  ;;  %v678_v33 = vmax.f32 %v614_v25, 0.0  ;;  %v551_v35 = vadd.f32 %v2194_v34, %v480_v26  ;;  %v1385_v36 = vunpack.c.l.bf16 %v1620_v22  ;;  %v1593_v25 = vld [vmem:[%s2279_s0 + $0xf8] sm:$0xff]  }
  0x74   :  { %v552_v37 = vadd.f32 %v2194_v34, %v481_v28  ;;  %v213_v38 = vmul.f32 %v2158_v12, %v1258_v29  ;;  %v283_v39 = vadd.f32 %v2170_v18, %v212_v30  ;;  %v1386_v40 = vunpack.c.h.bf16 %v1620_v22 }
  0x75   :  { %v1531_v42 = vpack.c.bf16 %v678_v33, %v677_v32  ;;  %v615_v43 = vadd.f32 %v551_v35, %v281_v19  ;;  %v482_v44 = vmul.f32 %v2179_v13, %v1385_v36  ;;  %v1261_v45 = vunpack.c.l.bf16 %v1590_v31 }
  0x76   :  { %v616_v46 = vadd.f32 %v552_v37, %v282_v27  ;;  %v284_v47 = vadd.f32 %v2170_v18, %v213_v38  ;;  %v483_v48 = vmul.f32 %v2179_v13, %v1386_v40  ;;  %v1262_v49 = vunpack.c.h.bf16 %v1590_v31 }
  0x77   :  { %1649 = vst [vmem:[%s2285_s6 + $0xc8] sm:$0xff] %v1531_v42   ;;  %v679_v51 = vmax.f32 %v615_v43, 0.0  ;;  %v553_v52 = vadd.f32 %v2194_v34, %v482_v44  ;;  %v214_v53 = vmul.f32 %v2158_v12, %v1261_v45  ;;  %v1389_v54 = vunpack.c.l.bf16 %v1621_v41 }
  0x78   :  { %v680_v55 = vmax.f32 %v616_v46, 0.0  ;;  %v554_v56 = vadd.f32 %v2194_v34, %v483_v48  ;;  %v215_v57 = vmul.f32 %v2158_v12, %v1262_v49  ;;  %v1390_v58 = vunpack.c.h.bf16 %v1621_v41 }
  0x79   :  { %v617_v59 = vadd.f32 %v553_v52, %v283_v39  ;;  %v285_v60 = vadd.f32 %v2170_v18, %v214_v53  ;;  %v484_v61 = vmul.f32 %v2179_v13, %v1389_v54  ;;  %v1265_v62 = vunpack.c.l.bf16 %v1591_v50  ;;  %v1624_v39 = vld [vmem:[%s2282_s3 + $0xf8] sm:$0xff]  }
  0x7a   :  { %v1536_v0 = vpack.c.bf16 %v680_v55, %v679_v51  ;;  %v618_v2 = vadd.f32 %v554_v56, %v284_v47  ;;  %v286_v3 = vadd.f32 %v2170_v18, %v215_v57  ;;  %v485_v4 = vmul.f32 %v2179_v13, %v1390_v58 }
  0x7b   :  { %v681_v8 = vmax.f32 %v617_v59, 0.0  ;;  %v555_v9 = vadd.f32 %v2194_v34, %v484_v61  ;;  %v1266_v10 = vunpack.c.h.bf16 %v1591_v50  ;;  %v216_v1 = vmul.f32 %v2158_v12, %v1265_v62 }
  0x7c   :  { %1650 = vst [vmem:[%s2285_s6 + $0xd0] sm:$0xff] %v1536_v0   ;;  %v682_v11 = vmax.f32 %v618_v2, 0.0  ;;  %v556_v14 = vadd.f32 %v2194_v34, %v485_v4  ;;  %v1393_v5 = vunpack.c.l.bf16 %v1622_v63  ;;  %v1394_v15 = vunpack.c.h.bf16 %v1622_v63 }
  0x7d   :  { %v619_v16 = vadd.f32 %v555_v9, %v285_v60  ;;  %v217_v17 = vmul.f32 %v2158_v12, %v1266_v10  ;;  %v287_v6 = vadd.f32 %v2170_v18, %v216_v1  ;;  %v1269_v19 = vunpack.c.l.bf16 %v1592_v7 }
  0x7e   :  { %v1541_v21 = vpack.c.bf16 %v682_v11, %v681_v8  ;;  %v620_v22 = vadd.f32 %v556_v14, %v286_v3  ;;  %v486_v23 = vmul.f32 %v2179_v13, %v1393_v5  ;;  %v487_v24 = vmul.f32 %v2179_v13, %v1394_v15 }
  0x7f   :  { %v683_v26 = vmax.f32 %v619_v16, 0.0  ;;  %v288_v27 = vadd.f32 %v2170_v18, %v217_v17  ;;  %v1270_v28 = vunpack.c.h.bf16 %v1592_v7  ;;  %v218_v29 = vmul.f32 %v2158_v12, %v1269_v19 }
  0x80   :  { %1651 = vst [vmem:[%s2285_s6 + $0xd8] sm:$0xff] %v1541_v21   ;;  %v684_v30 = vmax.f32 %v620_v22, 0.0  ;;  %v557_v31 = vadd.f32 %v2194_v34, %v486_v23  ;;  %v558_v32 = vadd.f32 %v2194_v34, %v487_v24  ;;  %v1397_v33 = vunpack.c.l.bf16 %v1623_v20 }
  0x81   :  { %v219_v35 = vmul.f32 %v2158_v12, %v1270_v28  ;;  %v289_v36 = vadd.f32 %v2170_v18, %v218_v29  ;;  %v1398_v37 = vunpack.c.h.bf16 %v1623_v20  ;;  %v1273_v38 = vunpack.c.l.bf16 %v1593_v25 }
  0x82   :  { %v1546_v40 = vpack.c.bf16 %v684_v30, %v683_v26  ;;  %v621_v41 = vadd.f32 %v557_v31, %v287_v6  ;;  %v622_v42 = vadd.f32 %v558_v32, %v288_v27  ;;  %v488_v43 = vmul.f32 %v2179_v13, %v1397_v33 }
  0x83   :  { %v290_v44 = vadd.f32 %v2170_v18, %v219_v35  ;;  %v489_v45 = vmul.f32 %v2179_v13, %v1398_v37  ;;  %v1274_v46 = vunpack.c.h.bf16 %v1593_v25  ;;  %v220_v47 = vmul.f32 %v2158_v12, %v1273_v38 }
  0x84   :  { %1652 = vst [vmem:[%s2285_s6 + $0xe0] sm:$0xff] %v1546_v40   ;;  %v685_v48 = vmax.f32 %v621_v41, 0.0  ;;  %v686_v49 = vmax.f32 %v622_v42, 0.0  ;;  %v559_v50 = vadd.f32 %v2194_v34, %v488_v43  ;;  %v1401_v51 = vunpack.c.l.bf16 %v1624_v39 }
  0x85   :  { %v560_v52 = vadd.f32 %v2194_v34, %v489_v45  ;;  %v221_v53 = vmul.f32 %v2158_v12, %v1274_v46  ;;  %v1402_v54 = vunpack.c.h.bf16 %v1624_v39  ;;  %v291_v57 = vadd.f32 %v2170_v18, %v220_v47 }
  0x86   :  { %v1551_v55 = vpack.c.bf16 %v686_v49, %v685_v48  ;;  %v623_v56 = vadd.f32 %v559_v50, %v289_v36  ;;  %v490_v58 = vmul.f32 %v2179_v13, %v1401_v51 }
  0x87   :  { %v624_v59 = vadd.f32 %v560_v52, %v290_v44  ;;  %v292_v60 = vadd.f32 %v2170_v18, %v221_v53  ;;  %v491_v61 = vmul.f32 %v2179_v13, %v1402_v54 }
  0x88   :  { %1653 = vst [vmem:[%s2285_s6 + $0xe8] sm:$0xff] %v1551_v55   ;;  %v687_v62 = vmax.f32 %v623_v56, 0.0  ;;  %v561_v63 = vadd.f32 %v2194_v34, %v490_v58 }
  0x89   :  { %v688_v12 = vmax.f32 %v624_v59, 0.0  ;;  %v562_v0 = vadd.f32 %v2194_v34, %v491_v61 }
  0x8a   :  { %v625_v2 = vadd.f32 %v561_v63, %v291_v57 }
  0x8b   :  { %v1556_v3 = vpack.c.bf16 %v688_v12, %v687_v62  ;;  %v626_v4 = vadd.f32 %v562_v0, %v292_v60 }
  0x8c   :  { %v689_v7 = vmax.f32 %v625_v2, 0.0 }
  0x8d   :  { %1654 = vst [vmem:[%s2285_s6 + $0xf0] sm:$0xff] %v1556_v3   ;;  %v690_v18 = vmax.f32 %v626_v4, 0.0 }
  0x8f   :  { %v1561_v13 = vpack.c.bf16 %v690_v18, %v689_v7 }
  0x91   :  { %1655 = vst [vmem:[%s2285_s6 + $0xf8] sm:$0xff] %v1561_v13  }

// kernel: bottleneck_forward.6
= control target key start
LH: loop header
LB: loop body
LE: loop exit
PB: predicated region body
PF: predicated region fallthrough
CT: control target
= control target key end

     0   :  { %s4063_s18 = smov 0   ;;  %s4065_s19 = smov 0   ;;  %s5259_s0 = inlined_call_operand.vmem [shape: bf16[512,128], index: 0, kind: input, shape index: {}]   ;;  %s5260_s1 = inlined_call_operand.vmem [shape: f32[1,128], index: 1, kind: input, shape index: {}]   ;;  %s5261_s2 = inlined_call_operand.vmem [shape: f32[1,128], index: 2, kind: input, shape index: {}]   ;;  %s5262_s3 = inlined_call_operand.vmem [shape: bf16[1152,128], index: 3, kind: input, shape index: {}]   ;;  %s5263_s4 = inlined_call_operand.vmem [shape: bf16[512,128], index: 4, kind: output, shape index: {0}]   ;;  %s5264_s5 = inlined_call_operand.vmem [shape: f32[2,8,128], index: 5, kind: output, shape index: {1}]  }
   0x1   :  { %s4067_s20 = smov 0  }
   0x2 LB: > { %s28_s21 = sadd.s32 1, %s4026_s19  ;;  %p3053_p0 = scmp.ge.s32.totalorder %s4030_s20, 1  ;;  %s4030_s20 = sphi %s4067_s20, %s16_s20   ;;  %s4026_s19 = sphi %s4065_s19, %s5268_s19   ;;  %s4022_s18 = sphi %s4063_s18, %s5267_s18  }
   0x3   : > { %p30_p1 = scmp.ge.s32.totalorder %s28_s21, 2  ;;  %p216_p2 = scmp.lt.s32.totalorder %s4030_s20, 3 }
   0x5   : > { %s5270_s21 = smov (%p30_p1, %s28_s21), 0  ;;  %p217_p3 = pnand %p3053_p0, %p216_p2 }
   0x6   : > { %v3934_v0 = vld [vmem:[%s5262_s3 + $0x40] sm:$0xff] (!%p217_p3)   ;;  %v4032_v2 = vmov (!%p217_p3), 0   ;;  %v3936_v4 = vld [vmem:[%s5262_s3 + $0x48] sm:$0xff] (!%p217_p3)   ;;  %s3054_s28 = sshll.u32 (!%p217_p3), %s4022_s18, 5  ;;  %v3938_v6 = vld [vmem:[%s5262_s3 + $0x50] sm:$0xff] (!%p217_p3)   ;;  %vm623_vm1 = vcmask (!%p217_p3), 1040384  }
   0x7   : > { %220 = sbr.rel (%p217_p3) target bundleno = 567 (0x237), region = 36  ;;  %v3935_v1 = vld [vmem:[%s5262_s3] sm:$0xff] (!%p217_p3)   ;;  %v4090_v3 = vrot.slane (!%p217_p3), %v4032_v2, 1  ;;  %3373 = vmatprep.subr.bf16.mxu0 (!%p217_p3), %v3934_v0  ;;  %3893 = vmatprep.subr.bf16.mxu1 (!%p217_p3), %v3934_v0  ;;  %v3937_v5 = vld [vmem:[%s5262_s3 + $0x8] sm:$0xff] (!%p217_p3)   ;;  %p259_p4 = scmp.lt.s32.totalorder (!%p217_p3), %s3054_s28, 63  ;;  %v3939_v7 = vld [vmem:[%s5262_s3 + $0x10] sm:$0xff] (!%p217_p3)  }
   0x8   : > { %3374 = vmatpush3.bf16.msra.mxu0 (!%p217_p3), %v3935_v1  ;;  %3901 = vmatpush3.bf16.msra.mxu1 (!%p217_p3), %v3935_v1  ;;  %v3940_v8 = vld [vmem:[%s5262_s3 + $0x58] sm:$0xff] (!%p217_p3)   ;;  %v3942_v10 = vld [vmem:[%s5262_s3 + $0x60] sm:$0xff] (!%p217_p3)   ;;  %v3944_v12 = vld [vmem:[%s5262_s3 + $0x68] sm:$0xff] (!%p217_p3)   ;;  %vm624_vm0 = vsmask.f32 (!%p217_p3), 256  ;;  %vm1005_vm4 = vcmask (!%p217_p3), 1046528  }
   0x9   : > { %3375 = vmatprep.subr.bf16.mxu0 (!%p217_p3), %v3936_v4  ;;  %3894 = vmatprep.subr.bf16.mxu1 (!%p217_p3), %v3936_v4  ;;  %v3941_v9 = vld [vmem:[%s5262_s3 + $0x18] sm:$0xff] (!%p217_p3)   ;;  %v3943_v11 = vld [vmem:[%s5262_s3 + $0x20] sm:$0xff] (!%p217_p3)   ;;  %v3945_v18 = vld [vmem:[%s5262_s3 + $0x28] sm:$0xff] (!%p217_p3)   ;;  %vm706_vm3 = vsmask.f32 (!%p217_p3), 7424  ;;  %p277_p5 = scmp.lt.s32.totalorder (!%p217_p3), %s4022_s18, 1 }
   0xa   : > { %1873 = vmatprep.mubr.bf16.mxu0 (!%p217_p3), %v4090_v3  ;;  %v4135_v14 = vld [vmem:[%s5260_s1] ss:$0 sm:$0xff] (!%p217_p3)  ;;  %v3946_v21 = vld [vmem:[%s5262_s3 + $0x70] sm:$0xff] (!%p217_p3)   ;;  %v3948_v27 = vld [vmem:[%s5262_s3 + $0x78] sm:$0xff] (!%p217_p3)   ;;  %vm2914_vm5 = vcmask (!%p217_p3), 1041408  }
   0xb   : > { %v4140_v17 = vld [vmem:[%s5261_s2] ss:$0 sm:$0xff] (!%p217_p3)  ;;  %v3947_v24 = vld [vmem:[%s5262_s3 + $0x30] sm:$0xff] (!%p217_p3)   ;;  %v3949_v30 = vld [vmem:[%s5262_s3 + $0x38] sm:$0xff] (!%p217_p3)  }
   0xc   : > { %3376 = vmatpush3.bf16.msra.mxu0 (!%p217_p3), %v3937_v5  ;;  %3902 = vmatpush3.bf16.msra.mxu1 (!%p217_p3), %v3937_v5  ;;  %v3950_v35 = vld [vmem:[%s5262_s3 + $0xc0] sm:$0xff] (!%p217_p3)   ;;  %vm4177_vm2 = vmand (!%p217_p3), %vm623_vm1, %vm624_vm0  ;;  %v3959_v60 = vld [vmem:[%s5262_s3 + $0x148] sm:$0xff] (!%p217_p3)  }
   0xd   : > { %3377 = vmatprep.subr.bf16.mxu0 (!%p217_p3), %v3938_v6  ;;  %3895 = vmatprep.subr.bf16.mxu1 (!%p217_p3), %v3938_v6  ;;  %v3951_v41 = vld [vmem:[%s5262_s3 + $0x140] sm:$0xff] (!%p217_p3)  }
   0xe   : > { %s5272_s28 = smov (!%p259_p4, %s3054_s28), 63  ;;  %v3953_v52 = vld [vmem:[%s5262_s3 + $0x100] sm:$0xff]   ;;  %s5274_s18 = smov (!%p277_p5, %s4022_s18), 1 }
   0xf   : > { %s3055_s12 = sshll.u32 %s5272_s28, 2  ;;  %s3058_s28 = sshll.u32 %s5274_s18, 3 }
  0x10   : > { %3378 = vmatpush3.bf16.msra.mxu0 %v3939_v7  ;;  %3903 = vmatpush3.bf16.msra.mxu1 %v3939_v7  ;;  %s4123_s23 = scalar_lea.vmem %s5259_s0, %s3055_s12  ;;  %s5179_s9 = scalar_lea.vmem %s5263_s4, %s3055_s12 }
  0x11   : > { %3379 = vmatprep.subr.bf16.mxu0 %v3940_v8  ;;  %3896 = vmatprep.subr.bf16.mxu1 %v3940_v8  ;;  %v3353_v13 = vld [vmem:[%s4123_s23 + $0x58] sm:$0xff]   ;;  %v3200_v28 = vld [vmem:[%s4123_s23] sm:$0xff]   ;;  %v3343_v55 = vld [vmem:[%s4123_s23 + $0x8] sm:$0xff]   ;;  %s283_s11 = scalar_lea.vmem %s5264_s5, %s3058_s28 }
  0x12   : > { %v3245_v15 = vunpack.c.l.bf16 %v3353_v13  ;;  %v3246_v16 = vunpack.c.h.bf16 %v3353_v13  ;;  %v3354_v29 = vld [vmem:[%s4123_s23 + $0x60] sm:$0xff]   ;;  %v3201_v32 = vunpack.c.l.bf16 %v3200_v28  ;;  %v3202_v33 = vunpack.c.h.bf16 %v3200_v28  ;;  %v3355_v56 = vld [vmem:[%s4123_s23 + $0x68] sm:$0xff]  }
  0x13   : > { %v3249_v34 = vunpack.c.l.bf16 %v3354_v29  ;;  %v3250_v36 = vunpack.c.h.bf16 %v3354_v29  ;;  %v3205_v61 = vunpack.c.l.bf16 %v3343_v55  ;;  %v3206_v0 = vunpack.c.h.bf16 %v3343_v55  ;;  %v3961_v8 = vld [vmem:[%s5262_s3 + $0x108] sm:$0xff]  }
  0x14   : > { %3380 = vmatpush3.bf16.msra.mxu0 %v3941_v9  ;;  %3904 = vmatpush3.bf16.msra.mxu1 %v3941_v9  ;;  %v382_v19 = vmul.f32 %v3245_v15, %v4135_v14  ;;  %v383_v20 = vmul.f32 %v3246_v16, %v4135_v14  ;;  %v360_v39 = vmul.f32 %v3201_v32, %v4135_v14  ;;  %v3253_v1 = vunpack.c.l.bf16 %v3355_v56 }
  0x15   : > { %3381 = vmatprep.subr.bf16.mxu0 %v3942_v10  ;;  %3897 = vmatprep.subr.bf16.mxu1 %v3942_v10  ;;  %v361_v40 = vmul.f32 %v3202_v33, %v4135_v14  ;;  %v384_v42 = vmul.f32 %v3249_v34, %v4135_v14  ;;  %v385_v43 = vmul.f32 %v3250_v36, %v4135_v14  ;;  %v3967_v34 = vld [vmem:[%s5262_s3 + $0x150] sm:$0xff]  }
  0x16   : > { %v421_v22 = vadd.f32 %v4140_v17, %v382_v19  ;;  %v422_v23 = vadd.f32 %v4140_v17, %v383_v20  ;;  %v399_v45 = vadd.f32 %v4140_v17, %v360_v39  ;;  %v3952_v19 = vld [vmem:[%s5262_s3 + $0x80] sm:$0xff]   ;;  %v3955_v39 = vld [vmem:[%s5262_s3 + $0x88] sm:$0xff]  }
  0x17   : > { %v400_v46 = vadd.f32 %v4140_v17, %v361_v40  ;;  %v423_v48 = vadd.f32 %v4140_v17, %v384_v42  ;;  %v424_v49 = vadd.f32 %v4140_v17, %v385_v43 }
  0x18   : > { %3382 = vmatpush3.bf16.msra.mxu0 %v3943_v11  ;;  %3905 = vmatpush3.bf16.msra.mxu1 %v3943_v11  ;;  %v453_v25 = vmax.f32 %v421_v22, 0.0  ;;  %v454_v26 = vmax.f32 %v422_v23, 0.0  ;;  %v431_v53 = vmax.f32 %v399_v45, 0.0  ;;  %v362_v11 = vmul.f32 %v3205_v61, %v4135_v14  ;;  %v3969_v45 = vld [vmem:[%s5262_s3 + $0x110] sm:$0xff]  }
  0x19   : > { %3383 = vmatprep.subr.bf16.mxu0 %v3944_v12  ;;  %3898 = vmatprep.subr.bf16.mxu1 %v3944_v12  ;;  %v432_v54 = vmax.f32 %v400_v46, 0.0  ;;  %v455_v58 = vmax.f32 %v423_v48, 0.0  ;;  %v456_v59 = vmax.f32 %v424_v49, 0.0  ;;  %v363_v12 = vmul.f32 %v3206_v0, %v4135_v14 }
  0x1a   : > { %v474_v31 = vpack.c.bf16 %v454_v26, %v453_v25  ;;  %v386_v23 = vmul.f32 %v3253_v1, %v4135_v14  ;;  %v3954_v26 = vld [vmem:[%s5262_s3 + $0xc8] sm:$0xff]  }
  0x1b   : > { %v463_v63 = vpack.c.bf16 %v432_v54, %v431_v53  ;;  %v475_v7 = vpack.c.bf16 %v456_v59, %v455_v58  ;;  %v402_v22 = vadd.f32 %v4140_v17, %v363_v12 }
  0x1c   : > { %3384 = vmatpush3.bf16.msra.mxu0 %v3945_v18  ;;  %3906 = vmatpush3.bf16.msra.mxu1 %v3945_v18  ;;  %v557_v37 = vshrl.u32 %v474_v31, 16  ;;  %v560_v38 = vshll.u32 %v474_v31, 16  ;;  %v3254_v18 = vunpack.c.h.bf16 %v3355_v56  ;;  %v425_v43 = vadd.f32 %v4140_v17, %v386_v23 }
  0x1d   : > { %3385 = vmatprep.subr.bf16.mxu0 %v3946_v21  ;;  %3899 = vmatprep.subr.bf16.mxu1 %v3946_v21  ;;  %v480_v9 = vshrl.u32 %v463_v63, 16  ;;  %v483_v10 = vshll.u32 %v463_v63, 16  ;;  %v564_v15 = vshrl.u32 %v475_v7, 16  ;;  %v567_v16 = vshll.u32 %v475_v7, 16 }
  0x1e   : > { %v559_v44 = vrot.slane %v557_v37, 7  ;;  %v401_v21 = vadd.f32 %v4140_v17, %v362_v11  ;;  %v387_v28 = vmul.f32 %v3254_v18, %v4135_v14  ;;  %v434_v33 = vmax.f32 %v402_v22, 0.0 }
  0x1f   : > { %v482_v20 = vrot.slane %v480_v9, 7 }
  0x20   : > { %3386 = vmatpush3.bf16.msra.mxu0 %v3947_v24  ;;  %3907 = vmatpush3.bf16.msra.mxu1 %v3947_v24  ;;  %v562_v50 = vor.u32 %v560_v38, %v559_v44  ;;  %v4185_v51 = vsel %vm4177_vm2, %v559_v44, 0  ;;  %v3344_v24 = vld [vmem:[%s4123_s23 + $0x10] sm:$0xff]   ;;  %v433_v32 = vmax.f32 %v401_v21, 0.0  ;;  %v426_v59 = vadd.f32 %v4140_v17, %v387_v28 }
  0x21   : > { %3387 = vmatprep.subr.bf16.mxu0 %v3948_v27  ;;  %3900 = vmatprep.subr.bf16.mxu1 %v3948_v27  ;;  %v855_v57 = vshll.u32 %v4185_v51, 16  ;;  %v566_v27 = vrot.slane %v564_v15, 7  ;;  %v3209_v29 = vunpack.c.l.bf16 %v3344_v24  ;;  %v4221_v31 = vsel %vm4177_vm2, %v482_v20, 0  ;;  %v3356_v44 = vld [vmem:[%s4123_s23 + $0x70] sm:$0xff]  }
  0x22   : > { %v4198_v62 = vsel %vm4177_vm2, 0, %v562_v50  ;;  %v723_v36 = vshll.u32 %v4221_v31, 16  ;;  %v464_v42 = vpack.c.bf16 %v434_v33, %v433_v32  ;;  %v3210_v0 = vunpack.c.h.bf16 %v3344_v24 }
  0x23   : > { %v848_v4 = vshrl.u32 %v4198_v62, 16  ;;  %v850_v5 = vshll.u32 %v4198_v62, 16  ;;  %v857_v6 = vrot.slane %v855_v57, 1  ;;  %v569_v37 = vor.u32 %v567_v16, %v566_v27  ;;  %v3956_v57 = vld [vmem:[%s5262_s3 + $0xd0] sm:$0xff]  }
  0x24   : > { %3388 = vmatpush3.bf16.msra.mxu0 %v3949_v30  ;;  %3908 = vmatpush3.bf16.msra.mxu1 %v3949_v30  ;;  %v485_v30 = vor.u32 %v483_v10, %v482_v20  ;;  %v4232_v38 = vsel %vm4177_vm2, %v566_v27, 0  ;;  %v725_v49 = vrot.slane %v723_v36, 1  ;;  %v487_v55 = vshrl.u32 %v464_v42, 16  ;;  %v3958_v10 = vld [vmem:[%s5262_s3 + $0xd8] sm:$0xff]  }
  0x25   : > { %3485 = vmatprep.subr.bf16.mxu1 %v3950_v35  ;;  %3597 = vmatprep.subr.bf16.mxu0 %v3951_v41  ;;  %v852_v13 = vrot.slane %v850_v5, 1  ;;  %v867_v41 = vshll.u32 %v4232_v38, 16  ;;  %v4253_v50 = vsel %vm4177_vm2, 0, %v569_v37  ;;  %v490_v58 = vshll.u32 %v464_v42, 16  ;;  %v3957_v5 = vld [vmem:[%s5262_s3 + $0x90] sm:$0xff]   ;;  %v3345_v20 = vld [vmem:[%s4123_s23 + $0x18] sm:$0xff]  }
  0x26   : > { %v4240_v40 = vsel %vm4177_vm2, 0, %v485_v30  ;;  %v862_v53 = vshll.u32 %v4253_v50, 16  ;;  %v489_v63 = vrot.slane %v487_v55, 7  ;;  %v364_v1 = vmul.f32 %v3209_v29, %v4135_v14  ;;  %v3975_v37 = vld [vmem:[%s5262_s3 + $0x118] sm:$0xff]   ;;  %v3962_v42 = vld [vmem:[%s5262_s3 + $0xe0] sm:$0xff]  }
  0x27   : > { %1874 = vmatmul.mubr.bf16.vlgmr.msra.gmra.mrb[0].mxu0 %v4032_v2  ;;  %v853_v25 = vor.u32 %v852_v13, %v848_v4  ;;  %v716_v46 = vshrl.u32 %v4240_v40, 16  ;;  %v718_v48 = vshll.u32 %v4240_v40, 16  ;;  %v869_v54 = vrot.slane %v867_v41, 1 }
  0x28   : > { %3598 = vmatpush3.bf16.msra.mxu0 %v3953_v52  ;;  %v860_v52 = vshrl.u32 %v4253_v50, 16  ;;  %v864_v61 = vrot.slane %v862_v53, 1  ;;  %v3257_v7 = vunpack.c.l.bf16 %v3356_v44  ;;  %v492_v11 = vor.u32 %v490_v58, %v489_v63  ;;  %v3976_v53 = vld [vmem:[%s5262_s3 + $0x160] sm:$0xff]  }
  0x29   : > { %3599 = vmatprep.subr.bf16.mxu0 %v3959_v60  ;;  %v4227_v35 = vsel %vm706_vm3, %v853_v25, %v857_v6  ;;  %v720_v56 = vrot.slane %v718_v48, 1  ;;  %v457_v60 = vmax.f32 %v425_v43, 0.0  ;;  %v458_v6 = vmax.f32 %v426_v59, 0.0  ;;  %v3974_v25 = vld [vmem:[%s5262_s3 + $0x158] sm:$0xff]   ;;  %v3978_v59 = vld [vmem:[%s5262_s3 + $0x120] sm:$0xff]  }
  0x2a   : > { %1969 = vmatprep.mubr.bf16.mxu1 %v4227_v35  ;;  %v865_v9 = vor.u32 %v864_v61, %v860_v52  ;;  %v4270_v12 = vsel %vm4177_vm2, %v489_v63, 0  ;;  %v365_v13 = vmul.f32 %v3210_v0, %v4135_v14  ;;  %v4285_v22 = vsel %vm4177_vm2, 0, %v492_v11 }
  0x2b   : > { %1970 = vmatmul.mubr.bf16.vlgmr.msra.gmra.mrb[0].mxu1 %v4198_v62  ;;  %v721_v4 = vor.u32 %v720_v56, %v716_v46  ;;  %v735_v16 = vshll.u32 %v4270_v12, 16  ;;  %v476_v18 = vpack.c.bf16 %v458_v6, %v457_v60  ;;  %v388_v24 = vmul.f32 %v3257_v7, %v4135_v14 }
  0x2c   : > { %3600 = vmatpush3.bf16.msra.mxu0 %v3961_v8  ;;  %3486 = vmatpush3.bf16.msra.mxu1 %v3952_v19  ;;  %v3258_v8 = vunpack.c.h.bf16 %v3356_v44  ;;  %v403_v19 = vadd.f32 %v4140_v17, %v364_v1  ;;  %v4281_v21 = vsel %vm706_vm3, %v865_v9, %v869_v54  ;;  %v404_v23 = vadd.f32 %v4140_v17, %v365_v13  ;;  %v3965_v13 = vld [vmem:[%s5262_s3 + $0xa8] sm:$0xff]  }
  0x2d   : > { %3601 = vmatprep.subr.bf16.mxu0 %v3967_v34  ;;  %3487 = vmatprep.subr.bf16.mxu1 %v3954_v26  ;;  %v4274_v15 = vsel %vm706_vm3, %v721_v4, %v725_v49  ;;  %v3960_v26 = vld [vmem:[%s5262_s3 + $0x98] sm:$0xff]   ;;  %v728_v27 = vshrl.u32 %v4285_v22, 16  ;;  %v730_v28 = vshll.u32 %v4285_v22, 16  ;;  %v737_v29 = vrot.slane %v735_v16, 1 }
  0x2e   : > { %1881 = vmatprep.mubr.bf16.mxu0 %v4274_v15  ;;  %1977 = vmatprep.mubr.bf16.mxu1 %v4281_v21  ;;  %v571_v30 = vshrl.u32 %v476_v18, 16  ;;  %v574_v32 = vshll.u32 %v476_v18, 16  ;;  %v435_v33 = vmax.f32 %v403_v19, 0.0  ;;  %v436_v34 = vmax.f32 %v404_v23, 0.0 }
  0x2f   : > { %1882 = vmatmul.mubr.bf16.gmra.mrb[4].mxu0 %v4240_v40  ;;  %v389_v36 = vmul.f32 %v3258_v8, %v4135_v14  ;;  %v427_v43 = vadd.f32 %v4140_v17, %v388_v24  ;;  %v3213_v44 = vunpack.c.l.bf16 %v3345_v20  ;;  %v3214_v49 = vunpack.c.h.bf16 %v3345_v20 }
  0x30   : > { %3602 = vmatpush3.bf16.msra.mxu0 %v3969_v45  ;;  %3488 = vmatpush3.bf16.msra.mxu1 %v3955_v39  ;;  %v732_v39 = vrot.slane %v730_v28, 1  ;;  %v573_v41 = vrot.slane %v571_v30, 7  ;;  %v3346_v45 = vld [vmem:[%s4123_s23 + $0x20] sm:$0xff]   ;;  %v465_v46 = vpack.c.bf16 %v436_v34, %v435_v33  ;;  %v3981_v28 = vld [vmem:[%s5262_s3 + $0x128] sm:$0xff]  }
  0x31   : > { %3489 = vmatprep.subr.bf16.mxu1 %v3956_v57  ;;  %3603 = vmatprep.subr.bf16.mxu0 %v3974_v25  ;;  %v428_v48 = vadd.f32 %v4140_v17, %v389_v36  ;;  %v3217_v52 = vunpack.c.l.bf16 %v3346_v45  ;;  %v3963_v57 = vld [vmem:[%s5262_s3 + $0xa0] sm:$0xff]   ;;  %v459_v58 = vmax.f32 %v427_v43, 0.0  ;;  %v366_v6 = vmul.f32 %v3213_v44, %v4135_v14 }
  0x32   : > { %v733_v54 = vor.u32 %v732_v39, %v728_v27  ;;  %v576_v55 = vor.u32 %v574_v32, %v573_v41  ;;  %v4315_v56 = vsel %vm4177_vm2, %v573_v41, 0  ;;  %v494_v61 = vshrl.u32 %v465_v46, 16  ;;  %v3980_v27 = vld [vmem:[%s5262_s3 + $0x168] sm:$0xff]  }
  0x33   : > { %1978 = vmatmul.mubr.bf16.gmra.mrb[4].mxu1 %v4253_v50  ;;  %v879_v60 = vshll.u32 %v4315_v56, 16  ;;  %v497_v63 = vshll.u32 %v465_v46, 16  ;;  %v460_v0 = vmax.f32 %v428_v48, 0.0  ;;  %v367_v7 = vmul.f32 %v3214_v49, %v4135_v14  ;;  %v3970_v48 = vld [vmem:[%s5262_s3 + $0xf8] sm:$0xff]  }
  0x34   : > { %3490 = vmatpush3.bf16.msra.mxu1 %v3957_v5  ;;  %3604 = vmatpush3.bf16.msra.mxu0 %v3975_v37  ;;  %v4325_v1 = vsel %vm706_vm3, %v733_v54, %v737_v29  ;;  %v4329_v4 = vsel %vm4177_vm2, 0, %v576_v55  ;;  %v3964_v5 = vld [vmem:[%s5262_s3 + $0xe8] sm:$0xff]   ;;  %v496_v11 = vrot.slane %v494_v61, 7  ;;  %v405_v18 = vadd.f32 %v4140_v17, %v366_v6  ;;  %v3966_v37 = vld [vmem:[%s5262_s3 + $0xf0] sm:$0xff]  }
  0x35   : > { %3491 = vmatprep.subr.bf16.mxu1 %v3958_v10  ;;  %3605 = vmatprep.subr.bf16.mxu0 %v3976_v53  ;;  %v872_v8 = vshrl.u32 %v4329_v4, 16  ;;  %v874_v9 = vshll.u32 %v4329_v4, 16  ;;  %v881_v10 = vrot.slane %v879_v60, 1  ;;  %v477_v16 = vpack.c.bf16 %v460_v0, %v459_v58 }
  0x36   : > { %1889 = vmatprep.mubr.bf16.mxu0 %v4325_v1  ;;  %v406_v19 = vadd.f32 %v4140_v17, %v367_v7  ;;  %v3218_v20 = vunpack.c.h.bf16 %v3346_v45  ;;  %v499_v24 = vor.u32 %v497_v63, %v496_v11  ;;  %v4347_v25 = vsel %vm4177_vm2, %v496_v11, 0  ;;  %v3968_v45 = vld [vmem:[%s5262_s3 + $0xb0] sm:$0xff]  }
  0x37   : > { %1890 = vmatmul.mubr.bf16.gmra.mrb[8].mxu0 %v4285_v22  ;;  %v876_v23 = vrot.slane %v874_v9, 1  ;;  %v747_v29 = vshll.u32 %v4347_v25, 16  ;;  %v578_v30 = vshrl.u32 %v477_v16, 16  ;;  %v581_v32 = vshll.u32 %v477_v16, 16 }
  0x38   : > { %3492 = vmatpush3.bf16.msra.mxu1 %v3960_v26  ;;  %v368_v26 = vmul.f32 %v3217_v52, %v4135_v14  ;;  %3606 = vmatpush3.bf16.msra.mxu0 %v3978_v59  ;;  %v437_v33 = vmax.f32 %v405_v18, 0.0  ;;  %v4359_v36 = vsel %vm4177_vm2, 0, %v499_v24  ;;  %v438_v39 = vmax.f32 %v406_v19, 0.0  ;;  %v3347_v59 = vld [vmem:[%s4123_s23 + $0x28] sm:$0xff]   ;;  %v3971_v18 = vld [vmem:[%s5262_s3 + $0xb8] sm:$0xff]  }
  0x39   : > { %3493 = vmatprep.subr.bf16.mxu1 %v3962_v42  ;;  %v877_v34 = vor.u32 %v876_v23, %v872_v8  ;;  %v369_v41 = vmul.f32 %v3218_v20, %v4135_v14  ;;  %3607 = vmatprep.subr.bf16.mxu0 %v3980_v27  ;;  %v740_v42 = vshrl.u32 %v4359_v36, 16  ;;  %v742_v43 = vshll.u32 %v4359_v36, 16  ;;  %v3984_v8 = vld [vmem:[%s5262_s3 + $0x170] sm:$0xff]  }
  0x3a   : > { %v580_v44 = vrot.slane %v578_v30, 7  ;;  %v466_v49 = vpack.c.bf16 %v438_v39, %v437_v33  ;;  %v407_v52 = vadd.f32 %v4140_v17, %v368_v26  ;;  %v749_v55 = vrot.slane %v747_v29, 1  ;;  %v3985_v23 = vld [vmem:[%s5262_s3 + $0x130] sm:$0xff]  }
  0x3b   : > { %v4371_v46 = vsel %vm706_vm3, %v877_v34, %v881_v10  ;;  %v408_v53 = vadd.f32 %v4140_v17, %v369_v41  ;;  %v744_v54 = vrot.slane %v742_v43, 1  ;;  %v3221_v20 = vunpack.c.l.bf16 %v3347_v59  ;;  %v3348_v43 = vld [vmem:[%s4123_s23 + $0x30] sm:$0xff]  }
  0x3c   : > { %3494 = vmatpush3.bf16.msra.mxu1 %v3963_v57  ;;  %3608 = vmatpush3.bf16.msra.mxu0 %v3981_v28  ;;  %v583_v57 = vor.u32 %v581_v32, %v580_v44  ;;  %v4381_v58 = vsel %vm4177_vm2, %v580_v44, 0  ;;  %v501_v61 = vshrl.u32 %v466_v49, 16  ;;  %v504_v63 = vshll.u32 %v466_v49, 16  ;;  %v3972_v28 = vld [vmem:[%s5262_s3 + $0x1c0] sm:$0xff]  }
  0x3d   : > { %3495 = vmatprep.subr.bf16.mxu1 %v3964_v5  ;;  %1985 = vmatprep.mubr.bf16.mxu1 %v4371_v46  ;;  %v891_v60 = vshll.u32 %v4381_v58, 16  ;;  %v439_v0 = vmax.f32 %v407_v52, 0.0  ;;  %v745_v5 = vor.u32 %v744_v54, %v740_v42  ;;  %v440_v7 = vmax.f32 %v408_v53, 0.0 }
  0x3e   : > { %1986 = vmatmul.mubr.bf16.gmra.mrb[8].mxu1 %v4329_v4  ;;  %v4388_v6 = vsel %vm4177_vm2, 0, %v583_v57  ;;  %v503_v11 = vrot.slane %v501_v61, 7  ;;  %3609 = vmatprep.subr.bf16.mxu0 %v3984_v8  ;;  %v3222_v29 = vunpack.c.h.bf16 %v3347_v59  ;;  %v370_v34 = vmul.f32 %v3221_v20, %v4135_v14  ;;  %v3349_v20 = vld [vmem:[%s4123_s23 + $0x38] sm:$0xff]  }
  0x3f   : > { %v884_v9 = vshrl.u32 %v4388_v6, 16  ;;  %v886_v10 = vshll.u32 %v4388_v6, 16  ;;  %v893_v16 = vrot.slane %v891_v60, 1  ;;  %v467_v19 = vpack.c.bf16 %v440_v7, %v439_v0  ;;  %v4444_v7 = vld [vmem:[%s5262_s3 + $0x200] sm:$0xff]  }
  0x40   : > { %3496 = vmatpush3.bf16.msra.mxu1 %v3965_v13  ;;  %v4396_v13 = vsel %vm706_vm3, %v745_v5, %v749_v55  ;;  %v506_v26 = vor.u32 %v504_v63, %v503_v11  ;;  %v4407_v27 = vsel %vm4177_vm2, %v503_v11, 0  ;;  %v371_v42 = vmul.f32 %v3222_v29, %v4135_v14  ;;  %3610 = vmatpush3.bf16.msra.mxu0 %v3985_v23  ;;  %v3989_v55 = vld [vmem:[%s5262_s3 + $0x138] sm:$0xff]  }
  0x41   : > { %3497 = vmatprep.subr.bf16.mxu1 %v3966_v37  ;;  %1897 = vmatprep.mubr.bf16.mxu0 %v4396_v13  ;;  %v888_v24 = vrot.slane %v886_v10, 1  ;;  %v759_v30 = vshll.u32 %v4407_v27, 16  ;;  %v508_v32 = vshrl.u32 %v467_v19, 16  ;;  %v511_v33 = vshll.u32 %v467_v19, 16  ;;  %v3988_v37 = vld [vmem:[%s5262_s3 + $0x178] sm:$0xff]  }
  0x42   : > { %1898 = vmatmul.mubr.bf16.gmra.mrb[12].mxu0 %v4359_v36  ;;  %v4420_v41 = vsel %vm4177_vm2, 0, %v506_v26  ;;  %3611 = vmatprep.subr.bf16.mxu0 %v3988_v37  ;;  %v409_v53 = vadd.f32 %v4140_v17, %v370_v34  ;;  %v410_v54 = vadd.f32 %v4140_v17, %v371_v42  ;;  %v3225_v61 = vunpack.c.l.bf16 %v3348_v43  ;;  %v3977_v37 = vld [vmem:[%s5262_s3 + $0x1c8] sm:$0xff]  }
  0x43   : > { %v889_v39 = vor.u32 %v888_v24, %v884_v9  ;;  %v752_v44 = vshrl.u32 %v4420_v41, 16  ;;  %v761_v52 = vrot.slane %v759_v30, 1  ;;  %v3226_v10 = vunpack.c.h.bf16 %v3348_v43  ;;  %v3973_v24 = vld [vmem:[%s5262_s3 + $0x180] sm:$0xff]  }
  0x44   : > { %3498 = vmatpush3.bf16.msra.mxu1 %v3968_v45  ;;  %v754_v45 = vshll.u32 %v4420_v41, 16  ;;  %v441_v0 = vmax.f32 %v409_v53, 0.0  ;;  %v442_v5 = vmax.f32 %v410_v54, 0.0  ;;  %3612 = vmatpush3.bf16.msra.mxu0 %v3989_v55  ;;  %v372_v11 = vmul.f32 %v3225_v61, %v4135_v14 }
  0x45   : > { %3499 = vmatprep.subr.bf16.mxu1 %v3970_v48  ;;  %v510_v48 = vrot.slane %v508_v32, 7  ;;  %v4427_v49 = vsel %vm706_vm3, %v889_v39, %v893_v16  ;;  %3845 = vmatprep.subr.bf16.mxu0 %v4444_v7  ;;  %v1008_v26 = vrot.slane %v4240_v40, 1  ;;  %v3230_v43 = vunpack.c.h.bf16 %v3349_v20 }
  0x46   : > { %1993 = vmatprep.mubr.bf16.mxu1 %v4427_v49  ;;  %v756_v57 = vrot.slane %v754_v45, 1  ;;  %v468_v19 = vpack.c.bf16 %v442_v5, %v441_v0  ;;  %v411_v29 = vadd.f32 %v4140_v17, %v372_v11  ;;  %v3979_v0 = vld [vmem:[%s5262_s3 + $0x188] sm:$0xff]  }
  0x47   : > { %v513_v59 = vor.u32 %v511_v33, %v510_v48  ;;  %v4437_v60 = vsel %vm4177_vm2, %v510_v48, 0  ;;  %1994 = vmatmul.mubr.bf16.gmra.mrb[12].mxu1 %v4388_v6  ;;  %v1009_v48 = vrot.slane %v4221_v31, 1  ;;  %v375_v55 = vmul.f32 %v3230_v43, %v4135_v14  ;;  %v3983_v43 = vld [vmem:[%s5262_s3 + $0x190] sm:$0xff]  }
  0x48   : > { %3500 = vmatpush3.bf16.msra.mxu1 %v3971_v18  ;;  %v771_v63 = vshll.u32 %v4437_v60, 16  ;;  %v757_v8 = vor.u32 %v756_v57, %v752_v44  ;;  %2034 = vmatprep.mubr.bf16.mxu1 %v4240_v40  ;;  %v515_v33 = vshrl.u32 %v468_v19, 16  ;;  %v518_v34 = vshll.u32 %v468_v19, 16  ;;  %v3350_v44 = vld [vmem:[%s4123_s23 + $0x40] sm:$0xff]  }
  0x49   : > { %3709 = vmatprep.subr.bf16.mxu1 %v3972_v28  ;;  %v4449_v9 = vsel %vm4177_vm2, 0, %v513_v59  ;;  %v373_v28 = vmul.f32 %v3226_v10, %v4135_v14  ;;  %v443_v42 = vmax.f32 %v411_v29, 0.0  ;;  %v3229_v40 = vunpack.c.l.bf16 %v3349_v20 }
  0x4a   : > { %v764_v16 = vshrl.u32 %v4449_v9, 16  ;;  %v766_v18 = vshll.u32 %v4449_v9, 16  ;;  %v4457_v23 = vsel %vm706_vm3, %v757_v8, %v761_v52  ;;  %v773_v32 = vrot.slane %v771_v63, 1 }
  0x4b   : > { %1905 = vmatprep.mubr.bf16.mxu0 %v4457_v23  ;;  %v412_v39 = vadd.f32 %v4140_v17, %v373_v28  ;;  %v517_v52 = vrot.slane %v515_v33, 7  ;;  %v374_v54 = vmul.f32 %v3229_v40, %v4135_v14  ;;  %v3233_v63 = vunpack.c.l.bf16 %v3350_v44 }
  0x4c   : > { %v768_v30 = vrot.slane %v766_v18, 1  ;;  %1906 = vmatmul.mubr.bf16.gmra.mrb[16].mxu0 %v4420_v41  ;;  %v414_v10 = vadd.f32 %v4140_v17, %v375_v55  ;;  %v4492_v11 = vsel %vm1005_vm4, %v1008_v26, %v1009_v48  ;;  %v3982_v18 = vld [vmem:[%s5262_s3 + $0x1d0] sm:$0xff]   ;;  %v3234_v19 = vunpack.c.h.bf16 %v3350_v44 }
  0x4d   : > { %v444_v53 = vmax.f32 %v412_v39, 0.0  ;;  %v520_v59 = vor.u32 %v518_v34, %v517_v52  ;;  %v4481_v61 = vsel %vm4177_vm2, %v517_v52, 0  ;;  %v413_v8 = vadd.f32 %v4140_v17, %v374_v54 }
  0x4e   : > { %v769_v45 = vor.u32 %v768_v30, %v764_v16  ;;  %v783_v31 = vshll.u32 %v4481_v61, 16  ;;  %v376_v20 = vmul.f32 %v3233_v63, %v4135_v14  ;;  %v1011_v29 = vrot.slane %v4285_v22, 1  ;;  %v3351_v30 = vld [vmem:[%s4123_s23 + $0x48] sm:$0xff]  }
  0x4f   : > { %2035 = vmatmul.mubr.bf16.vlgmr.msra.gmra.mrb[16].mxu1 %v4090_v3  ;;  %v469_v5 = vpack.c.bf16 %v444_v53, %v443_v42  ;;  %v4496_v16 = vsel %vm4177_vm2, 0, %v520_v59  ;;  %v445_v33 = vmax.f32 %v413_v8, 0.0  ;;  %v446_v34 = vmax.f32 %v414_v10, 0.0 }
  0x50   : > { %v4477_v57 = vsel %vm706_vm3, %v769_v45, %v773_v32  ;;  %3710 = vmatpush3.bf16.msra.mxu1 %v3973_v24  ;;  %2042 = vmatprep.mubr.bf16.mxu1 %v4285_v22  ;;  %v776_v24 = vshrl.u32 %v4496_v16, 16  ;;  %v778_v28 = vshll.u32 %v4496_v16, 16  ;;  %v785_v42 = vrot.slane %v783_v31, 1 }
  0x51   : > { %1913 = vmatprep.mubr.bf16.mxu0 %v4477_v57  ;;  %3711 = vmatprep.subr.bf16.mxu1 %v3977_v37  ;;  %v522_v26 = vshrl.u32 %v469_v5, 16  ;;  %v525_v32 = vshll.u32 %v469_v5, 16  ;;  %v377_v37 = vmul.f32 %v3234_v19, %v4135_v14  ;;  %v415_v44 = vadd.f32 %v4140_v17, %v376_v20  ;;  %v3986_v14 = vld [vmem:[%s5262_s3 + $0x1d8] sm:$0xff]  }
  0x52   : > { %v780_v39 = vrot.slane %v778_v28, 1  ;;  %v1012_v45 = vrot.slane %v4270_v12, 1  ;;  %v470_v48 = vpack.c.bf16 %v446_v34, %v445_v33  ;;  %v3237_v53 = vunpack.c.l.bf16 %v3351_v30  ;;  %v4547_v33 = vld [vmem:[%s5260_s1] ss:$0 sm:$0xff] }
  0x53   : > { %v524_v40 = vrot.slane %v522_v26, 7  ;;  %v416_v52 = vadd.f32 %v4140_v17, %v377_v37  ;;  %v447_v63 = vmax.f32 %v415_v44, 0.0  ;;  %v3238_v10 = vunpack.c.h.bf16 %v3351_v30  ;;  %v3990_v26 = vld [vmem:[%s5262_s3 + $0x1e0] sm:$0xff]  }
  0x54   : > { %1914 = vmatmul.mubr.bf16.gmra.mrb[20].mxu0 %v4449_v9  ;;  %3712 = vmatpush3.bf16.msra.mxu1 %v3979_v0  ;;  %v781_v54 = vor.u32 %v780_v39, %v776_v24  ;;  %v529_v31 = vshrl.u32 %v470_v48, 16  ;;  %v532_v0 = vshll.u32 %v470_v48, 16  ;;  %v4536_v19 = vsel %vm1005_vm4, %v1011_v29, %v1012_v45  ;;  %v4560_v48 = vld [vmem:[%s5261_s2] ss:$0 sm:$0xff] }
  0x55   : > { %3713 = vmatprep.subr.bf16.mxu1 %v3982_v18  ;;  %v527_v55 = vor.u32 %v525_v32, %v524_v40  ;;  %v4519_v59 = vsel %vm4177_vm2, %v524_v40, 0  ;;  %v448_v5 = vmax.f32 %v416_v52, 0.0  ;;  %v3987_v18 = vld [vmem:[%s5262_s3 + $0x198] sm:$0xff]   ;;  %v1014_v30 = vrot.slane %v4359_v36, 1 }
  0x56   : > { %v795_v12 = vshll.u32 %v4519_v59, 16  ;;  %v4524_v17 = vsel %vm706_vm3, %v781_v54, %v785_v42  ;;  %v531_v28 = vrot.slane %v529_v31, 7  ;;  %v378_v29 = vmul.f32 %v4547_v33, %v3237_v53  ;;  %v3352_v53 = vld [vmem:[%s4123_s23 + $0x50] sm:$0xff]  }
  0x57   : > { %2043 = vmatmul.mubr.bf16.gmra.mrb[20].mxu1 %v4492_v11  ;;  %v4529_v8 = vsel %vm4177_vm2, 0, %v527_v55  ;;  %1921 = vmatprep.mubr.bf16.mxu0 %v4524_v17  ;;  %v471_v32 = vpack.c.bf16 %v448_v5, %v447_v63  ;;  %v379_v34 = vmul.f32 %v4547_v33, %v3238_v10  ;;  %v1015_v54 = vrot.slane %v4347_v25, 1  ;;  %v3993_v25 = vld [vmem:[%s5262_s3 + $0x1e8] sm:$0xff]  }
  0x58   : > { %2050 = vmatprep.mubr.bf16.mxu1 %v4359_v36  ;;  %3714 = vmatpush3.bf16.msra.mxu1 %v3983_v43  ;;  %v788_v20 = vshrl.u32 %v4529_v8, 16  ;;  %v790_v24 = vshll.u32 %v4529_v8, 16  ;;  %v797_v39 = vrot.slane %v795_v12, 1  ;;  %v534_v42 = vor.u32 %v532_v0, %v531_v28  ;;  %v3992_v12 = vld [vmem:[%s5262_s3 + $0x1a0] sm:$0xff]  }
  0x59   : > { %3715 = vmatprep.subr.bf16.mxu1 %v3986_v14  ;;  %v4553_v40 = vsel %vm4177_vm2, %v531_v28, 0  ;;  %v536_v44 = vshrl.u32 %v471_v32, 16  ;;  %v539_v45 = vshll.u32 %v471_v32, 16  ;;  %v417_v52 = vadd.f32 %v4560_v48, %v378_v29 }
  0x5a   : > { %v792_v37 = vrot.slane %v790_v24, 1  ;;  %v807_v43 = vshll.u32 %v4553_v40, 16  ;;  %v4567_v55 = vsel %vm4177_vm2, 0, %v534_v42  ;;  %v418_v63 = vadd.f32 %v4560_v48, %v379_v34 }
  0x5b   : > { %v800_v31 = vshrl.u32 %v4567_v55, 16  ;;  %v802_v0 = vshll.u32 %v4567_v55, 16  ;;  %v538_v10 = vrot.slane %v536_v44, 7  ;;  %v3241_v28 = vunpack.c.l.bf16 %v3352_v53 }
  0x5c   : > { %1922 = vmatmul.mubr.bf16.gmra.mrb[24].mxu0 %v4496_v16  ;;  %3716 = vmatpush3.bf16.msra.mxu1 %v3987_v18  ;;  %v793_v14 = vor.u32 %v792_v37, %v788_v20  ;;  %v809_v5 = vrot.slane %v807_v43, 1  ;;  %v449_v20 = vmax.f32 %v417_v52, 0.0  ;;  %v450_v24 = vmax.f32 %v418_v63, 0.0 }
  0x5d   : > { %3717 = vmatprep.subr.bf16.mxu1 %v3990_v26  ;;  %v804_v26 = vrot.slane %v802_v0, 1  ;;  %v541_v32 = vor.u32 %v539_v45, %v538_v10  ;;  %v4586_v29 = vsel %vm4177_vm2, %v538_v10, 0  ;;  %v3242_v34 = vunpack.c.h.bf16 %v3352_v53  ;;  %v3996_v53 = vld [vmem:[%s5262_s3 + $0x1f0] sm:$0xff]  }
  0x5e   : > { %v4580_v18 = vsel %vm706_vm3, %v793_v14, %v797_v39  ;;  %v472_v37 = vpack.c.bf16 %v450_v24, %v449_v20  ;;  %v380_v42 = vmul.f32 %v4547_v33, %v3241_v28  ;;  %v3995_v39 = vld [vmem:[%s5262_s3 + $0x1a8] sm:$0xff]   ;;  %v819_v45 = vshll.u32 %v4586_v29, 16 }
  0x5f   : > { %2051 = vmatmul.mubr.bf16.gmra.mrb[24].mxu1 %v4536_v19  ;;  %1929 = vmatprep.mubr.bf16.mxu0 %v4580_v18  ;;  %v805_v43 = vor.u32 %v804_v26, %v800_v31  ;;  %v4594_v44 = vsel %vm4177_vm2, 0, %v541_v32  ;;  %v381_v52 = vmul.f32 %v4547_v33, %v3242_v34  ;;  %v4602_v14 = vsel %vm1005_vm4, %v1014_v30, %v1015_v54  ;;  %v3998_v54 = vld [vmem:[%s5262_s3 + $0x1b0] sm:$0xff]  }
  0x60   : > { %2058 = vmatprep.mubr.bf16.mxu1 %v4420_v41  ;;  %3718 = vmatpush3.bf16.msra.mxu1 %v3992_v12  ;;  %v812_v63 = vshrl.u32 %v4594_v44, 16  ;;  %v814_v12 = vshll.u32 %v4594_v44, 16  ;;  %v543_v31 = vshrl.u32 %v472_v37, 16  ;;  %v546_v10 = vshll.u32 %v472_v37, 16 }
  0x61   : > { %3719 = vmatprep.subr.bf16.mxu1 %v3993_v25  ;;  %v4608_v0 = vsel %vm706_vm3, %v805_v43, %v809_v5  ;;  %v419_v25 = vadd.f32 %v4560_v48, %v380_v42  ;;  %v420_v20 = vadd.f32 %v4560_v48, %v381_v52  ;;  %v821_v28 = vrot.slane %v819_v45, 1  ;;  %v3999_v5 = vld [vmem:[%s5262_s3 + $0x1f8] sm:$0xff]  }
  0x62   : > { %v816_v24 = vrot.slane %v814_v12, 1  ;;  %v545_v30 = vrot.slane %v543_v31, 7  ;;  %v1018_v43 = vrot.slane %v4407_v27, 1 }
  0x63   : > { %v451_v26 = vmax.f32 %v419_v25, 0.0  ;;  %v452_v32 = vmax.f32 %v420_v20, 0.0 }
  0x64   : > { %1930 = vmatmul.mubr.bf16.gmra.mrb[28].mxu0 %v4529_v8  ;;  %3720 = vmatpush3.bf16.msra.mxu1 %v3995_v39  ;;  %v817_v34 = vor.u32 %v816_v24, %v812_v63  ;;  %v548_v37 = vor.u32 %v546_v10, %v545_v30  ;;  %v4622_v42 = vsel %vm4177_vm2, %v545_v30, 0  ;;  %v1017_v39 = vrot.slane %v4420_v41, 1  ;;  %v4001_v63 = vld [vmem:[%s5262_s3 + $0x1b8] sm:$0xff]  }
  0x65   : > { %1937 = vmatprep.mubr.bf16.mxu0 %v4608_v0  ;;  %3721 = vmatprep.subr.bf16.mxu1 %v3996_v53  ;;  %v473_v45 = vpack.c.bf16 %v452_v32, %v451_v26  ;;  %v831_v53 = vshll.u32 %v4622_v42, 16 }
  0x66   : > { %v4629_v52 = vsel %vm4177_vm2, 0, %v548_v37  ;;  %v4636_v12 = vsel %vm706_vm3, %v817_v34, %v821_v28  ;;  %v4642_v20 = vsel %vm1005_vm4, %v1017_v39, %v1018_v43  ;;  %v1021_v34 = vrot.slane %v4437_v60, 1 }
  0x67   : > { %2059 = vmatmul.mubr.bf16.gmra.mrb[28].mxu1 %v4602_v14  ;;  %v824_v31 = vshrl.u32 %v4629_v52, 16  ;;  %v826_v10 = vshll.u32 %v4629_v52, 16  ;;  %v550_v27 = vshrl.u32 %v473_v45, 16  ;;  %v553_v25 = vshll.u32 %v473_v45, 16 }
  0x68   : > { %2066 = vmatprep.mubr.bf16.mxu1 %v4449_v9  ;;  %3722 = vmatpush3.bf16.msra.mxu1 %v3998_v54  ;;  %v833_v28 = vrot.slane %v831_v53, 1 }
  0x69   : > { %3723 = vmatprep.subr.bf16.mxu1 %v3999_v5  ;;  %v828_v24 = vrot.slane %v826_v10, 1  ;;  %v552_v30 = vrot.slane %v550_v27, 7  ;;  %v1020_v5 = vrot.slane %v4449_v9, 1  ;;  %v1023_v27 = vrot.slane %v4496_v16, 1 }
  0x6b   : > { %v829_v54 = vor.u32 %v828_v24, %v824_v31  ;;  %v555_v26 = vor.u32 %v553_v25, %v552_v30  ;;  %v4648_v32 = vsel %vm4177_vm2, %v552_v30, 0  ;;  %v4665_v31 = vsel %vm1005_vm4, %v1020_v5, %v1021_v34  ;;  %v3994_v34 = vld [vmem:[%s5262_s3 + $0x208] sm:$0xff]  }
  0x6c   : > { %1938 = vmatmul.mubr.bf16.gmra.mrb[32].mxu0 %v4567_v55  ;;  %3724 = vmatpush3.bf16.msra.mxu1 %v4001_v63  ;;  %v843_v53 = vshll.u32 %v4648_v32, 16  ;;  %v1024_v25 = vrot.slane %v4481_v61, 1  ;;  %v1030_v5 = vrot.slane %v4553_v40, 1  ;;  %v1032_v40 = vrot.slane %v4594_v44, 1 }
  0x6d   : > { %1945 = vmatprep.mubr.bf16.mxu0 %v4636_v12  ;;  %v4655_v37 = vsel %vm4177_vm2, 0, %v555_v26  ;;  %v4659_v43 = vsel %vm706_vm3, %v829_v54, %v833_v28  ;;  %v1026_v54 = vrot.slane %v4529_v8, 1  ;;  %v1027_v28 = vrot.slane %v4519_v59, 1 }
  0x6e   : > { %v838_v39 = vshll.u32 %v4655_v37, 16  ;;  %v836_v45 = vshrl.u32 %v4655_v37, 16  ;;  %v845_v10 = vrot.slane %v843_v53, 1  ;;  %v4677_v30 = vsel %vm1005_vm4, %v1023_v27, %v1024_v25 }
  0x6f   : > { %2067 = vmatmul.mubr.bf16.gmra.mrb[32].mxu1 %v4642_v20  ;;  %v4686_v61 = vsel %vm1005_vm4, %v1026_v54, %v1027_v28  ;;  %v1029_v26 = vrot.slane %v4567_v55, 1  ;;  %v1036_v53 = vrot.slane %v4622_v42, 1  ;;  %v4004_v42 = vld [vmem:[%s5262_s3 + $0x230] sm:$0xff]   ;;  %v1038_v54 = vrot.slane %v4655_v37, 1 }
  0x70   : > { %2074 = vmatprep.mubr.bf16.mxu1 %v4496_v16  ;;  %v840_v63 = vrot.slane %v838_v39, 1  ;;  %v1033_v39 = vrot.slane %v4586_v29, 1  ;;  %v1035_v29 = vrot.slane %v4629_v52, 1  ;;  %v1039_v28 = vrot.slane %v4648_v32, 1 }
  0x71   : > { %v4697_v59 = vsel %vm1005_vm4, %v1029_v26, %v1030_v5 }
  0x72   : > { %v841_v60 = vor.u32 %v840_v63, %v836_v45  ;;  %v4002_v45 = vld [vmem:[%s5262_s3 + $0x220] sm:$0xff]   ;;  %v3357_v63 = vld [vmem:[%s4123_s23 + $0x78] sm:$0xff]  }
  0x73   : > { %v3261_v27 = vunpack.c.l.bf16 %v3357_v63  ;;  %v3262_v25 = vunpack.c.h.bf16 %v3357_v63  ;;  %v1045_v63 = vrot.slane %v4232_v38, 1 }
  0x74   : > { %1946 = vmatmul.mubr.bf16.gmra.mrb[36].mxu0 %v4594_v44  ;;  %v4673_v24 = vsel %vm706_vm3, %v841_v60, %v845_v10  ;;  %v4003_v60 = vld [vmem:[%s5262_s3 + $0x228] sm:$0xff]   ;;  %v4729_v10 = vsel %vm1005_vm4, %v1035_v29, %v1036_v53  ;;  %v1044_v53 = vrot.slane %v4253_v50, 1 }
  0x75   : > { %1953 = vmatprep.mubr.bf16.mxu0 %v4659_v43  ;;  %v390_v26 = vmul.f32 %v4547_v33, %v3261_v27  ;;  %v391_v5 = vmul.f32 %v4547_v33, %v3262_v25  ;;  %v1041_v33 = vrot.slane %v4198_v62, 1 }
  0x77   : > { %2075 = vmatmul.mubr.bf16.gmra.mrb[36].mxu1 %v4665_v31  ;;  %v430_v32 = vadd.f32 %v4560_v48, %v391_v5  ;;  %v1050_v5 = vrot.slane %v4388_v6, 1 }
  0x78   : > { %2082 = vmatprep.mubr.bf16.mxu1 %v4529_v8 }
  0x7c   : > { %1954 = vmatmul.mubr.bf16.gmra.mrb[40].mxu0 %v4629_v52 }
  0x7d   : > { %1961 = vmatprep.mubr.bf16.mxu0 %v4673_v24 }
  0x7f   : > { %2083 = vmatmul.mubr.bf16.gmra.mrb[40].mxu1 %v4677_v30 }
  0x80   : > { %2090 = vmatprep.mubr.bf16.mxu1 %v4567_v55 }
  0x84   : > { %1962 = vmatmul.mubr.bf16.gmra.mrb[44].mxu0 %v4655_v37 }
  0x85   : > { %2195 = vmatprep.mubr.bf16.mxu0 %v4492_v11  ;;  %v3997_v11 = vld [vmem:[%s5262_s3 + $0x210] sm:$0xff]  }
  0x87   : > { %2091 = vmatmul.mubr.bf16.gmra.mrb[44].mxu1 %v4686_v61 }
  0x88   : > { %2098 = vmatprep.mubr.bf16.mxu1 %v4594_v44 }
  0x8c   : > { %2196 = vmatmul.mubr.bf16.vlgmr.msra.gmra.mrb[48].mxu0 %v4274_v15  ;;  %v4000_v15 = vld [vmem:[%s5262_s3 + $0x218] sm:$0xff]  }
  0x8d   : > { %3846 = vmatpush3.bf16.msra.mxu0 %v4444_v7  ;;  %2203 = vmatprep.mubr.bf16.mxu0 %v4536_v19  ;;  %v4713_v7 = vsel %vm1005_vm4, %v1032_v40, %v1033_v39  ;;  %v429_v40 = vadd.f32 %v4560_v48, %v390_v26  ;;  %v1042_v39 = vrot.slane %v4185_v51, 1 }
  0x8e   : > { %3847 = vmatprep.subr.bf16.mxu0 %v3994_v34 }
  0x8f   : > { %2099 = vmatmul.mubr.bf16.gmra.mrb[48].mxu1 %v4697_v59  ;;  %v4757_v29 = vsel %vm1005_vm4, %v1041_v33, %v1042_v39 }
  0x90   : > { %2106 = vmatprep.mubr.bf16.mxu1 %v4629_v52 }
  0x91   : > { %3848 = vmatpush3.bf16.msra.mxu0 %v3994_v34  ;;  %v4005_v34 = vld [vmem:[%s5262_s3 + $0x238] sm:$0xff]  }
  0x92   : > { %3849 = vmatprep.subr.bf16.mxu0 %v3997_v11 }
  0x94   : > { %2204 = vmatmul.mubr.bf16.gmra.mrb[52].mxu0 %v4325_v1 }
  0x95   : > { %2211 = vmatprep.mubr.bf16.mxu0 %v4602_v14  ;;  %3850 = vmatpush3.bf16.msra.mxu0 %v3997_v11  ;;  %v4746_v11 = vsel %vm1005_vm4, %v1038_v54, %v1039_v28  ;;  %v1048_v54 = vrot.slane %v4315_v56, 1  ;;  %v1051_v56 = vrot.slane %v4381_v58, 1 }
  0x96   : > { %3851 = vmatprep.subr.bf16.mxu0 %v4000_v15 }
  0x97   : > { %2107 = vmatmul.mubr.bf16.gmra.mrb[52].mxu1 %v4713_v7 }
  0x98   : > { %2114 = vmatprep.mubr.bf16.mxu1 %v4655_v37 }
  0x99   : > { %3852 = vmatpush3.bf16.msra.mxu0 %v4000_v15  ;;  %v461_v15 = vmax.f32 %v429_v40, 0.0 }
  0x9a   : > { %3853 = vmatprep.subr.bf16.mxu0 %v4002_v45 }
  0x9c   : > { %2212 = vmatmul.mubr.bf16.gmra.mrb[56].mxu0 %v4396_v13 }
  0x9d   : > { %2219 = vmatprep.mubr.bf16.mxu0 %v4642_v20  ;;  %3854 = vmatpush3.bf16.msra.mxu0 %v4002_v45  ;;  %v462_v45 = vmax.f32 %v430_v32, 0.0 }
  0x9e   : > { %3855 = vmatprep.subr.bf16.mxu0 %v4003_v60 }
  0x9f   : > { %2115 = vmatmul.mubr.bf16.gmra.mrb[56].mxu1 %v4729_v10  ;;  %v478_v48 = vpack.c.bf16 %v462_v45, %v461_v15 }
  0xa0   : > { %2122 = vmatprep.mubr.bf16.mxu1 %v4198_v62 }
  0xa1   : > { %3856 = vmatpush3.bf16.msra.mxu0 %v4003_v60  ;;  %v585_v51 = vshrl.u32 %v478_v48, 16  ;;  %v4766_v60 = vsel %vm1005_vm4, %v1044_v53, %v1045_v63  ;;  %v588_v25 = vshll.u32 %v478_v48, 16 }
  0xa2   : > { %3857 = vmatprep.subr.bf16.mxu0 %v4004_v42 }
  0xa3   : > { %v587_v27 = vrot.slane %v585_v51, 7 }
  0xa4   : > { %2220 = vmatmul.mubr.bf16.gmra.mrb[60].mxu0 %v4457_v23 }
  0xa5   : > { %2227 = vmatprep.mubr.bf16.mxu0 %v4665_v31  ;;  %3858 = vmatpush3.bf16.msra.mxu0 %v4004_v42  ;;  %v1047_v42 = vrot.slane %v4329_v4, 1  ;;  %v590_v28 = vor.u32 %v588_v25, %v587_v27 }
  0xa6   : > { %3859 = vmatprep.subr.bf16.mxu0 %v4005_v34 }
  0xa7   : > { %2123 = vmatmul.mubr.bf16.gmra.mrb[60].mxu1 %v4746_v11  ;;  %v4775_v38 = vsel %vm1005_vm4, %v1047_v42, %v1048_v54  ;;  %v4780_v26 = vsel %vm4177_vm2, 0, %v590_v28 }
  0xa8   : > { %2130 = vmatprep.mubr.bf16.mxu1 %v4253_v50  ;;  %v896_v47 = vshrl.u32 %v4780_v26, 16 }
  0xa9   : > { %3860 = vmatpush3.bf16.msra.mxu0 %v4005_v34  ;;  %v4788_v34 = vsel %vm1005_vm4, %v1050_v5, %v1051_v56 }
  0xac   : > { %2228 = vmatmul.mubr.bf16.gmra.mrb[64].mxu0 %v4477_v57 }
  0xad   : > { %2235 = vmatprep.mubr.bf16.mxu0 %v4677_v30 }
  0xaf   : > { %2131 = vmatmul.mubr.bf16.gmra.mrb[64].mxu1 %v4757_v29 }
  0xb0   : > { %2138 = vmatprep.mubr.bf16.mxu1 %v4329_v4 }
  0xb4   : > { %2236 = vmatmul.mubr.bf16.gmra.mrb[68].mxu0 %v4524_v17 }
  0xb5   : > { %2243 = vmatprep.mubr.bf16.mxu0 %v4686_v61 }
  0xb7   : > { %2139 = vmatmul.mubr.bf16.gmra.mrb[68].mxu1 %v4766_v60 }
  0xb8   : > { %2146 = vmatprep.mubr.bf16.mxu1 %v4388_v6 }
  0xbc   : > { %2244 = vmatmul.mubr.bf16.gmra.mrb[72].mxu0 %v4580_v18 }
  0xbd   : > { %2251 = vmatprep.mubr.bf16.mxu0 %v4697_v59 }
  0xbf   : > { %2147 = vmatmul.mubr.bf16.gmra.mrb[72].mxu1 %v4775_v38 }
  0xc0   : > { %2154 = vmatprep.mubr.bf16.mxu1 %v4780_v26 }
  0xc4   : > { %2252 = vmatmul.mubr.bf16.gmra.mrb[76].mxu0 %v4608_v0 }
  0xc5   : > { %2259 = vmatprep.mubr.bf16.mxu0 %v4713_v7 }
  0xc7   : > { %2155 = vmatmul.mubr.bf16.gmra.mrb[76].mxu1 %v4788_v34 }
  0xc8   : > { %2356 = vmatprep.mubr.bf16.mxu1 %v4325_v1 }
  0xcc   : > { %2260 = vmatmul.mubr.bf16.gmra.mrb[80].mxu0 %v4636_v12 }
  0xcd   : > { %2267 = vmatprep.mubr.bf16.mxu0 %v4729_v10 }
  0xcf   : > { %2357 = vmatmul.mubr.bf16.vlgmr.msra.gmra.mrb[80].mxu1 %v4285_v22 }
  0xd0   : > { %2364 = vmatprep.mubr.bf16.mxu1 %v4396_v13  ;;  %v657_v13 = vsel %vm4177_vm2, %v587_v27, 0 }
  0xd1   : > { %v903_v40 = vshll.u32 %v657_v13, 16 }
  0xd4   : > { %2268 = vmatmul.mubr.bf16.gmra.mrb[84].mxu0 %v4659_v43 }
  0xd5   : > { %2275 = vmatprep.mubr.bf16.mxu0 %v4746_v11 }
  0xd7   : > { %2365 = vmatmul.mubr.bf16.gmra.mrb[84].mxu1 %v4359_v36 }
  0xd8   : > { %2372 = vmatprep.mubr.bf16.mxu1 %v4457_v23  ;;  %v898_v23 = vshll.u32 %v4780_v26, 16 }
  0xdc   : > { %2276 = vmatmul.mubr.bf16.gmra.mrb[88].mxu0 %v4673_v24 }
  0xdd   : > { %2283 = vmatprep.mubr.bf16.mxu0 %v4757_v29 }
  0xdf   : > { %2373 = vmatmul.mubr.bf16.gmra.mrb[88].mxu1 %v4420_v41 }
  0xe0   : > { %2380 = vmatprep.mubr.bf16.mxu1 %v4477_v57  ;;  %v1053_v57 = vrot.slane %v4780_v26, 1 }
  0xe4   : > { %2284 = vmatmul.mubr.bf16.gmra.mrb[92].mxu0 %v4227_v35 }
  0xe5   : > { %2291 = vmatprep.mubr.bf16.mxu0 %v4766_v60 }
  0xe7   : > { %2381 = vmatmul.mubr.bf16.gmra.mrb[92].mxu1 %v4449_v9 }
  0xe8   : > { %2388 = vmatprep.mubr.bf16.mxu1 %v4524_v17 }
  0xec   : > { %2292 = vmatmul.mubr.bf16.gmra.mrb[96].mxu0 %v4281_v21 }
  0xed   : > { %2299 = vmatprep.mubr.bf16.mxu0 %v4775_v38 }
  0xef   : > { %2389 = vmatmul.mubr.bf16.gmra.mrb[96].mxu1 %v4496_v16  ;;  %v1054_v16 = vrot.slane %v657_v13, 1 }
  0xf0   : > { %2396 = vmatprep.mubr.bf16.mxu1 %v4580_v18  ;;  %v900_v18 = vrot.slane %v898_v23, 1 }
  0xf1   : > { %v4828_v33 = vsel %vm1005_vm4, %v1053_v57, %v1054_v16 }
  0xf4   : > { %2300 = vmatmul.mubr.bf16.gmra.mrb[100].mxu0 %v4371_v46 }
  0xf5   : > { %2307 = vmatprep.mubr.bf16.mxu0 %v4788_v34 }
  0xf7   : > { %2397 = vmatmul.mubr.bf16.gmra.mrb[100].mxu1 %v4529_v8  ;;  %v901_v8 = vor.u32 %v900_v18, %v896_v47 }
  0xf8   : > { %2404 = vmatprep.mubr.bf16.mxu1 %v4608_v0  ;;  %v905_v0 = vrot.slane %v903_v40, 1 }
  0xfa   : > { %v3389_v22 = vpop.f32.mrb[0].mxu0  ;;  %v4839_v53 = vsel %vm706_vm3, %v901_v8, %v905_v0 }
  0xfb   : > { %v3390_v1 = vpop.f32.mrb[1].mxu0 }
  0xfc   : > { %v4814_v36 = vadd.f32 %v3390_v1, %v3389_v22  ;;  %v3392_v58 = vpop.f32.mrb[2].mxu0  ;;  %2308 = vmatmul.mubr.bf16.gmra.mrb[104].mxu0 %v4427_v49 }
  0xfd   : > { %v3393_v41 = vpop.f32.mrb[3].mxu0  ;;  %2315 = vmatprep.mubr.bf16.mxu0 %v4828_v33 }
  0xfe   : > { %v4820_v9 = vadd.f32 %v3393_v41, %v3392_v58  ;;  %v3461_v17 = vpop.f32.mrb[0].mxu1 }
  0xff   : > { %v3462_v32 = vpop.f32.mrb[1].mxu1  ;;  %2405 = vmatmul.mubr.bf16.gmra.mrb[104].mxu1 %v4567_v55 }
 0x100   : > { %v4830_v39 = vadd.f32 %v3462_v32, %v3461_v17  ;;  %v3464_v15 = vpop.f32.mrb[2].mxu1  ;;  %2412 = vmatprep.mubr.bf16.mxu1 %v4636_v12 }
 0x101   : > { %v3465_v45 = vpop.f32.mrb[3].mxu1 }
 0x102   : > { %v4833_v48 = vadd.f32 %v3465_v45, %v3464_v15  ;;  %v3395_v63 = vpop.f32.mrb[4].mxu0 }
 0x103   : > { %v3396_v27 = vpop.f32.mrb[5].mxu0 }
 0x104   : > { %v4841_v25 = vadd.f32 %v3396_v27, %v3395_v63  ;;  %v3398_v54 = vpop.f32.mrb[6].mxu0  ;;  %2316 = vmatmul.mubr.bf16.gmra.mrb[108].mxu0 %v4839_v53 }
 0x105   : > { %v3399_v56 = vpop.f32.mrb[7].mxu0  ;;  %3861 = vmatprep.mubr.bf16.mxu0 %v4536_v19 }
 0x106   : > { %v3467_v51 = vpop.f32.mrb[4].mxu1  ;;  %v4846_v22 = vadd.f32 %v3399_v56, %v3398_v54 }
 0x107   : > { %v3468_v42 = vpop.f32.mrb[5].mxu1  ;;  %2413 = vmatmul.mubr.bf16.gmra.mrb[108].mxu1 %v4594_v44 }
 0x108   : > { %v4844_v28 = vadd.f32 %v3468_v42, %v3467_v51  ;;  %v3470_v5 = vpop.f32.mrb[6].mxu1  ;;  %2420 = vmatprep.mubr.bf16.mxu1 %v4659_v43 }
 0x109   : > { %v3471_v55 = vpop.f32.mrb[7].mxu1 }
 0x10a   : > { %v4849_v12 = vadd.f32 %v3471_v55, %v3470_v5  ;;  %v3401_v1 = vpop.f32.mrb[8].mxu0 }
 0x10b   : > { %v3402_v58 = vpop.f32.mrb[9].mxu0 }
 0x10c   : > { %v4853_v13 = vadd.f32 %v3402_v58, %v3401_v1  ;;  %v3404_v41 = vpop.f32.mrb[10].mxu0  ;;  %3862 = vmatmul.mubr.bf16.vlgmr.msra.gmra.mrb[112].mxu0 %v4602_v14 }
 0x10d   : > { %v3405_v23 = vpop.f32.mrb[11].mxu0  ;;  %3865 = vmatprep.mubr.bf16.mxu0 %v4642_v20 }
 0x10e   : > { %v4856_v57 = vadd.f32 %v3405_v23, %v3404_v41 }
 0x10f   : > { %2421 = vmatmul.mubr.bf16.gmra.mrb[112].mxu1 %v4629_v52 }
 0x110   : > { %2428 = vmatprep.mubr.bf16.mxu1 %v4673_v24 }
 0x111   : > { %v3473_v19 = vpop.f32.mrb[8].mxu1 }
 0x112   : > { %v3474_v44 = vpop.f32.mrb[9].mxu1 }
 0x113   : > { %v4861_v16 = vadd.f32 %v3474_v44, %v3473_v19  ;;  %v3476_v43 = vpop.f32.mrb[10].mxu1 }
 0x114   : > { %v3477_v17 = vpop.f32.mrb[11].mxu1  ;;  %3866 = vmatmul.mubr.bf16.gmra.mrb[116].mxu0 %v4665_v31 }
 0x115   : > { %v4863_v47 = vadd.f32 %v3477_v17, %v3476_v43  ;;  %v3407_v14 = vpop.f32.mrb[12].mxu0  ;;  %3869 = vmatprep.mubr.bf16.mxu0 %v4677_v30 }
 0x116   : > { %v3408_v18 = vpop.f32.mrb[13].mxu0 }
 0x117   : > { %2429 = vmatmul.mubr.bf16.gmra.mrb[116].mxu1 %v4655_v37  ;;  %v4868_v20 = vadd.f32 %v3408_v18, %v3407_v14  ;;  %v3410_v52 = vpop.f32.mrb[14].mxu0 }
 0x118   : > { %v3411_v40 = vpop.f32.mrb[15].mxu0  ;;  %2436 = vmatprep.mubr.bf16.mxu1 %v4227_v35 }
 0x119   : > { %v4871_v24 = vadd.f32 %v3411_v40, %v3410_v52 }
 0x11a   : > { %v3479_v32 = vpop.f32.mrb[12].mxu1 }
 0x11b   : > { %v3480_v15 = vpop.f32.mrb[13].mxu1 }
 0x11c   : > { %v4873_v45 = vadd.f32 %v3480_v15, %v3479_v32  ;;  %v3482_v8 = vpop.f32.mrb[14].mxu1  ;;  %3870 = vmatmul.mubr.bf16.gmra.mrb[120].mxu0 %v4686_v61 }
 0x11d   : > { %v3483_v31 = vpop.f32.mrb[15].mxu1  ;;  %3873 = vmatprep.mubr.bf16.mxu0 %v4697_v59 }
 0x11e   : > { %v4877_v30 = vadd.f32 %v3483_v31, %v3482_v8 }
 0x11f   : > { %2437 = vmatmul.mubr.bf16.gmra.mrb[120].mxu1 %v4198_v62  ;;  %v3413_v37 = vpop.f32.mrb[16].mxu0 }
 0x120   : > { %v3414_v0 = vpop.f32.mrb[17].mxu0  ;;  %2444 = vmatprep.mubr.bf16.mxu1 %v4281_v21 }
 0x121   : > { %v4881_v35 = vadd.f32 %v3414_v0, %v3413_v37  ;;  %v3416_v63 = vpop.f32.mrb[18].mxu0 }
 0x122   : > { %v3501_v51 = vpop.f32.mrb[16].mxu1  ;;  %v3417_v27 = vpop.f32.mrb[19].mxu0 }
 0x123   : > { %v3502_v42 = vpop.f32.mrb[17].mxu1  ;;  %v4883_v54 = vadd.f32 %v3417_v27, %v3416_v63 }
 0x124   : > { %v3503_v61 = vadd.f32 %v3502_v42, %v3501_v51  ;;  %v3504_v5 = vpop.f32.mrb[18].mxu1  ;;  %3874 = vmatmul.mubr.bf16.gmra.mrb[124].mxu0 %v4713_v7 }
 0x125   : > { %v3505_v59 = vpop.f32.mrb[19].mxu1  ;;  %3877 = vmatprep.mubr.bf16.mxu0 %v4729_v10 }
 0x126   : > { %v4888_v62 = vadd.f32 %v3503_v61, %v4814_v36  ;;  %v3506_v56 = vadd.f32 %v3505_v59, %v3504_v5 }
 0x127   : > { %2445 = vmatmul.mubr.bf16.gmra.mrb[124].mxu1 %v4253_v50  ;;  %v3419_v21 = vpop.f32.mrb[20].mxu0 }
 0x128   : > { %v4892_v55 = vadd.f32 %v3506_v56, %v4820_v9  ;;  %v3420_v1 = vpop.f32.mrb[21].mxu0  ;;  %2452 = vmatprep.mubr.bf16.mxu1 %v4371_v46 }
 0x129   : > { %v4895_v58 = vadd.f32 %v3420_v1, %v3419_v21  ;;  %v3422_v41 = vpop.f32.mrb[22].mxu0 }
 0x12a   : > { %v3507_v7 = vpop.f32.mrb[20].mxu1  ;;  %v3423_v23 = vpop.f32.mrb[23].mxu0 }
 0x12b   : > { %v3508_v19 = vpop.f32.mrb[21].mxu1  ;;  %v4897_v10 = vadd.f32 %v3423_v23, %v3422_v41 }
 0x12c   : > { %v3509_v36 = vadd.f32 %v3508_v19, %v3507_v7  ;;  %v3510_v44 = vpop.f32.mrb[22].mxu1  ;;  %3878 = vmatmul.mubr.bf16.gmra.mrb[128].mxu0 %v4746_v11 }
 0x12d   : > { %v3511_v50 = vpop.f32.mrb[23].mxu1  ;;  %3881 = vmatprep.mubr.bf16.mxu0 %v4757_v29 }
 0x12e   : > { %v4902_v9 = vadd.f32 %v3509_v36, %v4841_v25  ;;  %v3512_v43 = vadd.f32 %v3511_v50, %v3510_v44 }
 0x12f   : > { %2453 = vmatmul.mubr.bf16.gmra.mrb[128].mxu1 %v4329_v4  ;;  %v3425_v46 = vpop.f32.mrb[24].mxu0 }
 0x130   : > { %v4906_v17 = vadd.f32 %v3512_v43, %v4846_v22  ;;  %v3426_v14 = vpop.f32.mrb[25].mxu0  ;;  %2460 = vmatprep.mubr.bf16.mxu1 %v4427_v49 }
 0x131   : > { %v4909_v18 = vadd.f32 %v3426_v14, %v3425_v46  ;;  %v3428_v52 = vpop.f32.mrb[26].mxu0 }
 0x132   : > { %v3513_v11 = vpop.f32.mrb[24].mxu1  ;;  %v3429_v40 = vpop.f32.mrb[27].mxu0 }
 0x133   : > { %v3514_v32 = vpop.f32.mrb[25].mxu1  ;;  %v4911_v29 = vadd.f32 %v3429_v40, %v3428_v52 }
 0x134   : > { %v3515_v25 = vadd.f32 %v3514_v32, %v3513_v11  ;;  %v3516_v15 = vpop.f32.mrb[26].mxu1  ;;  %3882 = vmatmul.mubr.bf16.gmra.mrb[132].mxu0 %v4766_v60 }
 0x135   : > { %v3517_v4 = vpop.f32.mrb[27].mxu1  ;;  %3885 = vmatprep.mubr.bf16.mxu0 %v4775_v38 }
 0x136   : > { %v4916_v22 = vadd.f32 %v3515_v25, %v4853_v13  ;;  %v3518_v8 = vadd.f32 %v3517_v4, %v3516_v15 }
 0x137   : > { %2461 = vmatmul.mubr.bf16.gmra.mrb[132].mxu1 %v4388_v6  ;;  %v3431_v49 = vpop.f32.mrb[28].mxu0 }
 0x138   : > { %v4920_v31 = vadd.f32 %v3518_v8, %v4856_v57  ;;  %v3432_v37 = vpop.f32.mrb[29].mxu0  ;;  %2468 = vmatprep.mubr.bf16.mxu1 %v4839_v53 }
 0x139   : > { %v4923_v0 = vadd.f32 %v3432_v37, %v3431_v49  ;;  %v3434_v63 = vpop.f32.mrb[30].mxu0 }
 0x13a   : > { %v3519_v60 = vpop.f32.mrb[28].mxu1  ;;  %v3435_v51 = vpop.f32.mrb[31].mxu0 }
 0x13b   : > { %v3520_v27 = vpop.f32.mrb[29].mxu1  ;;  %v4925_v38 = vadd.f32 %v3435_v51, %v3434_v63 }
 0x13c   : > { %v3521_v13 = vadd.f32 %v3520_v27, %v3519_v60  ;;  %v3522_v42 = vpop.f32.mrb[30].mxu1  ;;  %3886 = vmatmul.mubr.bf16.gmra.mrb[136].mxu0 %v4788_v34 }
 0x13d   : > { %v3523_v6 = vpop.f32.mrb[31].mxu1  ;;  %3889 = vmatprep.mubr.bf16.mxu0 %v4828_v33 }
 0x13e   : > { %v4930_v57 = vadd.f32 %v3521_v13, %v4868_v20  ;;  %v3524_v61 = vadd.f32 %v3523_v6, %v3522_v42 }
 0x13f   : > { %2469 = vmatmul.mubr.bf16.gmra.mrb[136].mxu1 %v4780_v26  ;;  %v3437_v53 = vpop.f32.mrb[32].mxu0 }
 0x140   : > { %v4934_v5 = vadd.f32 %v3524_v61, %v4871_v24  ;;  %v3438_v59 = vpop.f32.mrb[33].mxu0  ;;  %2476 = vmatprep.mubr.bf16.mxu1 %v4090_v3 }
 0x141   : > { %v4937_v56 = vadd.f32 %v3438_v59, %v3437_v53  ;;  %v3440_v21 = vpop.f32.mrb[34].mxu0 }
 0x142   : > { %v3525_v34 = vpop.f32.mrb[32].mxu1  ;;  %v3441_v1 = vpop.f32.mrb[35].mxu0 }
 0x143   : > { %v3526_v41 = vpop.f32.mrb[33].mxu1  ;;  %v4939_v33 = vadd.f32 %v3441_v1, %v3440_v21 }
 0x144   : > { %v3527_v20 = vadd.f32 %v3526_v41, %v3525_v34  ;;  %v3528_v7 = vpop.f32.mrb[34].mxu1  ;;  %3890 = vmatmul.mubr.bf16.gmra.mrb[140].mxu0 %v4090_v3 }
 0x145   : > { %v3529_v26 = vpop.f32.mrb[35].mxu1 }
 0x146   : > { %v4943_v23 = vadd.f32 %v3527_v20, %v4881_v35  ;;  %v3530_v24 = vadd.f32 %v3529_v26, %v3528_v7 }
 0x147   : > { %2477 = vmatmul.mubr.bf16.gmra.mrb[140].mxu1 %v4032_v2  ;;  %v3443_v19 = vpop.f32.mrb[36].mxu0 }
 0x148   : > { %v4947_v36 = vadd.f32 %v3530_v24, %v4883_v54  ;;  %v3444_v44 = vpop.f32.mrb[37].mxu0 }
 0x149   : > { %v4949_v50 = vadd.f32 %v3444_v44, %v3443_v19  ;;  %v3446_v43 = vpop.f32.mrb[38].mxu0 }
 0x14a   : > { %v3531_v46 = vpop.f32.mrb[36].mxu1  ;;  %v3447_v14 = vpop.f32.mrb[39].mxu0 }
 0x14b   : > { %v3532_v52 = vpop.f32.mrb[37].mxu1  ;;  %v4951_v11 = vadd.f32 %v3447_v14, %v3446_v43 }
 0x14c   : > { %v3533_v3 = vadd.f32 %v3532_v52, %v3531_v46  ;;  %v3534_v40 = vpop.f32.mrb[38].mxu1 }
 0x14d   : > { %v3535_v35 = vpop.f32.mrb[39].mxu1 }
 0x14e   : > { %v4954_v32 = vadd.f32 %v3533_v3, %v4895_v58  ;;  %v3536_v2 = vadd.f32 %v3535_v35, %v3534_v40 }
 0x14f   : > { %v3449_v25 = vpop.f32.mrb[40].mxu0 }
 0x150   : > { %v4957_v54 = vadd.f32 %v3536_v2, %v4897_v10  ;;  %v3450_v15 = vpop.f32.mrb[41].mxu0 }
 0x151   : > { %v4959_v4 = vadd.f32 %v3450_v15, %v3449_v25  ;;  %v3452_v8 = vpop.f32.mrb[42].mxu0 }
 0x152   : > { %v3537_v49 = vpop.f32.mrb[40].mxu1  ;;  %v3453_v37 = vpop.f32.mrb[43].mxu0 }
 0x153   : > { %v3538_v63 = vpop.f32.mrb[41].mxu1  ;;  %v4961_v60 = vadd.f32 %v3453_v37, %v3452_v8 }
 0x154   : > { %v3539_v51 = vadd.f32 %v3538_v63, %v3537_v49  ;;  %v3540_v27 = vpop.f32.mrb[42].mxu1 }
 0x155   : > { %v3541_v13 = vpop.f32.mrb[43].mxu1 }
 0x156   : > { %v4964_v58 = vadd.f32 %v3539_v51, %v4909_v18  ;;  %v3542_v42 = vadd.f32 %v3541_v13, %v3540_v27 }
 0x157   : > { %v3455_v6 = vpop.f32.mrb[44].mxu0 }
 0x158   : > { %v4967_v10 = vadd.f32 %v3542_v42, %v4911_v29  ;;  %v3456_v61 = vpop.f32.mrb[45].mxu0 }
 0x159   : > { %v4969_v53 = vadd.f32 %v3456_v61, %v3455_v6  ;;  %v3458_v59 = vpop.f32.mrb[46].mxu0 }
 0x15a   : > { %v3543_v21 = vpop.f32.mrb[44].mxu1  ;;  %v3459_v34 = vpop.f32.mrb[47].mxu0 }
 0x15b   : > { %v3544_v1 = vpop.f32.mrb[45].mxu1  ;;  %v4971_v41 = vadd.f32 %v3459_v34, %v3458_v59 }
 0x15c   : > { %v3545_v20 = vadd.f32 %v3544_v1, %v3543_v21  ;;  %v3546_v7 = vpop.f32.mrb[46].mxu1 }
 0x15d   : > { %v3547_v26 = vpop.f32.mrb[47].mxu1 }
 0x15e   : > { %v4974_v18 = vadd.f32 %v3545_v20, %v4923_v0  ;;  %v3548_v24 = vadd.f32 %v3547_v26, %v3546_v7 }
 0x15f   : > { %v3613_v19 = vpop.f32.mrb[48].mxu0 }
 0x160   : > { %v4977_v29 = vadd.f32 %v3548_v24, %v4925_v38  ;;  %v3614_v44 = vpop.f32.mrb[49].mxu0 }
 0x161   : > { %v3615_v43 = vadd.f32 %v3614_v44, %v3613_v19  ;;  %v3616_v46 = vpop.f32.mrb[50].mxu0 }
 0x162   : > { %v3549_v14 = vpop.f32.mrb[48].mxu1  ;;  %v3617_v52 = vpop.f32.mrb[51].mxu0 }
 0x163   : > { %v3550_v3 = vpop.f32.mrb[49].mxu1  ;;  %v4980_v40 = vadd.f32 %v3615_v43, %v4888_v62  ;;  %v3618_v35 = vadd.f32 %v3617_v52, %v3616_v46 }
 0x164   : > { %v3551_v2 = vadd.f32 %v3550_v3, %v3549_v14  ;;  %v3552_v25 = vpop.f32.mrb[50].mxu1 }
 0x165   : > { %v3553_v15 = vpop.f32.mrb[51].mxu1  ;;  %v4983_v0 = vadd.f32 %v3618_v35, %v4892_v55 }
 0x166   : > { %v4986_v8 = vadd.f32 %v3551_v2, %v4937_v56  ;;  %v3554_v38 = vadd.f32 %v3553_v15, %v3552_v25 }
 0x167   : > { %v3619_v49 = vpop.f32.mrb[52].mxu0 }
 0x168   : > { %v4989_v37 = vadd.f32 %v3554_v38, %v4939_v33  ;;  %v3620_v63 = vpop.f32.mrb[53].mxu0 }
 0x169   : > { %v3621_v51 = vadd.f32 %v3620_v63, %v3619_v49  ;;  %v3622_v27 = vpop.f32.mrb[54].mxu0 }
 0x16a   : > { %v3555_v62 = vpop.f32.mrb[52].mxu1  ;;  %v3623_v13 = vpop.f32.mrb[55].mxu0 }
 0x16b   : > { %v3556_v42 = vpop.f32.mrb[53].mxu1  ;;  %v4992_v6 = vadd.f32 %v3621_v51, %v4902_v9  ;;  %v3624_v61 = vadd.f32 %v3623_v13, %v3622_v27 }
 0x16c   : > { %v3557_v55 = vadd.f32 %v3556_v42, %v3555_v62  ;;  %v3558_v59 = vpop.f32.mrb[54].mxu1 }
 0x16d   : > { %v3559_v21 = vpop.f32.mrb[55].mxu1  ;;  %v4995_v56 = vadd.f32 %v3624_v61, %v4906_v17 }
 0x16e   : > { %v4998_v34 = vadd.f32 %v3557_v55, %v4949_v50  ;;  %v3560_v33 = vadd.f32 %v3559_v21, %v3558_v59 }
 0x16f   : > { %v3625_v1 = vpop.f32.mrb[56].mxu0 }
 0x170   : > { %v5001_v20 = vadd.f32 %v3560_v33, %v4951_v11  ;;  %v3626_v7 = vpop.f32.mrb[57].mxu0 }
 0x171   : > { %v3627_v26 = vadd.f32 %v3626_v7, %v3625_v1  ;;  %v3628_v24 = vpop.f32.mrb[58].mxu0 }
 0x172   : > { %v3561_v9 = vpop.f32.mrb[56].mxu1  ;;  %v3629_v19 = vpop.f32.mrb[59].mxu0 }
 0x173   : > { %v3562_v44 = vpop.f32.mrb[57].mxu1  ;;  %v5004_v43 = vadd.f32 %v3627_v26, %v4916_v22  ;;  %v3630_v46 = vadd.f32 %v3629_v19, %v3628_v24 }
 0x174   : > { %v3563_v17 = vadd.f32 %v3562_v44, %v3561_v9  ;;  %v3564_v14 = vpop.f32.mrb[58].mxu1 }
 0x175   : > { %v3565_v52 = vpop.f32.mrb[59].mxu1  ;;  %v5007_v50 = vadd.f32 %v3630_v46, %v4920_v31 }
 0x176   : > { %v5010_v3 = vadd.f32 %v3563_v17, %v4959_v4  ;;  %v3566_v11 = vadd.f32 %v3565_v52, %v3564_v14 }
 0x177   : > { %v3631_v35 = vpop.f32.mrb[60].mxu0 }
 0x178   : > { %v5013_v2 = vadd.f32 %v3566_v11, %v4961_v60  ;;  %v3632_v25 = vpop.f32.mrb[61].mxu0 }
 0x179   : > { %v3633_v15 = vadd.f32 %v3632_v25, %v3631_v35  ;;  %v3634_v38 = vpop.f32.mrb[62].mxu0 }
 0x17a   : > { %v3567_v22 = vpop.f32.mrb[60].mxu1  ;;  %v3635_v49 = vpop.f32.mrb[63].mxu0 }
 0x17b   : > { %v3568_v63 = vpop.f32.mrb[61].mxu1  ;;  %v5016_v51 = vadd.f32 %v3633_v15, %v4930_v57  ;;  %v3636_v27 = vadd.f32 %v3635_v49, %v3634_v38 }
 0x17c   : > { %v3569_v31 = vadd.f32 %v3568_v63, %v3567_v22  ;;  %v3570_v62 = vpop.f32.mrb[62].mxu1 }
 0x17d   : > { %v3571_v13 = vpop.f32.mrb[63].mxu1  ;;  %v5019_v4 = vadd.f32 %v3636_v27, %v4934_v5 }
 0x17e   : > { %v5022_v42 = vadd.f32 %v3569_v31, %v4969_v53  ;;  %v3572_v60 = vadd.f32 %v3571_v13, %v3570_v62 }
 0x17f   : > { %v3637_v61 = vpop.f32.mrb[64].mxu0 }
 0x180   : > { %v5025_v55 = vadd.f32 %v3572_v60, %v4971_v41  ;;  %v3638_v59 = vpop.f32.mrb[65].mxu0 }
 0x181   : > { %v3639_v21 = vadd.f32 %v3638_v59, %v3637_v61  ;;  %v3640_v33 = vpop.f32.mrb[66].mxu0 }
 0x182   : > { %v3573_v57 = vpop.f32.mrb[64].mxu1  ;;  %v3641_v1 = vpop.f32.mrb[67].mxu0 }
 0x183   : > { %v3574_v7 = vpop.f32.mrb[65].mxu1  ;;  %v5028_v26 = vadd.f32 %v3639_v21, %v4943_v23  ;;  %v3642_v24 = vadd.f32 %v3641_v1, %v3640_v33 }
 0x184   : > { %v3575_v5 = vadd.f32 %v3574_v7, %v3573_v57  ;;  %v3576_v9 = vpop.f32.mrb[66].mxu1 }
 0x185   : > { %v3577_v19 = vpop.f32.mrb[67].mxu1  ;;  %v5031_v53 = vadd.f32 %v3642_v24, %v4947_v36 }
 0x186   : > { %v5034_v44 = vadd.f32 %v3575_v5, %v4830_v39  ;;  %v3578_v41 = vadd.f32 %v3577_v19, %v3576_v9 }
 0x187   : > { %v3643_v46 = vpop.f32.mrb[68].mxu0 }
 0x188   : > { %v5037_v17 = vadd.f32 %v3578_v41, %v4833_v48  ;;  %v3644_v14 = vpop.f32.mrb[69].mxu0 }
 0x189   : > { %v3645_v52 = vadd.f32 %v3644_v14, %v3643_v46  ;;  %v3646_v11 = vpop.f32.mrb[70].mxu0 }
 0x18a   : > { %v3579_v23 = vpop.f32.mrb[68].mxu1  ;;  %v3647_v35 = vpop.f32.mrb[71].mxu0 }
 0x18b   : > { %v3580_v25 = vpop.f32.mrb[69].mxu1  ;;  %v5040_v15 = vadd.f32 %v3645_v52, %v4954_v32  ;;  %v3648_v38 = vadd.f32 %v3647_v35, %v3646_v11 }
 0x18c   : > { %v3581_v36 = vadd.f32 %v3580_v25, %v3579_v23  ;;  %v3582_v22 = vpop.f32.mrb[70].mxu1 }
 0x18d   : > { %v3583_v49 = vpop.f32.mrb[71].mxu1  ;;  %v5043_v39 = vadd.f32 %v3648_v38, %v4957_v54 }
 0x18e   : > { %v5046_v63 = vadd.f32 %v3581_v36, %v4844_v28  ;;  %v3584_v48 = vadd.f32 %v3583_v49, %v3582_v22 }
 0x18f   : > { %v3649_v27 = vpop.f32.mrb[72].mxu0 }
 0x190   : > { %v5049_v31 = vadd.f32 %v3584_v48, %v4849_v12  ;;  %v3650_v62 = vpop.f32.mrb[73].mxu0 }
 0x191   : > { %v3651_v13 = vadd.f32 %v3650_v62, %v3649_v27  ;;  %v3652_v60 = vpop.f32.mrb[74].mxu0 }
 0x192   : > { %v3585_v32 = vpop.f32.mrb[72].mxu1  ;;  %v3653_v61 = vpop.f32.mrb[75].mxu0 }
 0x193   : > { %v3586_v59 = vpop.f32.mrb[73].mxu1  ;;  %v5052_v21 = vadd.f32 %v3651_v13, %v4964_v58  ;;  %v3654_v33 = vadd.f32 %v3653_v61, %v3652_v60 }
 0x194   : > { %v3587_v54 = vadd.f32 %v3586_v59, %v3585_v32  ;;  %v3588_v57 = vpop.f32.mrb[74].mxu1 }
 0x195   : > { %v3589_v1 = vpop.f32.mrb[75].mxu1  ;;  %v5055_v28 = vadd.f32 %v3654_v33, %v4967_v10 }
 0x196   : > { %v5058_v7 = vadd.f32 %v3587_v54, %v4861_v16  ;;  %v3590_v12 = vadd.f32 %v3589_v1, %v3588_v57 }
 0x197   : > { %v3655_v24 = vpop.f32.mrb[76].mxu0 }
 0x198   : > { %v5061_v5 = vadd.f32 %v3590_v12, %v4863_v47  ;;  %v3656_v9 = vpop.f32.mrb[77].mxu0 }
 0x199   : > { %v3657_v19 = vadd.f32 %v3656_v9, %v3655_v24  ;;  %v3658_v41 = vpop.f32.mrb[78].mxu0 }
 0x19a   : > { %v3591_v58 = vpop.f32.mrb[76].mxu1  ;;  %v3659_v46 = vpop.f32.mrb[79].mxu0 }
 0x19b   : > { %v3592_v14 = vpop.f32.mrb[77].mxu1  ;;  %v5064_v52 = vadd.f32 %v3657_v19, %v4974_v18  ;;  %v3660_v11 = vadd.f32 %v3659_v46, %v3658_v41 }
 0x19c   : > { %v3593_v10 = vadd.f32 %v3592_v14, %v3591_v58  ;;  %v3594_v23 = vpop.f32.mrb[78].mxu1 }
 0x19d   : > { %v3595_v35 = vpop.f32.mrb[79].mxu1  ;;  %v5067_v16 = vadd.f32 %v3660_v11, %v4977_v29 }
 0x19e   : > { %v5070_v25 = vadd.f32 %v3593_v10, %v4873_v45  ;;  %v3596_v47 = vadd.f32 %v3595_v35, %v3594_v23 }
 0x19f   : > { %v3661_v38 = vpop.f32.mrb[80].mxu0 }
 0x1a0   : > { %v5073_v36 = vadd.f32 %v3596_v47, %v4877_v30  ;;  %v3662_v22 = vpop.f32.mrb[81].mxu0 }
 0x1a1   : > { %v3663_v49 = vadd.f32 %v3662_v22, %v3661_v38  ;;  %v3664_v48 = vpop.f32.mrb[82].mxu0 }
 0x1a2   : > { %v3725_v18 = vpop.f32.mrb[80].mxu1  ;;  %v3665_v27 = vpop.f32.mrb[83].mxu0 }
 0x1a3   : > { %v5076_v62 = vadd.f32 %v3663_v49, %v4986_v8  ;;  %v3726_v13 = vpop.f32.mrb[81].mxu1  ;;  %v3666_v60 = vadd.f32 %v3665_v27, %v3664_v48 }
 0x1a4   : > { %v3727_v29 = vadd.f32 %v3726_v13, %v3725_v18  ;;  %v3728_v32 = vpop.f32.mrb[82].mxu1 }
 0x1a5   : > { %v5079_v45 = vadd.f32 %v3666_v60, %v4989_v37  ;;  %v3729_v61 = vpop.f32.mrb[83].mxu1 }
 0x1a6   : > { %v3730_v59 = vadd.f32 %v3729_v61, %v3728_v32  ;;  %v5082_v30 = vadd.f32 %v3727_v29, %v4980_v40 }
 0x1a7   : > { %v3667_v33 = vpop.f32.mrb[84].mxu0 }
 0x1a8   : > { %v3668_v54 = vpop.f32.mrb[85].mxu0  ;;  %v5085_v57 = vadd.f32 %v3730_v59, %v4983_v0 }
 0x1a9   : > { %v3669_v1 = vadd.f32 %v3668_v54, %v3667_v33  ;;  %v3670_v8 = vpop.f32.mrb[86].mxu0 }
 0x1aa   : > { %v3731_v12 = vpop.f32.mrb[84].mxu1  ;;  %v3671_v24 = vpop.f32.mrb[87].mxu0 }
 0x1ab   : > { %v5088_v9 = vadd.f32 %v3669_v1, %v4998_v34  ;;  %v3732_v19 = vpop.f32.mrb[85].mxu1  ;;  %v3672_v37 = vadd.f32 %v3671_v24, %v3670_v8 }
 0x1ac   : > { %v3733_v41 = vadd.f32 %v3732_v19, %v3731_v12  ;;  %v3734_v58 = vpop.f32.mrb[86].mxu1 }
 0x1ad   : > { %v5091_v46 = vadd.f32 %v3672_v37, %v5001_v20  ;;  %v3735_v40 = vpop.f32.mrb[87].mxu1 }
 0x1ae   : > { %v3736_v14 = vadd.f32 %v3735_v40, %v3734_v58  ;;  %v5094_v11 = vadd.f32 %v3733_v41, %v4992_v6 }
 0x1af   : > { %v3673_v0 = vpop.f32.mrb[88].mxu0 }
 0x1b0   : > { %v3674_v10 = vpop.f32.mrb[89].mxu0  ;;  %v5097_v23 = vadd.f32 %v3736_v14, %v4995_v56 }
 0x1b1   : > { %v3675_v35 = vadd.f32 %v3674_v10, %v3673_v0  ;;  %v3676_v34 = vpop.f32.mrb[90].mxu0 }
 0x1b2   : > { %v3737_v47 = vpop.f32.mrb[88].mxu1  ;;  %v3677_v38 = vpop.f32.mrb[91].mxu0 }
 0x1b3   : > { %v5100_v22 = vadd.f32 %v3675_v35, %v5010_v3  ;;  %v3738_v49 = vpop.f32.mrb[89].mxu1  ;;  %v3678_v20 = vadd.f32 %v3677_v38, %v3676_v34 }
 0x1b4   : > { %v3739_v48 = vadd.f32 %v3738_v49, %v3737_v47  ;;  %v3740_v18 = vpop.f32.mrb[90].mxu1 }
 0x1b5   : > { %v5103_v27 = vadd.f32 %v3678_v20, %v5013_v2  ;;  %v3741_v6 = vpop.f32.mrb[91].mxu1 }
 0x1b6   : > { %v3742_v13 = vadd.f32 %v3741_v6, %v3740_v18  ;;  %v5106_v60 = vadd.f32 %v3739_v48, %v5004_v43 }
 0x1b7   : > { %v3679_v56 = vpop.f32.mrb[92].mxu0 }
 0x1b8   : > { %v3680_v29 = vpop.f32.mrb[93].mxu0  ;;  %v5109_v32 = vadd.f32 %v3742_v13, %v5007_v50 }
 0x1b9   : > { %v3681_v61 = vadd.f32 %v3680_v29, %v3679_v56  ;;  %v3682_v3 = vpop.f32.mrb[94].mxu0 }
 0x1ba   : > { %v3743_v59 = vpop.f32.mrb[92].mxu1  ;;  %v3683_v33 = vpop.f32.mrb[95].mxu0 }
 0x1bb   : > { %v5112_v54 = vadd.f32 %v3681_v61, %v5022_v42  ;;  %v3744_v1 = vpop.f32.mrb[93].mxu1  ;;  %v3684_v2 = vadd.f32 %v3683_v33, %v3682_v3 }
 0x1bc   : > { %v3745_v8 = vadd.f32 %v3744_v1, %v3743_v59  ;;  %v3746_v12 = vpop.f32.mrb[94].mxu1 }
 0x1bd   : > { %v5115_v24 = vadd.f32 %v3684_v2, %v5025_v55  ;;  %v3747_v43 = vpop.f32.mrb[95].mxu1 }
 0x1be   : > { %v3748_v19 = vadd.f32 %v3747_v43, %v3746_v12  ;;  %v5118_v37 = vadd.f32 %v3745_v8, %v5016_v51 }
 0x1bf   : > { %v3685_v50 = vpop.f32.mrb[96].mxu0 }
 0x1c0   : > { %v3686_v41 = vpop.f32.mrb[97].mxu0  ;;  %v5121_v58 = vadd.f32 %v3748_v19, %v5019_v4 }
 0x1c1   : > { %v3687_v40 = vadd.f32 %v3686_v41, %v3685_v50  ;;  %v3688_v42 = vpop.f32.mrb[98].mxu0 }
 0x1c2   : > { %v3749_v14 = vpop.f32.mrb[96].mxu1  ;;  %v3689_v0 = vpop.f32.mrb[99].mxu0 }
 0x1c3   : > { %v5124_v10 = vadd.f32 %v3687_v40, %v5034_v44  ;;  %v3750_v35 = vpop.f32.mrb[97].mxu1  ;;  %v3690_v55 = vadd.f32 %v3689_v0, %v3688_v42 }
 0x1c4   : > { %v3751_v34 = vadd.f32 %v3750_v35, %v3749_v14  ;;  %v3752_v47 = vpop.f32.mrb[98].mxu1 }
 0x1c5   : > { %v5127_v38 = vadd.f32 %v3690_v55, %v5037_v17  ;;  %v3753_v51 = vpop.f32.mrb[99].mxu1 }
 0x1c6   : > { %v3754_v49 = vadd.f32 %v3753_v51, %v3752_v47  ;;  %v5130_v20 = vadd.f32 %v3751_v34, %v5028_v26 }
 0x1c7   : > { %v3691_v4 = vpop.f32.mrb[100].mxu0 }
 0x1c8   : > { %v3692_v48 = vpop.f32.mrb[101].mxu0  ;;  %v5133_v18 = vadd.f32 %v3754_v49, %v5031_v53 }
 0x1c9   : > { %v3693_v6 = vadd.f32 %v3692_v48, %v3691_v4  ;;  %v3694_v44 = vpop.f32.mrb[102].mxu0 }
 0x1ca   : > { %v3755_v13 = vpop.f32.mrb[100].mxu1  ;;  %v3695_v56 = vpop.f32.mrb[103].mxu0 }
 0x1cb   : > { %v5136_v29 = vadd.f32 %v3693_v6, %v5046_v63  ;;  %v3756_v61 = vpop.f32.mrb[101].mxu1  ;;  %v3696_v17 = vadd.f32 %v3695_v56, %v3694_v44 }
 0x1cc   : > { %v3757_v3 = vadd.f32 %v3756_v61, %v3755_v13  ;;  %v3758_v59 = vpop.f32.mrb[102].mxu1 }
 0x1cd   : > { %v5139_v33 = vadd.f32 %v3696_v17, %v5049_v31  ;;  %v3759_v26 = vpop.f32.mrb[103].mxu1 }
 0x1ce   : > { %v3760_v1 = vadd.f32 %v3759_v26, %v3758_v59  ;;  %v5142_v2 = vadd.f32 %v3757_v3, %v5040_v15 }
 0x1cf   : > { %v3697_v53 = vpop.f32.mrb[104].mxu0 }
 0x1d0   : > { %v3698_v8 = vpop.f32.mrb[105].mxu0  ;;  %v5145_v12 = vadd.f32 %v3760_v1, %v5043_v39 }
 0x1d1   : > { %v3699_v43 = vadd.f32 %v3698_v8, %v3697_v53  ;;  %v3700_v63 = vpop.f32.mrb[106].mxu0 }
 0x1d2   : > { %v3761_v19 = vpop.f32.mrb[104].mxu1  ;;  %v3701_v50 = vpop.f32.mrb[107].mxu0 }
 0x1d3   : > { %v5148_v41 = vadd.f32 %v3699_v43, %v5058_v7  ;;  %v3762_v40 = vpop.f32.mrb[105].mxu1  ;;  %v3702_v31 = vadd.f32 %v3701_v50, %v3700_v63 }
 0x1d4   : > { %v3763_v42 = vadd.f32 %v3762_v40, %v3761_v19  ;;  %v3764_v14 = vpop.f32.mrb[106].mxu1 }
 0x1d5   : > { %v5151_v0 = vadd.f32 %v3702_v31, %v5061_v5  ;;  %v3765_v15 = vpop.f32.mrb[107].mxu1 }
 0x1d6   : > { %v3766_v35 = vadd.f32 %v3765_v15, %v3764_v14  ;;  %v5154_v55 = vadd.f32 %v3763_v42, %v5052_v21 }
 0x1d7   : > { %v3703_v39 = vpop.f32.mrb[108].mxu0 }
 0x1d8   : > { %v3704_v34 = vpop.f32.mrb[109].mxu0  ;;  %v5157_v47 = vadd.f32 %v3766_v35, %v5055_v28 }
 0x1d9   : > { %v3705_v51 = vadd.f32 %v3704_v34, %v3703_v39  ;;  %v3706_v7 = vpop.f32.mrb[110].mxu0 }
 0x1da   : > { %v3767_v49 = vpop.f32.mrb[108].mxu1  ;;  %v3707_v4 = vpop.f32.mrb[111].mxu0 }
 0x1db   : > { %v5160_v48 = vadd.f32 %v3705_v51, %v5070_v25  ;;  %v3768_v6 = vpop.f32.mrb[109].mxu1  ;;  %v3708_v5 = vadd.f32 %v3707_v4, %v3706_v7 }
 0x1dc   : > { %v3769_v44 = vadd.f32 %v3768_v6, %v3767_v49  ;;  %v3770_v13 = vpop.f32.mrb[110].mxu1 }
 0x1dd   : > { %v5163_v21 = vadd.f32 %v3708_v5, %v5073_v36  ;;  %v3771_v56 = vpop.f32.mrb[111].mxu1 }
 0x1de   : > { %v3772_v61 = vadd.f32 %v3771_v56, %v3770_v13  ;;  %v5166_v28 = vadd.f32 %v3769_v44, %v5064_v52 }
 0x1df   : > { %v3863_v17 = vpop.f32.mrb[112].mxu0 }
 0x1e0   : > { %v2528_v3 = vadd.f32 %v3863_v17, %v5094_v11  ;;  %v2519_v59 = vpop.f32.mrb[113].mxu0  ;;  %v5170_v25 = vadd.f32 %v3772_v61, %v5067_v16 }
 0x1e1   : > { %v2520_v26 = vadd.f32 %v2519_v59, %v5082_v30  ;;  %v3864_v1 = vpop.f32.mrb[114].mxu0 }
 0x1e2   : > { %v3773_v53 = vpop.f32.mrb[112].mxu1  ;;  %v2531_v8 = vadd.f32 %v3864_v1, %v5097_v23  ;;  %v2522_v36 = vpop.f32.mrb[115].mxu0  ;;  %v2845_v14 = vmul.f32 %v2528_v3, %v2528_v3 }
 0x1e3   : > { %v3774_v43 = vpop.f32.mrb[113].mxu1  ;;  %v2523_v52 = vadd.f32 %v2522_v36, %v5085_v57  ;;  %v2843_v30 = vmul.f32 %v2520_v26, %v2520_v26 }
 0x1e4   : > { %v3775_v16 = vadd.f32 %v3774_v43, %v3773_v53  ;;  %v3776_v11 = vpop.f32.mrb[114].mxu1  ;;  %v3271_v63 = vpack.c.bf16 %v2531_v8, %v2528_v3  ;;  %v2846_v7 = vmul.f32 %v2531_v8, %v2531_v8 }
 0x1e5   : > { %v3777_v19 = vpop.f32.mrb[115].mxu1  ;;  %v3266_v50 = vpack.c.bf16 %v2523_v52, %v2520_v26  ;;  %v2806_v40 = vadd.f32 %v2523_v52, %v2520_v26  ;;  %v2844_v23 = vmul.f32 %v2523_v52, %v2523_v52 }
 0x1e6   : > { %3358 = vst [vmem:[%s5179_s9 + $0x8] sm:$0xff] %v3271_v63   ;;  %v3778_v31 = vadd.f32 %v3777_v19, %v3776_v11  ;;  %v5184_v42 = vadd.f32 %v3775_v16, %v5076_v62 }
 0x1e7   : > { %3267 = vst [vmem:[%s5179_s9] sm:$0xff] %v3266_v50   ;;  %v2807_v15 = vadd.f32 %v2806_v40, %v2528_v3  ;;  %v2875_v35 = vadd.f32 %v2844_v23, %v2843_v30  ;;  %v3867_v39 = vpop.f32.mrb[116].mxu0 }
 0x1e8   : > { %v2544_v57 = vadd.f32 %v3867_v39, %v5118_v37  ;;  %v2535_v34 = vpop.f32.mrb[117].mxu0  ;;  %v5189_v51 = vadd.f32 %v3778_v31, %v5079_v45 }
 0x1e9   : > { %v2876_v49 = vadd.f32 %v2875_v35, %v2845_v14  ;;  %v2536_v4 = vadd.f32 %v2535_v34, %v5106_v60  ;;  %v2808_v6 = vadd.f32 %v2807_v15, %v2531_v8  ;;  %v3868_v5 = vpop.f32.mrb[118].mxu0 }
 0x1ea   : > { %v3779_v44 = vpop.f32.mrb[116].mxu1  ;;  %v2547_v62 = vadd.f32 %v3868_v5, %v5121_v58  ;;  %v2538_v13 = vpop.f32.mrb[119].mxu0  ;;  %v2849_v52 = vmul.f32 %v2544_v57, %v2544_v57 }
 0x1eb   : > { %v3780_v56 = vpop.f32.mrb[117].mxu1  ;;  %v2809_v61 = vadd.f32 %v2808_v6, %v2536_v4  ;;  %v2847_v17 = vmul.f32 %v2536_v4, %v2536_v4  ;;  %v2877_v37 = vadd.f32 %v2876_v49, %v2846_v7  ;;  %v2539_v3 = vadd.f32 %v2538_v13, %v5109_v32 }
 0x1ec   : > { %v3781_v45 = vadd.f32 %v3780_v56, %v3779_v44  ;;  %v3782_v59 = vpop.f32.mrb[118].mxu1  ;;  %v3281_v26 = vpack.c.bf16 %v2547_v62, %v2544_v57  ;;  %v2850_v50 = vmul.f32 %v2547_v62, %v2547_v62 }
 0x1ed   : > { %v2878_v1 = vadd.f32 %v2877_v37, %v2847_v17  ;;  %v3783_v53 = vpop.f32.mrb[119].mxu1  ;;  %v3276_v60 = vpack.c.bf16 %v2539_v3, %v2536_v4  ;;  %v2810_v8 = vadd.f32 %v2809_v61, %v2539_v3  ;;  %v2848_v36 = vmul.f32 %v2539_v3, %v2539_v3 }
 0x1ee   : > { %3360 = vst [vmem:[%s5179_s9 + $0x18] sm:$0xff] %v3281_v26   ;;  %v3784_v43 = vadd.f32 %v3783_v53, %v3782_v59  ;;  %v5196_v58 = vadd.f32 %v3781_v45, %v5088_v9 }
 0x1ef   : > { %3359 = vst [vmem:[%s5179_s9 + $0x10] sm:$0xff] %v3276_v60   ;;  %v2811_v16 = vadd.f32 %v2810_v8, %v2544_v57  ;;  %v2879_v11 = vadd.f32 %v2878_v1, %v2848_v36  ;;  %v3871_v63 = vpop.f32.mrb[120].mxu0 }
 0x1f0   : > { %v2560_v32 = vadd.f32 %v3871_v63, %v5142_v2  ;;  %v2551_v30 = vpop.f32.mrb[121].mxu0  ;;  %v5201_v19 = vadd.f32 %v3784_v43, %v5091_v46 }
 0x1f1   : > { %v2880_v40 = vadd.f32 %v2879_v11, %v2849_v52  ;;  %v2552_v23 = vadd.f32 %v2551_v30, %v5130_v20  ;;  %v2812_v31 = vadd.f32 %v2811_v16, %v2547_v62  ;;  %v3872_v14 = vpop.f32.mrb[122].mxu0 }
 0x1f2   : > { %v3785_v15 = vpop.f32.mrb[120].mxu1  ;;  %v2563_v9 = vadd.f32 %v3872_v14, %v5145_v12  ;;  %v2554_v35 = vpop.f32.mrb[123].mxu0  ;;  %v2853_v56 = vmul.f32 %v2560_v32, %v2560_v32 }
 0x1f3   : > { %v3786_v39 = vpop.f32.mrb[121].mxu1  ;;  %v2813_v57 = vadd.f32 %v2812_v31, %v2552_v23  ;;  %v2851_v34 = vmul.f32 %v2552_v23, %v2552_v23  ;;  %v2881_v2 = vadd.f32 %v2880_v40, %v2850_v50  ;;  %v2555_v7 = vadd.f32 %v2554_v35, %v5133_v18 }
 0x1f4   : > { %v3787_v46 = vadd.f32 %v3786_v39, %v3785_v15  ;;  %v3788_v49 = vpop.f32.mrb[122].mxu1  ;;  %v3291_v4 = vpack.c.bf16 %v2563_v9, %v2560_v32  ;;  %v2854_v59 = vmul.f32 %v2563_v9, %v2563_v9 }
 0x1f5   : > { %v2882_v6 = vadd.f32 %v2881_v2, %v2851_v34  ;;  %v3789_v5 = vpop.f32.mrb[123].mxu1  ;;  %v3286_v20 = vpack.c.bf16 %v2555_v7, %v2552_v23  ;;  %v2814_v44 = vadd.f32 %v2813_v57, %v2555_v7  ;;  %v2852_v62 = vmul.f32 %v2555_v7, %v2555_v7 }
 0x1f6   : > { %3362 = vst [vmem:[%s5179_s9 + $0x28] sm:$0xff] %v3291_v4   ;;  %v3790_v13 = vadd.f32 %v3789_v5, %v3788_v49  ;;  %v5208_v12 = vadd.f32 %v3787_v46, %v5100_v22 }
 0x1f7   : > { %3361 = vst [vmem:[%s5179_s9 + $0x20] sm:$0xff] %v3286_v20   ;;  %v2815_v61 = vadd.f32 %v2814_v44, %v2560_v32  ;;  %v2883_v17 = vadd.f32 %v2882_v6, %v2852_v62  ;;  %v3875_v37 = vpop.f32.mrb[124].mxu0 }
 0x1f8   : > { %v2576_v18 = vadd.f32 %v3875_v37, %v5166_v28  ;;  %v2567_v3 = vpop.f32.mrb[125].mxu0  ;;  %v5213_v45 = vadd.f32 %v3790_v13, %v5103_v27 }
 0x1f9   : > { %v2884_v26 = vadd.f32 %v2883_v17, %v2853_v56  ;;  %v2568_v1 = vadd.f32 %v2567_v3, %v5154_v55  ;;  %v2816_v53 = vadd.f32 %v2815_v61, %v2563_v9  ;;  %v3876_v60 = vpop.f32.mrb[126].mxu0 }
 0x1fa   : > { %v3791_v8 = vpop.f32.mrb[124].mxu1  ;;  %v2579_v22 = vadd.f32 %v3876_v60, %v5170_v25  ;;  %v2570_v36 = vpop.f32.mrb[127].mxu0  ;;  %v2857_v14 = vmul.f32 %v2576_v18, %v2576_v18 }
 0x1fb   : > { %v3792_v43 = vpop.f32.mrb[125].mxu1  ;;  %v2817_v52 = vadd.f32 %v2816_v53, %v2568_v1  ;;  %v2855_v16 = vmul.f32 %v2568_v1, %v2568_v1  ;;  %v2885_v28 = vadd.f32 %v2884_v26, %v2854_v59  ;;  %v2571_v11 = vadd.f32 %v2570_v36, %v5157_v47 }
 0x1fc   : > { %v3793_v27 = vadd.f32 %v3792_v43, %v3791_v8  ;;  %v3794_v63 = vpop.f32.mrb[126].mxu1  ;;  %v3301_v32 = vpack.c.bf16 %v2579_v22, %v2576_v18  ;;  %v2858_v34 = vmul.f32 %v2579_v22, %v2579_v22 }
 0x1fd   : > { %v2886_v30 = vadd.f32 %v2885_v28, %v2855_v16  ;;  %v3795_v50 = vpop.f32.mrb[127].mxu1  ;;  %v3296_v55 = vpack.c.bf16 %v2571_v11, %v2568_v1  ;;  %v2818_v40 = vadd.f32 %v2817_v52, %v2571_v11  ;;  %v2856_v23 = vmul.f32 %v2571_v11, %v2571_v11 }
 0x1fe   : > { %3364 = vst [vmem:[%s5179_s9 + $0x38] sm:$0xff] %v3301_v32   ;;  %v3796_v31 = vadd.f32 %v3795_v50, %v3794_v63  ;;  %v2447_v25 = vadd.f32 %v3793_v27, %v5112_v54 }
 0x1ff   : > { %3363 = vst [vmem:[%s5179_s9 + $0x30] sm:$0xff] %v3296_v55   ;;  %v2819_v15 = vadd.f32 %v2818_v40, %v2576_v18  ;;  %v2887_v9 = vadd.f32 %v2886_v30, %v2856_v23  ;;  %v3879_v35 = vpop.f32.mrb[128].mxu0 }
 0x200   : > { %v2592_v39 = vadd.f32 %v3879_v35, %v5196_v58  ;;  %v2583_v47 = vpop.f32.mrb[129].mxu0  ;;  %v2450_v57 = vadd.f32 %v3796_v31, %v5115_v24 }
 0x201   : > { %v2888_v2 = vadd.f32 %v2887_v9, %v2857_v14  ;;  %v2584_v7 = vadd.f32 %v2583_v47, %v5184_v42  ;;  %v2820_v46 = vadd.f32 %v2819_v15, %v2579_v22  ;;  %v3880_v49 = vpop.f32.mrb[130].mxu0 }
 0x202   : > { %v3797_v4 = vpop.f32.mrb[128].mxu1  ;;  %v2595_v54 = vadd.f32 %v3880_v49, %v5201_v19  ;;  %v2586_v6 = vpop.f32.mrb[131].mxu0  ;;  %v2861_v59 = vmul.f32 %v2592_v39, %v2592_v39 }
 0x203   : > { %v3798_v5 = vpop.f32.mrb[129].mxu1  ;;  %v2821_v20 = vadd.f32 %v2820_v46, %v2584_v7  ;;  %v2859_v44 = vmul.f32 %v2584_v7, %v2584_v7  ;;  %v2889_v62 = vadd.f32 %v2888_v2, %v2858_v34  ;;  %v2587_v58 = vadd.f32 %v2586_v6, %v5189_v51 }
 0x204   : > { %v3799_v13 = vadd.f32 %v3798_v5, %v3797_v4  ;;  %v3800_v24 = vpop.f32.mrb[130].mxu1  ;;  %v3311_v56 = vpack.c.bf16 %v2595_v54, %v2592_v39  ;;  %v2862_v22 = vmul.f32 %v2595_v54, %v2595_v54 }
 0x205   : > { %v2890_v61 = vadd.f32 %v2889_v62, %v2859_v44  ;;  %v3801_v17 = vpop.f32.mrb[131].mxu1  ;;  %v3306_v42 = vpack.c.bf16 %v2587_v58, %v2584_v7  ;;  %v2822_v37 = vadd.f32 %v2821_v20, %v2587_v58  ;;  %v2860_v18 = vmul.f32 %v2587_v58, %v2587_v58 }
 0x206   : > { %3366 = vst [vmem:[%s5179_s9 + $0x48] sm:$0xff] %v3311_v56   ;;  %v3802_v3 = vadd.f32 %v3801_v17, %v3800_v24  ;;  %v2455_v19 = vadd.f32 %v3799_v13, %v5124_v10 }
 0x207   : > { %3365 = vst [vmem:[%s5179_s9 + $0x40] sm:$0xff] %v3306_v42   ;;  %v2823_v26 = vadd.f32 %v2822_v37, %v2592_v39  ;;  %v2891_v1 = vadd.f32 %v2890_v61, %v2860_v18  ;;  %v3883_v53 = vpop.f32.mrb[132].mxu0 }
 0x208   : > { %v2608_v60 = vadd.f32 %v3883_v53, %v2447_v25  ;;  %v2599_v8 = vpop.f32.mrb[133].mxu0  ;;  %v2458_v51 = vadd.f32 %v3802_v3, %v5127_v38 }
 0x209   : > { %v2892_v36 = vadd.f32 %v2891_v1, %v2861_v59  ;;  %v2600_v43 = vadd.f32 %v2599_v8, %v5208_v12  ;;  %v2824_v52 = vadd.f32 %v2823_v26, %v2595_v54  ;;  %v3884_v16 = vpop.f32.mrb[134].mxu0 }
 0x20a   : > { %v3803_v28 = vpop.f32.mrb[132].mxu1  ;;  %v2611_v11 = vadd.f32 %v3884_v16, %v2450_v57  ;;  %v2602_v27 = vpop.f32.mrb[135].mxu0  ;;  %v2865_v35 = vmul.f32 %v2608_v60, %v2608_v60 }
 0x20b   : > { %v3804_v10 = vpop.f32.mrb[133].mxu1  ;;  %v2825_v63 = vadd.f32 %v2824_v52, %v2600_v43  ;;  %v2863_v32 = vmul.f32 %v2600_v43, %v2600_v43  ;;  %v2893_v30 = vadd.f32 %v2892_v36, %v2862_v22  ;;  %v2603_v50 = vadd.f32 %v2602_v27, %v5213_v45 }
 0x20c   : > { %v3805_v55 = vadd.f32 %v3804_v10, %v3803_v28  ;;  %v3806_v40 = vpop.f32.mrb[134].mxu1  ;;  %v3321_v38 = vpack.c.bf16 %v2611_v11, %v2608_v60  ;;  %v2866_v7 = vmul.f32 %v2611_v11, %v2611_v11 }
 0x20d   : > { %v2894_v23 = vadd.f32 %v2893_v30, %v2863_v32  ;;  %v3807_v31 = vpop.f32.mrb[135].mxu1  ;;  %v3316_v25 = vpack.c.bf16 %v2603_v50, %v2600_v43  ;;  %v2826_v12 = vadd.f32 %v2825_v63, %v2603_v50  ;;  %v2864_v14 = vmul.f32 %v2603_v50, %v2603_v50 }
 0x20e   : > { %3368 = vst [vmem:[%s5179_s9 + $0x58] sm:$0xff] %v3321_v38   ;;  %v3808_v15 = vadd.f32 %v3807_v31, %v3806_v40  ;;  %v2463_v9 = vadd.f32 %v3805_v55, %v5136_v29 }
 0x20f   : > { %3367 = vst [vmem:[%s5179_s9 + $0x50] sm:$0xff] %v3316_v25   ;;  %v2827_v39 = vadd.f32 %v2826_v12, %v2608_v60  ;;  %v2895_v47 = vadd.f32 %v2894_v23, %v2864_v14  ;;  %v3887_v57 = vpop.f32.mrb[136].mxu0 }
 0x210   : > { %v2624_v34 = vadd.f32 %v3887_v57, %v2463_v9  ;;  %v2615_v2 = vpop.f32.mrb[137].mxu0  ;;  %v2466_v45 = vadd.f32 %v3808_v15, %v5139_v33 }
 0x211   : > { %v2896_v46 = vadd.f32 %v2895_v47, %v2865_v35  ;;  %v2616_v49 = vadd.f32 %v2615_v2, %v2455_v19  ;;  %v2828_v4 = vadd.f32 %v2827_v39, %v2611_v11  ;;  %v3888_v54 = vpop.f32.mrb[138].mxu0 }
 0x212   : > { %v3809_v6 = vpop.f32.mrb[136].mxu1  ;;  %v2627_v5 = vadd.f32 %v3888_v54, %v2466_v45  ;;  %v2618_v20 = vpop.f32.mrb[139].mxu0  ;;  %v2869_v59 = vmul.f32 %v2624_v34, %v2624_v34 }
 0x213   : > { %v3810_v44 = vpop.f32.mrb[137].mxu1  ;;  %v2829_v29 = vadd.f32 %v2828_v4, %v2616_v49  ;;  %v2867_v62 = vmul.f32 %v2616_v49, %v2616_v49  ;;  %v2897_v58 = vadd.f32 %v2896_v46, %v2866_v7  ;;  %v2619_v13 = vadd.f32 %v2618_v20, %v2458_v51 }
 0x214   : > { %v3811_v24 = vadd.f32 %v3810_v44, %v3809_v6  ;;  %v3812_v56 = vpop.f32.mrb[138].mxu1  ;;  %v3331_v61 = vpack.c.bf16 %v2627_v5, %v2624_v34  ;;  %v2870_v51 = vmul.f32 %v2627_v5, %v2627_v5 }
 0x215   : > { %v2898_v17 = vadd.f32 %v2897_v58, %v2867_v62  ;;  %v3813_v33 = vpop.f32.mrb[139].mxu1  ;;  %v3326_v42 = vpack.c.bf16 %v2619_v13, %v2616_v49  ;;  %v2830_v37 = vadd.f32 %v2829_v29, %v2619_v13  ;;  %v2868_v18 = vmul.f32 %v2619_v13, %v2619_v13 }
 0x216   : > { %3370 = vst [vmem:[%s5179_s9 + $0x68] sm:$0xff] %v3331_v61   ;;  %v3814_v3 = vadd.f32 %v3813_v33, %v3812_v56  ;;  %v2471_v19 = vadd.f32 %v3811_v24, %v5148_v41 }
 0x217   : > { %3369 = vst [vmem:[%s5179_s9 + $0x60] sm:$0xff] %v3326_v42   ;;  %v2831_v26 = vadd.f32 %v2830_v37, %v2624_v34  ;;  %v2899_v1 = vadd.f32 %v2898_v17, %v2868_v18  ;;  %v3891_v53 = vpop.f32.mrb[140].mxu0 }
 0x218   : > { %v2631_v60 = vpop.f32.mrb[141].mxu0  ;;  %v2474_v8 = vadd.f32 %v3814_v3, %v5151_v0 }
 0x219   : > { %v2900_v22 = vadd.f32 %v2899_v1, %v2869_v59  ;;  %v2632_v36 = vadd.f32 %v2631_v60, %v2471_v19  ;;  %v2832_v43 = vadd.f32 %v2831_v26, %v2627_v5  ;;  %v3892_v52 = vpop.f32.mrb[142].mxu0 }
 0x21a   : > { %v3815_v16 = vpop.f32.mrb[140].mxu1  ;;  %v2634_v28 = vpop.f32.mrb[143].mxu0 }
 0x21b   : > { %v3816_v11 = vpop.f32.mrb[141].mxu1  ;;  %v2833_v27 = vadd.f32 %v2832_v43, %v2632_v36  ;;  %v2871_v10 = vmul.f32 %v2632_v36, %v2632_v36  ;;  %v2901_v41 = vadd.f32 %v2900_v22, %v2870_v51  ;;  %v2635_v63 = vadd.f32 %v2634_v28, %v2474_v8 }
 0x21c   : > { %v3817_v32 = vadd.f32 %v3816_v11, %v3815_v16  ;;  %v3818_v30 = vpop.f32.mrb[142].mxu1 }
 0x21d   : > { %v2902_v50 = vadd.f32 %v2901_v41, %v2871_v10  ;;  %v3819_v55 = vpop.f32.mrb[143].mxu1  ;;  %v3336_v40 = vpack.c.bf16 %v2635_v63, %v2632_v36  ;;  %v2834_v0 = vadd.f32 %v2833_v27, %v2635_v63  ;;  %v2872_v38 = vmul.f32 %v2635_v63, %v2635_v63 }
 0x21e   : > { %v2479_v23 = vadd.f32 %v3817_v32, %v5160_v48  ;;  %v3820_v31 = vadd.f32 %v3819_v55, %v3818_v30 }
 0x21f   : > { %3371 = vst [vmem:[%s5179_s9 + $0x70] sm:$0xff] %v3336_v40   ;;  %v2903_v25 = vadd.f32 %v2902_v50, %v2872_v38 }
 0x220   : > { %v2640_v12 = vadd.f32 %v3891_v53, %v2479_v23  ;;  %v2482_v14 = vadd.f32 %v3820_v31, %v5163_v21 }
 0x222   : > { %v2873_v15 = vmul.f32 %v2640_v12, %v2640_v12  ;;  %v2643_v9 = vadd.f32 %v3892_v52, %v2482_v14  ;;  %v2835_v35 = vadd.f32 %v2834_v0, %v2640_v12 }
 0x224   : > { %v3341_v39 = vpack.c.bf16 %v2643_v9, %v2640_v12  ;;  %v2874_v47 = vmul.f32 %v2643_v9, %v2643_v9  ;;  %v2836_v57 = vadd.f32 %v2835_v35, %v2643_v9  ;;  %v2904_v34 = vadd.f32 %v2903_v25, %v2873_v15 }
 0x226   : > { %3372 = vst [vmem:[%s5179_s9 + $0x78] sm:$0xff] %v3341_v39   ;;  %v2837_v2 = vrot.slane %v2836_v57, 4  ;;  %v2905_v45 = vadd.f32 %v2904_v34, %v2874_v47 }
 0x228   : > { %v2838_v48 = vadd.f32 %v2837_v2, %v2836_v57  ;;  %v2906_v7 = vrot.slane %v2905_v45, 4 }
 0x22a   : > { %v2839_v46 = vrot.slane %v2838_v48, 2  ;;  %v2907_v49 = vadd.f32 %v2906_v7, %v2905_v45 }
 0x22c   : > { %v2840_v4 = vadd.f32 %v2839_v46, %v2838_v48  ;;  %v2908_v54 = vrot.slane %v2907_v49, 2 }
 0x22e   : > { %v2841_v21 = vrot.slane %v2840_v4, 1  ;;  %v2909_v6 = vadd.f32 %v2908_v54, %v2907_v49 }
 0x230   : > { %v2910_v5 = vrot.slane %v2909_v6, 1  ;;  %v2842_v20 = vadd.f32 %v2841_v21, %v2840_v4 }
 0x232   : > { %v2911_v44 = vadd.f32 %v2910_v5, %v2909_v6 }
 0x234   : > { %v2913_v29 = vsel %vm623_vm1, %v2842_v20, %v2911_v44 }
 0x235   : > { %v2915_v62 = vsel %vm2914_vm5, %v2913_v29, 0.0 }
 0x236   : > { %2916 = vst [vmem:[%s283_s11] sm:$0xff] %v2915_v62 }
 0x237 PF: > { %s16_s20 = sadd.s32 1, %s4030_s20   ;;  %s5267_s18 = smov %s4026_s19 }
 0x238   : > { %p13_p6 = scmp.ge.s32.totalorder %s16_s20, 4   ;;  %s5268_s19 = smov %s5270_s21 }
 0x23a   :  { %15 = sbr.rel (!%p13_p6) target bundleno = 2 (0x2), region = 85 }

</bundles_post_ra>
